<compile_context>
chip_gen: v7x
topology: tpu7x:2x2x1
jax: 0.10.0
libtpu: 0.0.40
codegen_flags: <defaults>
</compile_context>

<pallas_src>
import jax
import jax.numpy as jnp
from jax.experimental import pallas as pl
from jax.experimental.pallas import tpu as pltpu

# ----------------------------- model sizes -----------------------------------
SRC_VOCAB = 50
SRC_V_PAD = 64          # padded source vocab (one-hot K dim)
TGT_VOCAB = 64          # stands in for len(fr_vocab)
V_PAD = 128             # lane-dense padded target vocab for FC output / argmax
EMB = 16
HID = 32
SRC_LEN = 8
TGT_LEN = 8
BATCH = 2

NEG_BIG = -1e30

# Packed weight-slab row offsets (all blocks are (<rows>, 128) f32).
R_ENC_WHH = 0                       # (HID, 4H)
R_DEC_WHH = R_ENC_WHH + HID         # (HID, 4H)
R_WFC = R_DEC_WHH + HID             # (HID, V_PAD)
R_BFC = R_WFC + HID                 # (8, V_PAD), row 0 is the real bias
R_ENC_XTAB = R_BFC + 8              # (SRC_V_PAD, 4H)  = emb @ Wih + b
R_DEC_XTAB = R_ENC_XTAB + SRC_V_PAD  # (V_PAD, 4H)     = emb @ Wih + b
SLAB_ROWS = R_DEC_XTAB + V_PAD       # 296

_VMEM = pl.BlockSpec(memory_space=pltpu.MemorySpace.VMEM)
_SMEM = pl.BlockSpec(memory_space=pltpu.MemorySpace.SMEM)


# ------------------------------ kernel helpers --------------------------------
def _lstm_cell(xw, h, c, whh_bf16):
    """One LSTM cell update. xw already holds x @ Wih + b_ih + b_hh (PyTorch gate
    order i, f, g, o); only h @ Whh remains on the per-step chain."""
    gates = xw + jnp.dot(h.astype(jnp.bfloat16), whh_bf16,
                         preferred_element_type=jnp.float32)          # (B, 4H)
    sig = jax.nn.sigmoid(gates)      # one full-width (B,128) EUP pass
    th = jnp.tanh(gates)             # one full-width (B,128) EUP pass
    i = sig[:, 0 * HID:1 * HID]
    f = sig[:, 1 * HID:2 * HID]
    g = th[:, 2 * HID:3 * HID]
    o = sig[:, 3 * HID:4 * HID]
    c_new = f * c + i * g
    h_new = o * jnp.tanh(c_new)
    return h_new, c_new


# ------------------------- fused Seq2Seq kernel --------------------------------
def seq2seq_kernel(tf_ref,            # SMEM (T+1,) f32: draws[0:T], ratio at [T]
                   ids_ref,           # VMEM ((S+T)*B, 1) int32: src ids then tgt ids
                   slab_ref,          # VMEM (SLAB_ROWS, 128) f32 packed weights/tables
                   out_ref,           # VMEM (T*B, V_PAD) f32
                   x_next_ref,        # scratch (B, 4H): next decoder input pre-activation
                   src_xw_ref,        # scratch (S*B, 4H): encoder input pre-activations
                   tgt_xw_ref):       # scratch (T*B, 4H): teacher input pre-activations
    B = BATCH

    # ---- recurrence-chain weights: loaded once, bf16 at the MXU boundary ------
    enc_whh = slab_ref[R_ENC_WHH:R_ENC_WHH + HID, :].astype(jnp.bfloat16)
    dec_whh = slab_ref[R_DEC_WHH:R_DEC_WHH + HID, :].astype(jnp.bfloat16)
    wfc = slab_ref[R_WFC:R_WFC + HID, :].astype(jnp.bfloat16)
    bfc = jnp.broadcast_to(slab_ref[R_BFC:R_BFC + 1, :], (B, V_PAD))

    # ---- prologue (off the chain): one-hot @ fused tables -> all x pre-acts ---
    src_ids = ids_ref[0:SRC_LEN * B, :]                                  # (S*B,1)
    tgt_ids = ids_ref[SRC_LEN * B:(SRC_LEN + TGT_LEN) * B, :]            # (T*B,1)
    src_oh = (src_ids == jax.lax.broadcasted_iota(
        jnp.int32, (SRC_LEN * B, SRC_V_PAD), 1)).astype(jnp.float32)
    tgt_oh = (tgt_ids == jax.lax.broadcasted_iota(
        jnp.int32, (TGT_LEN * B, V_PAD), 1)).astype(jnp.float32)
    src_xw_ref[...] = jnp.dot(
        src_oh, slab_ref[R_ENC_XTAB:R_ENC_XTAB + SRC_V_PAD, :],
        preferred_element_type=jnp.float32)                              # (S*B,4H)
    tgt_xw_ref[...] = jnp.dot(
        tgt_oh, slab_ref[R_DEC_XTAB:R_DEC_XTAB + V_PAD, :],
        preferred_element_type=jnp.float32)                              # (T*B,4H)

    h = jnp.zeros((B, HID), jnp.float32)
    c = jnp.zeros((B, HID), jnp.float32)

    # ------------------------ encoder (unrolled) -------------------------------
    for t in range(SRC_LEN):
        h, c = _lstm_cell(src_xw_ref[t * B:(t + 1) * B, :], h, c, enc_whh)

    # ------------------- decoder with teacher forcing --------------------------
    lane = jax.lax.broadcasted_iota(jnp.int32, (B, V_PAD), 1)
    valid = lane < TGT_VOCAB
    ratio = tf_ref[TGT_LEN]

    out_ref[0:B, :] = jnp.zeros((B, V_PAD), jnp.float32)   # outputs[0] stays zero
    x_next_ref[...] = tgt_xw_ref[0:B, :]                    # input 0 = target[0]

    for t in range(1, TGT_LEN):
        h, c = _lstm_cell(x_next_ref[...], h, c, dec_whh)
        logits = jnp.dot(h.astype(jnp.bfloat16), wfc,
                         preferred_element_type=jnp.float32) + bfc       # (B,V_PAD)
        out_ref[t * B:(t + 1) * B, :] = logits               # lane-dense store

        if t < TGT_LEN - 1:                                  # next input only needed before last step
            # Default: teacher forcing (pre-activation gathered in the prologue).
            x_next_ref[...] = tgt_xw_ref[t * B:(t + 1) * B, :]

            # Greedy path only runs when this step is NOT teacher forced.
            @pl.when(tf_ref[t] >= ratio)
            def _(logits=logits):
                masked = jnp.where(valid, logits, NEG_BIG)
                row_max = jnp.max(masked, axis=1, keepdims=True)
                best = jnp.min(jnp.where(masked == row_max, lane, V_PAD),
                               axis=1, keepdims=True)        # first-argmax semantics
                onehot = (lane == best).astype(jnp.float32)  # (B, V_PAD)
                x_next_ref[...] = jnp.dot(
                    onehot, slab_ref[R_DEC_XTAB:R_DEC_XTAB + V_PAD, :],
                    preferred_element_type=jnp.float32)      # row-select = emb@Wih + b


# ------------------------------ Seq2Seq forward --------------------------------
@jax.jit
def seq2seq_forward(packed, source, target, tf_draws, teacher_force_ratio=0.5):
    """source: (S,B) int32, target: (T,B) int32, tf_draws: (T,) f32 -> (T,B,V) f32."""
    S, B = source.shape
    T, _ = target.shape
    ids = jnp.concatenate(
        [source.reshape(S * B, 1), target.reshape(T * B, 1)], axis=0).astype(jnp.int32)
    tf_smem = jnp.concatenate(
        [tf_draws.astype(jnp.float32),
         jnp.reshape(jnp.asarray(teacher_force_ratio, dtype=jnp.float32), (1,))])

    out_flat = pl.pallas_call(
        seq2seq_kernel,
        out_shape=jax.ShapeDtypeStruct((T * B, V_PAD), jnp.float32),
        in_specs=[_SMEM, _VMEM, _VMEM],
        out_specs=_VMEM,
        scratch_shapes=[
            pltpu.VMEM((B, 4 * HID), jnp.float32),       # next decoder input pre-act
            pltpu.VMEM((S * B, 4 * HID), jnp.float32),   # encoder pre-acts
            pltpu.VMEM((T * B, 4 * HID), jnp.float32),   # teacher pre-acts
        ],
    )(tf_smem, ids, packed["slab"])
    return out_flat.reshape(T, B, V_PAD)[:, :, :TGT_VOCAB]  # (T, B, V)


# ---------------------------- parameter construction ---------------------------
def init_params(key):
    ks = jax.random.split(key, 12)
    k = 1.0 / jnp.sqrt(HID)

    def unif(key, shape):
        return jax.random.uniform(key, shape, jnp.float32, -k, k)

    return {
        # encoder
        "enc_emb": jax.random.normal(ks[0], (SRC_VOCAB, EMB), jnp.float32),
        "enc_wih": unif(ks[1], (EMB, 4 * HID)),
        "enc_whh": unif(ks[2], (HID, 4 * HID)),
        "enc_b":   unif(ks[3], (1, 4 * HID)) + unif(ks[4], (1, 4 * HID)),  # b_ih + b_hh
        # decoder
        "dec_emb": jax.random.normal(ks[5], (TGT_VOCAB, EMB), jnp.float32),
        "dec_wih": unif(ks[6], (EMB, 4 * HID)),
        "dec_whh": unif(ks[7], (HID, 4 * HID)),
        "dec_b":   unif(ks[8], (1, 4 * HID)) + unif(ks[9], (1, 4 * HID)),
        "dec_wfc": unif(ks[10], (HID, TGT_VOCAB)),
        "dec_bfc": unif(ks[11], (1, TGT_VOCAB)),
    }


def pack_params(p):
    """One-time packing: fuse embeddings with Wih (+ bias), pad to lane-dense
    widths, and stack every kernel constant into a single contiguous f32 slab."""
    # Fused encoder input table: emb @ Wih + b  (padded rows never selected).
    enc_xtab = jnp.zeros((SRC_V_PAD, 4 * HID), jnp.float32)
    enc_xtab = enc_xtab.at[:SRC_VOCAB].set(p["enc_emb"] @ p["enc_wih"]) + p["enc_b"]

    # Fused decoder input table over the lane-padded vocab.
    dec_emb_pad = jnp.zeros((V_PAD, EMB), jnp.float32).at[:TGT_VOCAB].set(p["dec_emb"])
    dec_xtab = dec_emb_pad @ p["dec_wih"] + p["dec_b"]

    wfc_pad = jnp.zeros((HID, V_PAD), jnp.float32).at[:, :TGT_VOCAB].set(p["dec_wfc"])
    bfc_blk = jnp.zeros((8, V_PAD), jnp.float32).at[0, :TGT_VOCAB].set(p["dec_bfc"][0])

    slab = jnp.concatenate(
        [p["enc_whh"], p["dec_whh"], wfc_pad, bfc_blk, enc_xtab, dec_xtab], axis=0)
    assert slab.shape == (SLAB_ROWS, 4 * HID)
    return {"slab": slab}


# ------------------------------------ main -------------------------------------
if __name__ == "__main__":
    root = jax.random.PRNGKey(0)
    k_par, k_src, k_tgt, k_tf = jax.random.split(root, 4)

    params = init_params(k_par)
    packed = pack_params(params)
    source = jax.random.randint(k_src, (SRC_LEN, BATCH), 0, SRC_VOCAB, jnp.int32)
    target = jax.random.randint(k_tgt, (TGT_LEN, BATCH), 0, TGT_VOCAB, jnp.int32)
    tf_draws = jax.random.uniform(k_tf, (TGT_LEN,), jnp.float32)

    outputs = seq2seq_forward(packed, source, target, tf_draws, 0.5)
    outputs = jax.block_until_ready(outputs)

    assert outputs.shape == (TGT_LEN, BATCH, TGT_VOCAB)
    assert outputs.dtype == jnp.float32
    assert bool(jnp.all(outputs[0] == 0.0))          # outputs[0] untouched, as in torch.zeros
    assert bool(jnp.all(jnp.isfinite(outputs)))
    print("KERNEL_OK")
</pallas_src>

<mosaic_0001>
module attributes {stable_mosaic.version = 11 : i64} {
  func.func @seq2seq_kernel(%arg0: memref<9xf32, #tpu.memory_space<smem>>, %arg1: memref<32x1xi32, #tpu.memory_space<vmem>>, %arg2: memref<296x128xf32, #tpu.memory_space<vmem>>, %arg3: memref<16x128xf32, #tpu.memory_space<vmem>>, %arg4: memref<2x128xf32, #tpu.memory_space<vmem>>, %arg5: memref<16x128xf32, #tpu.memory_space<vmem>>, %arg6: memref<16x128xf32, #tpu.memory_space<vmem>>) attributes {dimension_semantics = [], scalar_prefetch = 0 : i64, scratch_operands = 3 : i64, tpu.core_type = #tpu.core_type<tc>} {
    %c0 = arith.constant 0 : index
    %c0_0 = arith.constant 0 : index
    %0 = vector.load %arg2[%c0, %c0_0] : memref<296x128xf32, #tpu.memory_space<vmem>>, vector<32x128xf32>
    %1 = arith.truncf %0 : vector<32x128xf32> to vector<32x128xbf16>
    %c32 = arith.constant 32 : index
    %c0_1 = arith.constant 0 : index
    %2 = vector.load %arg2[%c32, %c0_1] : memref<296x128xf32, #tpu.memory_space<vmem>>, vector<32x128xf32>
    %3 = arith.truncf %2 : vector<32x128xf32> to vector<32x128xbf16>
    %c64 = arith.constant 64 : index
    %c0_2 = arith.constant 0 : index
    %4 = vector.load %arg2[%c64, %c0_2] : memref<296x128xf32, #tpu.memory_space<vmem>>, vector<32x128xf32>
    %5 = arith.truncf %4 : vector<32x128xf32> to vector<32x128xbf16>
    %c96 = arith.constant 96 : index
    %c0_3 = arith.constant 0 : index
    %6 = vector.load %arg2[%c96, %c0_3] : memref<296x128xf32, #tpu.memory_space<vmem>>, vector<1x128xf32>
    %7 = vector.shape_cast %6 : vector<1x128xf32> to vector<1x128xf32>
    %8 = vector.broadcast %7 : vector<1x128xf32> to vector<2x128xf32>
    %c0_4 = arith.constant 0 : index
    %c0_5 = arith.constant 0 : index
    %9 = vector.load %arg1[%c0_4, %c0_5] : memref<32x1xi32, #tpu.memory_space<vmem>>, vector<16x1xi32>
    %c16 = arith.constant 16 : index
    %c0_6 = arith.constant 0 : index
    %10 = vector.load %arg1[%c16, %c0_6] : memref<32x1xi32, #tpu.memory_space<vmem>>, vector<16x1xi32>
    %11 = tpu.iota {dimensions = array<i32: 1>} : vector<16x64xi32>
    %12 = vector.broadcast %9 : vector<16x1xi32> to vector<16x64xi32>
    %13 = arith.cmpi eq, %12, %11 : vector<16x64xi32>
    %14 = arith.extui %13 : vector<16x64xi1> to vector<16x64xi32>
    %15 = arith.sitofp %14 : vector<16x64xi32> to vector<16x64xf32>
    %16 = tpu.iota {dimensions = array<i32: 1>} : vector<16x128xi32>
    %17 = vector.broadcast %10 : vector<16x1xi32> to vector<16x128xi32>
    %18 = arith.cmpi eq, %17, %16 : vector<16x128xi32>
    %19 = arith.extui %18 : vector<16x128xi1> to vector<16x128xi32>
    %20 = arith.sitofp %19 : vector<16x128xi32> to vector<16x128xf32>
    %c104 = arith.constant 104 : index
    %c0_7 = arith.constant 0 : index
    %21 = vector.load %arg2[%c104, %c0_7] : memref<296x128xf32, #tpu.memory_space<vmem>>, vector<64x128xf32>
    %cst = arith.constant dense<0.000000e+00> : vector<16x128xf32>
    %22 = tpu.matmul %15, %21, %cst {dimension_numbers = #tpu.dot_dimension_numbers<[1], [0], [0], [1], [0, 0, 1, 1], [], []>} : vector<16x64xf32>, vector<64x128xf32>, vector<16x128xf32> -> vector<16x128xf32>
    %c0_8 = arith.constant 0 : index
    %c0_9 = arith.constant 0 : index
    %23 = vector.load %arg5[%c0_8, %c0_9] : memref<16x128xf32, #tpu.memory_space<vmem>>, vector<16x128xf32>
    tpu.vector_store %arg5[%c0_8, %c0_9], %22 {strides = array<i32>} : memref<16x128xf32, #tpu.memory_space<vmem>>, vector<16x128xf32>,
    %c168 = arith.constant 168 : index
    %c0_10 = arith.constant 0 : index
    %24 = vector.load %arg2[%c168, %c0_10] : memref<296x128xf32, #tpu.memory_space<vmem>>, vector<128x128xf32>
    %cst_11 = arith.constant dense<0.000000e+00> : vector<16x128xf32>
    %25 = tpu.matmul %20, %24, %cst_11 {dimension_numbers = #tpu.dot_dimension_numbers<[1], [0], [0], [1], [0, 0, 1, 1], [], []>} : vector<16x128xf32>, vector<128x128xf32>, vector<16x128xf32> -> vector<16x128xf32>
    %c0_12 = arith.constant 0 : index
    %c0_13 = arith.constant 0 : index
    %26 = vector.load %arg6[%c0_12, %c0_13] : memref<16x128xf32, #tpu.memory_space<vmem>>, vector<16x128xf32>
    tpu.vector_store %arg6[%c0_12, %c0_13], %25 {strides = array<i32>} : memref<16x128xf32, #tpu.memory_space<vmem>>, vector<16x128xf32>,
    %cst_14 = arith.constant 0.000000e+00 : f32
    %27 = vector.broadcast %cst_14 : f32 to vector<2x32xf32>
    %cst_15 = arith.constant 0.000000e+00 : f32
    %28 = vector.broadcast %cst_15 : f32 to vector<2x32xf32>
    %c0_16 = arith.constant 0 : index
    %c0_17 = arith.constant 0 : index
    %29 = vector.load %arg5[%c0_16, %c0_17] : memref<16x128xf32, #tpu.memory_space<vmem>>, vector<2x128xf32>
    %30 = arith.truncf %27 : vector<2x32xf32> to vector<2x32xbf16>
    %cst_18 = arith.constant dense<0.000000e+00> : vector<2x128xf32>
    %31 = tpu.matmul %30, %1, %cst_18 {dimension_numbers = #tpu.dot_dimension_numbers<[1], [0], [0], [1], [0, 0, 1, 1], [], []>} : vector<2x32xbf16>, vector<32x128xbf16>, vector<2x128xf32> -> vector<2x128xf32>
    %32 = arith.addf %29, %31 : vector<2x128xf32>
    %33 = arith.negf %32 : vector<2x128xf32>
    %34 = math.exp %33 : vector<2x128xf32>
    %cst_19 = arith.constant 1.000000e+00 : f32
    %35 = vector.broadcast %cst_19 : f32 to vector<2x128xf32>
    %36 = arith.addf %35, %34 : vector<2x128xf32>
    %37 = arith.divf %35, %36 : vector<2x128xf32>
    %38 = math.tanh %32 : vector<2x128xf32>
    %39 = vector.extract_strided_slice %37 {offsets = [0, 0], sizes = [2, 32], strides = [1, 1]} : vector<2x128xf32> to vector<2x32xf32>
    %40 = vector.extract_strided_slice %37 {offsets = [0, 32], sizes = [2, 32], strides = [1, 1]} : vector<2x128xf32> to vector<2x32xf32>
    %41 = vector.extract_strided_slice %38 {offsets = [0, 64], sizes = [2, 32], strides = [1, 1]} : vector<2x128xf32> to vector<2x32xf32>
    %42 = vector.extract_strided_slice %37 {offsets = [0, 96], sizes = [2, 32], strides = [1, 1]} : vector<2x128xf32> to vector<2x32xf32>
    %43 = arith.mulf %40, %28 : vector<2x32xf32>
    %44 = arith.mulf %39, %41 : vector<2x32xf32>
    %45 = arith.addf %43, %44 : vector<2x32xf32>
    %46 = math.tanh %45 : vector<2x32xf32>
    %47 = arith.mulf %42, %46 : vector<2x32xf32>
    %c2 = arith.constant 2 : index
    %c0_20 = arith.constant 0 : index
    %48 = vector.load %arg5[%c2, %c0_20] : memref<16x128xf32, #tpu.memory_space<vmem>>, vector<2x128xf32>
    %49 = arith.truncf %47 : vector<2x32xf32> to vector<2x32xbf16>
    %cst_21 = arith.constant dense<0.000000e+00> : vector<2x128xf32>
    %50 = tpu.matmul %49, %1, %cst_21 {dimension_numbers = #tpu.dot_dimension_numbers<[1], [0], [0], [1], [0, 0, 1, 1], [], []>} : vector<2x32xbf16>, vector<32x128xbf16>, vector<2x128xf32> -> vector<2x128xf32>
    %51 = arith.addf %48, %50 : vector<2x128xf32>
    %52 = arith.negf %51 : vector<2x128xf32>
    %53 = math.exp %52 : vector<2x128xf32>
    %cst_22 = arith.constant 1.000000e+00 : f32
    %54 = vector.broadcast %cst_22 : f32 to vector<2x128xf32>
    %55 = arith.addf %54, %53 : vector<2x128xf32>
    %56 = arith.divf %54, %55 : vector<2x128xf32>
    %57 = math.tanh %51 : vector<2x128xf32>
    %58 = vector.extract_strided_slice %56 {offsets = [0, 0], sizes = [2, 32], strides = [1, 1]} : vector<2x128xf32> to vector<2x32xf32>
    %59 = vector.extract_strided_slice %56 {offsets = [0, 32], sizes = [2, 32], strides = [1, 1]} : vector<2x128xf32> to vector<2x32xf32>
    %60 = vector.extract_strided_slice %57 {offsets = [0, 64], sizes = [2, 32], strides = [1, 1]} : vector<2x128xf32> to vector<2x32xf32>
    %61 = vector.extract_strided_slice %56 {offsets = [0, 96], sizes = [2, 32], strides = [1, 1]} : vector<2x128xf32> to vector<2x32xf32>
    %62 = arith.mulf %59, %45 : vector<2x32xf32>
    %63 = arith.mulf %58, %60 : vector<2x32xf32>
    %64 = arith.addf %62, %63 : vector<2x32xf32>
    %65 = math.tanh %64 : vector<2x32xf32>
    %66 = arith.mulf %61, %65 : vector<2x32xf32>
    %c4 = arith.constant 4 : index
    %c0_23 = arith.constant 0 : index
    %67 = vector.load %arg5[%c4, %c0_23] : memref<16x128xf32, #tpu.memory_space<vmem>>, vector<2x128xf32>
    %68 = arith.truncf %66 : vector<2x32xf32> to vector<2x32xbf16>
    %cst_24 = arith.constant dense<0.000000e+00> : vector<2x128xf32>
    %69 = tpu.matmul %68, %1, %cst_24 {dimension_numbers = #tpu.dot_dimension_numbers<[1], [0], [0], [1], [0, 0, 1, 1], [], []>} : vector<2x32xbf16>, vector<32x128xbf16>, vector<2x128xf32> -> vector<2x128xf32>
    %70 = arith.addf %67, %69 : vector<2x128xf32>
    %71 = arith.negf %70 : vector<2x128xf32>
    %72 = math.exp %71 : vector<2x128xf32>
    %cst_25 = arith.constant 1.000000e+00 : f32
    %73 = vector.broadcast %cst_25 : f32 to vector<2x128xf32>
    %74 = arith.addf %73, %72 : vector<2x128xf32>
    %75 = arith.divf %73, %74 : vector<2x128xf32>
    %76 = math.tanh %70 : vector<2x128xf32>
    %77 = vector.extract_strided_slice %75 {offsets = [0, 0], sizes = [2, 32], strides = [1, 1]} : vector<2x128xf32> to vector<2x32xf32>
    %78 = vector.extract_strided_slice %75 {offsets = [0, 32], sizes = [2, 32], strides = [1, 1]} : vector<2x128xf32> to vector<2x32xf32>
    %79 = vector.extract_strided_slice %76 {offsets = [0, 64], sizes = [2, 32], strides = [1, 1]} : vector<2x128xf32> to vector<2x32xf32>
    %80 = vector.extract_strided_slice %75 {offsets = [0, 96], sizes = [2, 32], strides = [1, 1]} : vector<2x128xf32> to vector<2x32xf32>
    %81 = arith.mulf %78, %64 : vector<2x32xf32>
    %82 = arith.mulf %77, %79 : vector<2x32xf32>
    %83 = arith.addf %81, %82 : vector<2x32xf32>
    %84 = math.tanh %83 : vector<2x32xf32>
    %85 = arith.mulf %80, %84 : vector<2x32xf32>
    %c6 = arith.constant 6 : index
    %c0_26 = arith.constant 0 : index
    %86 = vector.load %arg5[%c6, %c0_26] : memref<16x128xf32, #tpu.memory_space<vmem>>, vector<2x128xf32>
    %87 = arith.truncf %85 : vector<2x32xf32> to vector<2x32xbf16>
    %cst_27 = arith.constant dense<0.000000e+00> : vector<2x128xf32>
    %88 = tpu.matmul %87, %1, %cst_27 {dimension_numbers = #tpu.dot_dimension_numbers<[1], [0], [0], [1], [0, 0, 1, 1], [], []>} : vector<2x32xbf16>, vector<32x128xbf16>, vector<2x128xf32> -> vector<2x128xf32>
    %89 = arith.addf %86, %88 : vector<2x128xf32>
    %90 = arith.negf %89 : vector<2x128xf32>
    %91 = math.exp %90 : vector<2x128xf32>
    %cst_28 = arith.constant 1.000000e+00 : f32
    %92 = vector.broadcast %cst_28 : f32 to vector<2x128xf32>
    %93 = arith.addf %92, %91 : vector<2x128xf32>
    %94 = arith.divf %92, %93 : vector<2x128xf32>
    %95 = math.tanh %89 : vector<2x128xf32>
    %96 = vector.extract_strided_slice %94 {offsets = [0, 0], sizes = [2, 32], strides = [1, 1]} : vector<2x128xf32> to vector<2x32xf32>
    %97 = vector.extract_strided_slice %94 {offsets = [0, 32], sizes = [2, 32], strides = [1, 1]} : vector<2x128xf32> to vector<2x32xf32>
    %98 = vector.extract_strided_slice %95 {offsets = [0, 64], sizes = [2, 32], strides = [1, 1]} : vector<2x128xf32> to vector<2x32xf32>
    %99 = vector.extract_strided_slice %94 {offsets = [0, 96], sizes = [2, 32], strides = [1, 1]} : vector<2x128xf32> to vector<2x32xf32>
    %100 = arith.mulf %97, %83 : vector<2x32xf32>
    %101 = arith.mulf %96, %98 : vector<2x32xf32>
    %102 = arith.addf %100, %101 : vector<2x32xf32>
    %103 = math.tanh %102 : vector<2x32xf32>
    %104 = arith.mulf %99, %103 : vector<2x32xf32>
    %c8 = arith.constant 8 : index
    %c0_29 = arith.constant 0 : index
    %105 = vector.load %arg5[%c8, %c0_29] : memref<16x128xf32, #tpu.memory_space<vmem>>, vector<2x128xf32>
    %106 = arith.truncf %104 : vector<2x32xf32> to vector<2x32xbf16>
    %cst_30 = arith.constant dense<0.000000e+00> : vector<2x128xf32>
    %107 = tpu.matmul %106, %1, %cst_30 {dimension_numbers = #tpu.dot_dimension_numbers<[1], [0], [0], [1], [0, 0, 1, 1], [], []>} : vector<2x32xbf16>, vector<32x128xbf16>, vector<2x128xf32> -> vector<2x128xf32>
    %108 = arith.addf %105, %107 : vector<2x128xf32>
    %109 = arith.negf %108 : vector<2x128xf32>
    %110 = math.exp %109 : vector<2x128xf32>
    %cst_31 = arith.constant 1.000000e+00 : f32
    %111 = vector.broadcast %cst_31 : f32 to vector<2x128xf32>
    %112 = arith.addf %111, %110 : vector<2x128xf32>
    %113 = arith.divf %111, %112 : vector<2x128xf32>
    %114 = math.tanh %108 : vector<2x128xf32>
    %115 = vector.extract_strided_slice %113 {offsets = [0, 0], sizes = [2, 32], strides = [1, 1]} : vector<2x128xf32> to vector<2x32xf32>
    %116 = vector.extract_strided_slice %113 {offsets = [0, 32], sizes = [2, 32], strides = [1, 1]} : vector<2x128xf32> to vector<2x32xf32>
    %117 = vector.extract_strided_slice %114 {offsets = [0, 64], sizes = [2, 32], strides = [1, 1]} : vector<2x128xf32> to vector<2x32xf32>
    %118 = vector.extract_strided_slice %113 {offsets = [0, 96], sizes = [2, 32], strides = [1, 1]} : vector<2x128xf32> to vector<2x32xf32>
    %119 = arith.mulf %116, %102 : vector<2x32xf32>
    %120 = arith.mulf %115, %117 : vector<2x32xf32>
    %121 = arith.addf %119, %120 : vector<2x32xf32>
    %122 = math.tanh %121 : vector<2x32xf32>
    %123 = arith.mulf %118, %122 : vector<2x32xf32>
    %c10 = arith.constant 10 : index
    %c0_32 = arith.constant 0 : index
    %124 = vector.load %arg5[%c10, %c0_32] : memref<16x128xf32, #tpu.memory_space<vmem>>, vector<2x128xf32>
    %125 = arith.truncf %123 : vector<2x32xf32> to vector<2x32xbf16>
    %cst_33 = arith.constant dense<0.000000e+00> : vector<2x128xf32>
    %126 = tpu.matmul %125, %1, %cst_33 {dimension_numbers = #tpu.dot_dimension_numbers<[1], [0], [0], [1], [0, 0, 1, 1], [], []>} : vector<2x32xbf16>, vector<32x128xbf16>, vector<2x128xf32> -> vector<2x128xf32>
    %127 = arith.addf %124, %126 : vector<2x128xf32>
    %128 = arith.negf %127 : vector<2x128xf32>
    %129 = math.exp %128 : vector<2x128xf32>
    %cst_34 = arith.constant 1.000000e+00 : f32
    %130 = vector.broadcast %cst_34 : f32 to vector<2x128xf32>
    %131 = arith.addf %130, %129 : vector<2x128xf32>
    %132 = arith.divf %130, %131 : vector<2x128xf32>
    %133 = math.tanh %127 : vector<2x128xf32>
    %134 = vector.extract_strided_slice %132 {offsets = [0, 0], sizes = [2, 32], strides = [1, 1]} : vector<2x128xf32> to vector<2x32xf32>
    %135 = vector.extract_strided_slice %132 {offsets = [0, 32], sizes = [2, 32], strides = [1, 1]} : vector<2x128xf32> to vector<2x32xf32>
    %136 = vector.extract_strided_slice %133 {offsets = [0, 64], sizes = [2, 32], strides = [1, 1]} : vector<2x128xf32> to vector<2x32xf32>
    %137 = vector.extract_strided_slice %132 {offsets = [0, 96], sizes = [2, 32], strides = [1, 1]} : vector<2x128xf32> to vector<2x32xf32>
    %138 = arith.mulf %135, %121 : vector<2x32xf32>
    %139 = arith.mulf %134, %136 : vector<2x32xf32>
    %140 = arith.addf %138, %139 : vector<2x32xf32>
    %141 = math.tanh %140 : vector<2x32xf32>
    %142 = arith.mulf %137, %141 : vector<2x32xf32>
    %c12 = arith.constant 12 : index
    %c0_35 = arith.constant 0 : index
    %143 = vector.load %arg5[%c12, %c0_35] : memref<16x128xf32, #tpu.memory_space<vmem>>, vector<2x128xf32>
    %144 = arith.truncf %142 : vector<2x32xf32> to vector<2x32xbf16>
    %cst_36 = arith.constant dense<0.000000e+00> : vector<2x128xf32>
    %145 = tpu.matmul %144, %1, %cst_36 {dimension_numbers = #tpu.dot_dimension_numbers<[1], [0], [0], [1], [0, 0, 1, 1], [], []>} : vector<2x32xbf16>, vector<32x128xbf16>, vector<2x128xf32> -> vector<2x128xf32>
    %146 = arith.addf %143, %145 : vector<2x128xf32>
    %147 = arith.negf %146 : vector<2x128xf32>
    %148 = math.exp %147 : vector<2x128xf32>
    %cst_37 = arith.constant 1.000000e+00 : f32
    %149 = vector.broadcast %cst_37 : f32 to vector<2x128xf32>
    %150 = arith.addf %149, %148 : vector<2x128xf32>
    %151 = arith.divf %149, %150 : vector<2x128xf32>
    %152 = math.tanh %146 : vector<2x128xf32>
    %153 = vector.extract_strided_slice %151 {offsets = [0, 0], sizes = [2, 32], strides = [1, 1]} : vector<2x128xf32> to vector<2x32xf32>
    %154 = vector.extract_strided_slice %151 {offsets = [0, 32], sizes = [2, 32], strides = [1, 1]} : vector<2x128xf32> to vector<2x32xf32>
    %155 = vector.extract_strided_slice %152 {offsets = [0, 64], sizes = [2, 32], strides = [1, 1]} : vector<2x128xf32> to vector<2x32xf32>
    %156 = vector.extract_strided_slice %151 {offsets = [0, 96], sizes = [2, 32], strides = [1, 1]} : vector<2x128xf32> to vector<2x32xf32>
    %157 = arith.mulf %154, %140 : vector<2x32xf32>
    %158 = arith.mulf %153, %155 : vector<2x32xf32>
    %159 = arith.addf %157, %158 : vector<2x32xf32>
    %160 = math.tanh %159 : vector<2x32xf32>
    %161 = arith.mulf %156, %160 : vector<2x32xf32>
    %c14 = arith.constant 14 : index
    %c0_38 = arith.constant 0 : index
    %162 = vector.load %arg5[%c14, %c0_38] : memref<16x128xf32, #tpu.memory_space<vmem>>, vector<2x128xf32>
    %163 = arith.truncf %161 : vector<2x32xf32> to vector<2x32xbf16>
    %cst_39 = arith.constant dense<0.000000e+00> : vector<2x128xf32>
    %164 = tpu.matmul %163, %1, %cst_39 {dimension_numbers = #tpu.dot_dimension_numbers<[1], [0], [0], [1], [0, 0, 1, 1], [], []>} : vector<2x32xbf16>, vector<32x128xbf16>, vector<2x128xf32> -> vector<2x128xf32>
    %165 = arith.addf %162, %164 : vector<2x128xf32>
    %166 = arith.negf %165 : vector<2x128xf32>
    %167 = math.exp %166 : vector<2x128xf32>
    %cst_40 = arith.constant 1.000000e+00 : f32
    %168 = vector.broadcast %cst_40 : f32 to vector<2x128xf32>
    %169 = arith.addf %168, %167 : vector<2x128xf32>
    %170 = arith.divf %168, %169 : vector<2x128xf32>
    %171 = math.tanh %165 : vector<2x128xf32>
    %172 = vector.extract_strided_slice %170 {offsets = [0, 0], sizes = [2, 32], strides = [1, 1]} : vector<2x128xf32> to vector<2x32xf32>
    %173 = vector.extract_strided_slice %170 {offsets = [0, 32], sizes = [2, 32], strides = [1, 1]} : vector<2x128xf32> to vector<2x32xf32>
    %174 = vector.extract_strided_slice %171 {offsets = [0, 64], sizes = [2, 32], strides = [1, 1]} : vector<2x128xf32> to vector<2x32xf32>
    %175 = vector.extract_strided_slice %170 {offsets = [0, 96], sizes = [2, 32], strides = [1, 1]} : vector<2x128xf32> to vector<2x32xf32>
    %176 = arith.mulf %173, %159 : vector<2x32xf32>
    %177 = arith.mulf %172, %174 : vector<2x32xf32>
    %178 = arith.addf %176, %177 : vector<2x32xf32>
    %179 = math.tanh %178 : vector<2x32xf32>
    %180 = arith.mulf %175, %179 : vector<2x32xf32>
    %181 = tpu.iota {dimensions = array<i32: 1>} : vector<2x128xi32>
    %c64_i32 = arith.constant 64 : i32
    %182 = vector.broadcast %c64_i32 : i32 to vector<2x128xi32>
    %183 = arith.cmpi slt, %181, %182 : vector<2x128xi32>
    %c8_41 = arith.constant 8 : index
    %184 = memref.load %arg0[%c8_41] : memref<9xf32, #tpu.memory_space<smem>>
    %cst_42 = arith.constant 0.000000e+00 : f32
    %185 = vector.broadcast %cst_42 : f32 to vector<2x128xf32>
    %c0_43 = arith.constant 0 : index
    %c0_44 = arith.constant 0 : index
    %186 = vector.load %arg3[%c0_43, %c0_44] : memref<16x128xf32, #tpu.memory_space<vmem>>, vector<2x128xf32>
    tpu.vector_store %arg3[%c0_43, %c0_44], %185 {strides = array<i32>} : memref<16x128xf32, #tpu.memory_space<vmem>>, vector<2x128xf32>,
    %c0_45 = arith.constant 0 : index
    %c0_46 = arith.constant 0 : index
    %187 = vector.load %arg6[%c0_45, %c0_46] : memref<16x128xf32, #tpu.memory_space<vmem>>, vector<2x128xf32>
    %c0_47 = arith.constant 0 : index
    %c0_48 = arith.constant 0 : index
    %188 = vector.load %arg4[%c0_47, %c0_48] : memref<2x128xf32, #tpu.memory_space<vmem>>, vector<2x128xf32>
    tpu.vector_store %arg4[%c0_47, %c0_48], %187 {strides = array<i32>} : memref<2x128xf32, #tpu.memory_space<vmem>>, vector<2x128xf32>,
    %c0_49 = arith.constant 0 : index
    %c0_50 = arith.constant 0 : index
    %189 = vector.load %arg4[%c0_49, %c0_50] : memref<2x128xf32, #tpu.memory_space<vmem>>, vector<2x128xf32>
    %190 = arith.truncf %180 : vector<2x32xf32> to vector<2x32xbf16>
    %cst_51 = arith.constant dense<0.000000e+00> : vector<2x128xf32>
    %191 = tpu.matmul %190, %3, %cst_51 {dimension_numbers = #tpu.dot_dimension_numbers<[1], [0], [0], [1], [0, 0, 1, 1], [], []>} : vector<2x32xbf16>, vector<32x128xbf16>, vector<2x128xf32> -> vector<2x128xf32>
    %192 = arith.addf %189, %191 : vector<2x128xf32>
    %193 = arith.negf %192 : vector<2x128xf32>
    %194 = math.exp %193 : vector<2x128xf32>
    %cst_52 = arith.constant 1.000000e+00 : f32
    %195 = vector.broadcast %cst_52 : f32 to vector<2x128xf32>
    %196 = arith.addf %195, %194 : vector<2x128xf32>
    %197 = arith.divf %195, %196 : vector<2x128xf32>
    %198 = math.tanh %192 : vector<2x128xf32>
    %199 = vector.extract_strided_slice %197 {offsets = [0, 0], sizes = [2, 32], strides = [1, 1]} : vector<2x128xf32> to vector<2x32xf32>
    %200 = vector.extract_strided_slice %197 {offsets = [0, 32], sizes = [2, 32], strides = [1, 1]} : vector<2x128xf32> to vector<2x32xf32>
    %201 = vector.extract_strided_slice %198 {offsets = [0, 64], sizes = [2, 32], strides = [1, 1]} : vector<2x128xf32> to vector<2x32xf32>
    %202 = vector.extract_strided_slice %197 {offsets = [0, 96], sizes = [2, 32], strides = [1, 1]} : vector<2x128xf32> to vector<2x32xf32>
    %203 = arith.mulf %200, %178 : vector<2x32xf32>
    %204 = arith.mulf %199, %201 : vector<2x32xf32>
    %205 = arith.addf %203, %204 : vector<2x32xf32>
    %206 = math.tanh %205 : vector<2x32xf32>
    %207 = arith.mulf %202, %206 : vector<2x32xf32>
    %208 = arith.truncf %207 : vector<2x32xf32> to vector<2x32xbf16>
    %cst_53 = arith.constant dense<0.000000e+00> : vector<2x128xf32>
    %209 = tpu.matmul %208, %5, %cst_53 {dimension_numbers = #tpu.dot_dimension_numbers<[1], [0], [0], [1], [0, 0, 1, 1], [], []>} : vector<2x32xbf16>, vector<32x128xbf16>, vector<2x128xf32> -> vector<2x128xf32>
    %210 = arith.addf %209, %8 : vector<2x128xf32>
    %c2_54 = arith.constant 2 : index
    %c0_55 = arith.constant 0 : index
    %211 = vector.load %arg3[%c2_54, %c0_55] : memref<16x128xf32, #tpu.memory_space<vmem>>, vector<2x128xf32>
    tpu.vector_store %arg3[%c2_54, %c0_55], %210 {strides = array<i32>} : memref<16x128xf32, #tpu.memory_space<vmem>>, vector<2x128xf32>,
    %c2_56 = arith.constant 2 : index
    %c0_57 = arith.constant 0 : index
    %212 = vector.load %arg6[%c2_56, %c0_57] : memref<16x128xf32, #tpu.memory_space<vmem>>, vector<2x128xf32>
    %c0_58 = arith.constant 0 : index
    %c0_59 = arith.constant 0 : index
    %213 = vector.load %arg4[%c0_58, %c0_59] : memref<2x128xf32, #tpu.memory_space<vmem>>, vector<2x128xf32>
    tpu.vector_store %arg4[%c0_58, %c0_59], %212 {strides = array<i32>} : memref<2x128xf32, #tpu.memory_space<vmem>>, vector<2x128xf32>,
    %c1 = arith.constant 1 : index
    %214 = memref.load %arg0[%c1] : memref<9xf32, #tpu.memory_space<smem>>
    %215 = arith.cmpf oge, %214, %184 : f32
    %216 = arith.extui %215 : i1 to i32
    %c0_i32 = arith.constant 0 : i32
    %217 = arith.cmpi ne, %216, %c0_i32 : i32
    scf.if %217 {
      %cst_130 = arith.constant -1.000000e+30 : f32
      %386 = vector.broadcast %cst_130 : f32 to vector<2x128xf32>
      %387 = arith.select %183, %210, %386 : vector<2x128xi1>, vector<2x128xf32>
      %cst_131 = arith.constant dense<0xFF800000> : vector<2xf32>
      %388 = vector.multi_reduction <maximumf>, %387, %cst_131 [1] : vector<2x128xf32> to vector<2xf32>
      %389 = vector.shape_cast %388 : vector<2xf32> to vector<2x1xf32>
      %390 = vector.broadcast %389 : vector<2x1xf32> to vector<2x128xf32>
      %391 = arith.cmpf oeq, %387, %390 : vector<2x128xf32>
      %c128_i32 = arith.constant 128 : i32
      %392 = vector.broadcast %c128_i32 : i32 to vector<2x128xi32>
      %393 = arith.select %391, %181, %392 : vector<2x128xi1>, vector<2x128xi32>
      %cst_132 = arith.constant dense<2147483647> : vector<2xi32>
      %394 = vector.multi_reduction <minsi>, %393, %cst_132 [1] : vector<2x128xi32> to vector<2xi32>
      %395 = vector.shape_cast %394 : vector<2xi32> to vector<2x1xi32>
      %396 = vector.broadcast %395 : vector<2x1xi32> to vector<2x128xi32>
      %397 = arith.cmpi eq, %181, %396 : vector<2x128xi32>
      %398 = arith.extui %397 : vector<2x128xi1> to vector<2x128xi32>
      %399 = arith.sitofp %398 : vector<2x128xi32> to vector<2x128xf32>
      %c168_133 = arith.constant 168 : index
      %c0_134 = arith.constant 0 : index
      %400 = vector.load %arg2[%c168_133, %c0_134] : memref<296x128xf32, #tpu.memory_space<vmem>>, vector<128x128xf32>
      %cst_135 = arith.constant dense<0.000000e+00> : vector<2x128xf32>
      %401 = tpu.matmul %399, %400, %cst_135 {dimension_numbers = #tpu.dot_dimension_numbers<[1], [0], [0], [1], [0, 0, 1, 1], [], []>} : vector<2x128xf32>, vector<128x128xf32>, vector<2x128xf32> -> vector<2x128xf32>
      %c0_136 = arith.constant 0 : index
      %c0_137 = arith.constant 0 : index
      %402 = vector.load %arg4[%c0_136, %c0_137] : memref<2x128xf32, #tpu.memory_space<vmem>>, vector<2x128xf32>
      tpu.vector_store %arg4[%c0_136, %c0_137], %401 {strides = array<i32>} : memref<2x128xf32, #tpu.memory_space<vmem>>, vector<2x128xf32>,
    } else {
    }
    %c0_60 = arith.constant 0 : index
    %c0_61 = arith.constant 0 : index
    %218 = vector.load %arg4[%c0_60, %c0_61] : memref<2x128xf32, #tpu.memory_space<vmem>>, vector<2x128xf32>
    %219 = arith.truncf %207 : vector<2x32xf32> to vector<2x32xbf16>
    %cst_62 = arith.constant dense<0.000000e+00> : vector<2x128xf32>
    %220 = tpu.matmul %219, %3, %cst_62 {dimension_numbers = #tpu.dot_dimension_numbers<[1], [0], [0], [1], [0, 0, 1, 1], [], []>} : vector<2x32xbf16>, vector<32x128xbf16>, vector<2x128xf32> -> vector<2x128xf32>
    %221 = arith.addf %218, %220 : vector<2x128xf32>
    %222 = arith.negf %221 : vector<2x128xf32>
    %223 = math.exp %222 : vector<2x128xf32>
    %cst_63 = arith.constant 1.000000e+00 : f32
    %224 = vector.broadcast %cst_63 : f32 to vector<2x128xf32>
    %225 = arith.addf %224, %223 : vector<2x128xf32>
    %226 = arith.divf %224, %225 : vector<2x128xf32>
    %227 = math.tanh %221 : vector<2x128xf32>
    %228 = vector.extract_strided_slice %226 {offsets = [0, 0], sizes = [2, 32], strides = [1, 1]} : vector<2x128xf32> to vector<2x32xf32>
    %229 = vector.extract_strided_slice %226 {offsets = [0, 32], sizes = [2, 32], strides = [1, 1]} : vector<2x128xf32> to vector<2x32xf32>
    %230 = vector.extract_strided_slice %227 {offsets = [0, 64], sizes = [2, 32], strides = [1, 1]} : vector<2x128xf32> to vector<2x32xf32>
    %231 = vector.extract_strided_slice %226 {offsets = [0, 96], sizes = [2, 32], strides = [1, 1]} : vector<2x128xf32> to vector<2x32xf32>
    %232 = arith.mulf %229, %205 : vector<2x32xf32>
    %233 = arith.mulf %228, %230 : vector<2x32xf32>
    %234 = arith.addf %232, %233 : vector<2x32xf32>
    %235 = math.tanh %234 : vector<2x32xf32>
    %236 = arith.mulf %231, %235 : vector<2x32xf32>
    %237 = arith.truncf %236 : vector<2x32xf32> to vector<2x32xbf16>
    %cst_64 = arith.constant dense<0.000000e+00> : vector<2x128xf32>
    %238 = tpu.matmul %237, %5, %cst_64 {dimension_numbers = #tpu.dot_dimension_numbers<[1], [0], [0], [1], [0, 0, 1, 1], [], []>} : vector<2x32xbf16>, vector<32x128xbf16>, vector<2x128xf32> -> vector<2x128xf32>
    %239 = arith.addf %238, %8 : vector<2x128xf32>
    %c4_65 = arith.constant 4 : index
    %c0_66 = arith.constant 0 : index
    %240 = vector.load %arg3[%c4_65, %c0_66] : memref<16x128xf32, #tpu.memory_space<vmem>>, vector<2x128xf32>
    tpu.vector_store %arg3[%c4_65, %c0_66], %239 {strides = array<i32>} : memref<16x128xf32, #tpu.memory_space<vmem>>, vector<2x128xf32>,
    %c4_67 = arith.constant 4 : index
    %c0_68 = arith.constant 0 : index
    %241 = vector.load %arg6[%c4_67, %c0_68] : memref<16x128xf32, #tpu.memory_space<vmem>>, vector<2x128xf32>
    %c0_69 = arith.constant 0 : index
    %c0_70 = arith.constant 0 : index
    %242 = vector.load %arg4[%c0_69, %c0_70] : memref<2x128xf32, #tpu.memory_space<vmem>>, vector<2x128xf32>
    tpu.vector_store %arg4[%c0_69, %c0_70], %241 {strides = array<i32>} : memref<2x128xf32, #tpu.memory_space<vmem>>, vector<2x128xf32>,
    %c2_71 = arith.constant 2 : index
    %243 = memref.load %arg0[%c2_71] : memref<9xf32, #tpu.memory_space<smem>>
    %244 = arith.cmpf oge, %243, %184 : f32
    %245 = arith.extui %244 : i1 to i32
    %c0_i32_72 = arith.constant 0 : i32
    %246 = arith.cmpi ne, %245, %c0_i32_72 : i32
    scf.if %246 {
      %cst_130 = arith.constant -1.000000e+30 : f32
      %386 = vector.broadcast %cst_130 : f32 to vector<2x128xf32>
      %387 = arith.select %183, %239, %386 : vector<2x128xi1>, vector<2x128xf32>
      %cst_131 = arith.constant dense<0xFF800000> : vector<2xf32>
      %388 = vector.multi_reduction <maximumf>, %387, %cst_131 [1] : vector<2x128xf32> to vector<2xf32>
      %389 = vector.shape_cast %388 : vector<2xf32> to vector<2x1xf32>
      %390 = vector.broadcast %389 : vector<2x1xf32> to vector<2x128xf32>
      %391 = arith.cmpf oeq, %387, %390 : vector<2x128xf32>
      %c128_i32 = arith.constant 128 : i32
      %392 = vector.broadcast %c128_i32 : i32 to vector<2x128xi32>
      %393 = arith.select %391, %181, %392 : vector<2x128xi1>, vector<2x128xi32>
      %cst_132 = arith.constant dense<2147483647> : vector<2xi32>
      %394 = vector.multi_reduction <minsi>, %393, %cst_132 [1] : vector<2x128xi32> to vector<2xi32>
      %395 = vector.shape_cast %394 : vector<2xi32> to vector<2x1xi32>
      %396 = vector.broadcast %395 : vector<2x1xi32> to vector<2x128xi32>
      %397 = arith.cmpi eq, %181, %396 : vector<2x128xi32>
      %398 = arith.extui %397 : vector<2x128xi1> to vector<2x128xi32>
      %399 = arith.sitofp %398 : vector<2x128xi32> to vector<2x128xf32>
      %c168_133 = arith.constant 168 : index
      %c0_134 = arith.constant 0 : index
      %400 = vector.load %arg2[%c168_133, %c0_134] : memref<296x128xf32, #tpu.memory_space<vmem>>, vector<128x128xf32>
      %cst_135 = arith.constant dense<0.000000e+00> : vector<2x128xf32>
      %401 = tpu.matmul %399, %400, %cst_135 {dimension_numbers = #tpu.dot_dimension_numbers<[1], [0], [0], [1], [0, 0, 1, 1], [], []>} : vector<2x128xf32>, vector<128x128xf32>, vector<2x128xf32> -> vector<2x128xf32>
      %c0_136 = arith.constant 0 : index
      %c0_137 = arith.constant 0 : index
      %402 = vector.load %arg4[%c0_136, %c0_137] : memref<2x128xf32, #tpu.memory_space<vmem>>, vector<2x128xf32>
      tpu.vector_store %arg4[%c0_136, %c0_137], %401 {strides = array<i32>} : memref<2x128xf32, #tpu.memory_space<vmem>>, vector<2x128xf32>,
    } else {
    }
    %c0_73 = arith.constant 0 : index
    %c0_74 = arith.constant 0 : index
    %247 = vector.load %arg4[%c0_73, %c0_74] : memref<2x128xf32, #tpu.memory_space<vmem>>, vector<2x128xf32>
    %248 = arith.truncf %236 : vector<2x32xf32> to vector<2x32xbf16>
    %cst_75 = arith.constant dense<0.000000e+00> : vector<2x128xf32>
    %249 = tpu.matmul %248, %3, %cst_75 {dimension_numbers = #tpu.dot_dimension_numbers<[1], [0], [0], [1], [0, 0, 1, 1], [], []>} : vector<2x32xbf16>, vector<32x128xbf16>, vector<2x128xf32> -> vector<2x128xf32>
    %250 = arith.addf %247, %249 : vector<2x128xf32>
    %251 = arith.negf %250 : vector<2x128xf32>
    %252 = math.exp %251 : vector<2x128xf32>
    %cst_76 = arith.constant 1.000000e+00 : f32
    %253 = vector.broadcast %cst_76 : f32 to vector<2x128xf32>
    %254 = arith.addf %253, %252 : vector<2x128xf32>
    %255 = arith.divf %253, %254 : vector<2x128xf32>
    %256 = math.tanh %250 : vector<2x128xf32>
    %257 = vector.extract_strided_slice %255 {offsets = [0, 0], sizes = [2, 32], strides = [1, 1]} : vector<2x128xf32> to vector<2x32xf32>
    %258 = vector.extract_strided_slice %255 {offsets = [0, 32], sizes = [2, 32], strides = [1, 1]} : vector<2x128xf32> to vector<2x32xf32>
    %259 = vector.extract_strided_slice %256 {offsets = [0, 64], sizes = [2, 32], strides = [1, 1]} : vector<2x128xf32> to vector<2x32xf32>
    %260 = vector.extract_strided_slice %255 {offsets = [0, 96], sizes = [2, 32], strides = [1, 1]} : vector<2x128xf32> to vector<2x32xf32>
    %261 = arith.mulf %258, %234 : vector<2x32xf32>
    %262 = arith.mulf %257, %259 : vector<2x32xf32>
    %263 = arith.addf %261, %262 : vector<2x32xf32>
    %264 = math.tanh %263 : vector<2x32xf32>
    %265 = arith.mulf %260, %264 : vector<2x32xf32>
    %266 = arith.truncf %265 : vector<2x32xf32> to vector<2x32xbf16>
    %cst_77 = arith.constant dense<0.000000e+00> : vector<2x128xf32>
    %267 = tpu.matmul %266, %5, %cst_77 {dimension_numbers = #tpu.dot_dimension_numbers<[1], [0], [0], [1], [0, 0, 1, 1], [], []>} : vector<2x32xbf16>, vector<32x128xbf16>, vector<2x128xf32> -> vector<2x128xf32>
    %268 = arith.addf %267, %8 : vector<2x128xf32>
    %c6_78 = arith.constant 6 : index
    %c0_79 = arith.constant 0 : index
    %269 = vector.load %arg3[%c6_78, %c0_79] : memref<16x128xf32, #tpu.memory_space<vmem>>, vector<2x128xf32>
    tpu.vector_store %arg3[%c6_78, %c0_79], %268 {strides = array<i32>} : memref<16x128xf32, #tpu.memory_space<vmem>>, vector<2x128xf32>,
    %c6_80 = arith.constant 6 : index
    %c0_81 = arith.constant 0 : index
    %270 = vector.load %arg6[%c6_80, %c0_81] : memref<16x128xf32, #tpu.memory_space<vmem>>, vector<2x128xf32>
    %c0_82 = arith.constant 0 : index
    %c0_83 = arith.constant 0 : index
    %271 = vector.load %arg4[%c0_82, %c0_83] : memref<2x128xf32, #tpu.memory_space<vmem>>, vector<2x128xf32>
    tpu.vector_store %arg4[%c0_82, %c0_83], %270 {strides = array<i32>} : memref<2x128xf32, #tpu.memory_space<vmem>>, vector<2x128xf32>,
    %c3 = arith.constant 3 : index
    %272 = memref.load %arg0[%c3] : memref<9xf32, #tpu.memory_space<smem>>
    %273 = arith.cmpf oge, %272, %184 : f32
    %274 = arith.extui %273 : i1 to i32
    %c0_i32_84 = arith.constant 0 : i32
    %275 = arith.cmpi ne, %274, %c0_i32_84 : i32
    scf.if %275 {
      %cst_130 = arith.constant -1.000000e+30 : f32
      %386 = vector.broadcast %cst_130 : f32 to vector<2x128xf32>
      %387 = arith.select %183, %268, %386 : vector<2x128xi1>, vector<2x128xf32>
      %cst_131 = arith.constant dense<0xFF800000> : vector<2xf32>
      %388 = vector.multi_reduction <maximumf>, %387, %cst_131 [1] : vector<2x128xf32> to vector<2xf32>
      %389 = vector.shape_cast %388 : vector<2xf32> to vector<2x1xf32>
      %390 = vector.broadcast %389 : vector<2x1xf32> to vector<2x128xf32>
      %391 = arith.cmpf oeq, %387, %390 : vector<2x128xf32>
      %c128_i32 = arith.constant 128 : i32
      %392 = vector.broadcast %c128_i32 : i32 to vector<2x128xi32>
      %393 = arith.select %391, %181, %392 : vector<2x128xi1>, vector<2x128xi32>
      %cst_132 = arith.constant dense<2147483647> : vector<2xi32>
      %394 = vector.multi_reduction <minsi>, %393, %cst_132 [1] : vector<2x128xi32> to vector<2xi32>
      %395 = vector.shape_cast %394 : vector<2xi32> to vector<2x1xi32>
      %396 = vector.broadcast %395 : vector<2x1xi32> to vector<2x128xi32>
      %397 = arith.cmpi eq, %181, %396 : vector<2x128xi32>
      %398 = arith.extui %397 : vector<2x128xi1> to vector<2x128xi32>
      %399 = arith.sitofp %398 : vector<2x128xi32> to vector<2x128xf32>
      %c168_133 = arith.constant 168 : index
      %c0_134 = arith.constant 0 : index
      %400 = vector.load %arg2[%c168_133, %c0_134] : memref<296x128xf32, #tpu.memory_space<vmem>>, vector<128x128xf32>
      %cst_135 = arith.constant dense<0.000000e+00> : vector<2x128xf32>
      %401 = tpu.matmul %399, %400, %cst_135 {dimension_numbers = #tpu.dot_dimension_numbers<[1], [0], [0], [1], [0, 0, 1, 1], [], []>} : vector<2x128xf32>, vector<128x128xf32>, vector<2x128xf32> -> vector<2x128xf32>
      %c0_136 = arith.constant 0 : index
      %c0_137 = arith.constant 0 : index
      %402 = vector.load %arg4[%c0_136, %c0_137] : memref<2x128xf32, #tpu.memory_space<vmem>>, vector<2x128xf32>
      tpu.vector_store %arg4[%c0_136, %c0_137], %401 {strides = array<i32>} : memref<2x128xf32, #tpu.memory_space<vmem>>, vector<2x128xf32>,
    } else {
    }
    %c0_85 = arith.constant 0 : index
    %c0_86 = arith.constant 0 : index
    %276 = vector.load %arg4[%c0_85, %c0_86] : memref<2x128xf32, #tpu.memory_space<vmem>>, vector<2x128xf32>
    %277 = arith.truncf %265 : vector<2x32xf32> to vector<2x32xbf16>
    %cst_87 = arith.constant dense<0.000000e+00> : vector<2x128xf32>
    %278 = tpu.matmul %277, %3, %cst_87 {dimension_numbers = #tpu.dot_dimension_numbers<[1], [0], [0], [1], [0, 0, 1, 1], [], []>} : vector<2x32xbf16>, vector<32x128xbf16>, vector<2x128xf32> -> vector<2x128xf32>
    %279 = arith.addf %276, %278 : vector<2x128xf32>
    %280 = arith.negf %279 : vector<2x128xf32>
    %281 = math.exp %280 : vector<2x128xf32>
    %cst_88 = arith.constant 1.000000e+00 : f32
    %282 = vector.broadcast %cst_88 : f32 to vector<2x128xf32>
    %283 = arith.addf %282, %281 : vector<2x128xf32>
    %284 = arith.divf %282, %283 : vector<2x128xf32>
    %285 = math.tanh %279 : vector<2x128xf32>
    %286 = vector.extract_strided_slice %284 {offsets = [0, 0], sizes = [2, 32], strides = [1, 1]} : vector<2x128xf32> to vector<2x32xf32>
    %287 = vector.extract_strided_slice %284 {offsets = [0, 32], sizes = [2, 32], strides = [1, 1]} : vector<2x128xf32> to vector<2x32xf32>
    %288 = vector.extract_strided_slice %285 {offsets = [0, 64], sizes = [2, 32], strides = [1, 1]} : vector<2x128xf32> to vector<2x32xf32>
    %289 = vector.extract_strided_slice %284 {offsets = [0, 96], sizes = [2, 32], strides = [1, 1]} : vector<2x128xf32> to vector<2x32xf32>
    %290 = arith.mulf %287, %263 : vector<2x32xf32>
    %291 = arith.mulf %286, %288 : vector<2x32xf32>
    %292 = arith.addf %290, %291 : vector<2x32xf32>
    %293 = math.tanh %292 : vector<2x32xf32>
    %294 = arith.mulf %289, %293 : vector<2x32xf32>
    %295 = arith.truncf %294 : vector<2x32xf32> to vector<2x32xbf16>
    %cst_89 = arith.constant dense<0.000000e+00> : vector<2x128xf32>
    %296 = tpu.matmul %295, %5, %cst_89 {dimension_numbers = #tpu.dot_dimension_numbers<[1], [0], [0], [1], [0, 0, 1, 1], [], []>} : vector<2x32xbf16>, vector<32x128xbf16>, vector<2x128xf32> -> vector<2x128xf32>
    %297 = arith.addf %296, %8 : vector<2x128xf32>
    %c8_90 = arith.constant 8 : index
    %c0_91 = arith.constant 0 : index
    %298 = vector.load %arg3[%c8_90, %c0_91] : memref<16x128xf32, #tpu.memory_space<vmem>>, vector<2x128xf32>
    tpu.vector_store %arg3[%c8_90, %c0_91], %297 {strides = array<i32>} : memref<16x128xf32, #tpu.memory_space<vmem>>, vector<2x128xf32>,
    %c8_92 = arith.constant 8 : index
    %c0_93 = arith.constant 0 : index
    %299 = vector.load %arg6[%c8_92, %c0_93] : memref<16x128xf32, #tpu.memory_space<vmem>>, vector<2x128xf32>
    %c0_94 = arith.constant 0 : index
    %c0_95 = arith.constant 0 : index
    %300 = vector.load %arg4[%c0_94, %c0_95] : memref<2x128xf32, #tpu.memory_space<vmem>>, vector<2x128xf32>
    tpu.vector_store %arg4[%c0_94, %c0_95], %299 {strides = array<i32>} : memref<2x128xf32, #tpu.memory_space<vmem>>, vector<2x128xf32>,
    %c4_96 = arith.constant 4 : index
    %301 = memref.load %arg0[%c4_96] : memref<9xf32, #tpu.memory_space<smem>>
    %302 = arith.cmpf oge, %301, %184 : f32
    %303 = arith.extui %302 : i1 to i32
    %c0_i32_97 = arith.constant 0 : i32
    %304 = arith.cmpi ne, %303, %c0_i32_97 : i32
    scf.if %304 {
      %cst_130 = arith.constant -1.000000e+30 : f32
      %386 = vector.broadcast %cst_130 : f32 to vector<2x128xf32>
      %387 = arith.select %183, %297, %386 : vector<2x128xi1>, vector<2x128xf32>
      %cst_131 = arith.constant dense<0xFF800000> : vector<2xf32>
      %388 = vector.multi_reduction <maximumf>, %387, %cst_131 [1] : vector<2x128xf32> to vector<2xf32>
      %389 = vector.shape_cast %388 : vector<2xf32> to vector<2x1xf32>
      %390 = vector.broadcast %389 : vector<2x1xf32> to vector<2x128xf32>
      %391 = arith.cmpf oeq, %387, %390 : vector<2x128xf32>
      %c128_i32 = arith.constant 128 : i32
      %392 = vector.broadcast %c128_i32 : i32 to vector<2x128xi32>
      %393 = arith.select %391, %181, %392 : vector<2x128xi1>, vector<2x128xi32>
      %cst_132 = arith.constant dense<2147483647> : vector<2xi32>
      %394 = vector.multi_reduction <minsi>, %393, %cst_132 [1] : vector<2x128xi32> to vector<2xi32>
      %395 = vector.shape_cast %394 : vector<2xi32> to vector<2x1xi32>
      %396 = vector.broadcast %395 : vector<2x1xi32> to vector<2x128xi32>
      %397 = arith.cmpi eq, %181, %396 : vector<2x128xi32>
      %398 = arith.extui %397 : vector<2x128xi1> to vector<2x128xi32>
      %399 = arith.sitofp %398 : vector<2x128xi32> to vector<2x128xf32>
      %c168_133 = arith.constant 168 : index
      %c0_134 = arith.constant 0 : index
      %400 = vector.load %arg2[%c168_133, %c0_134] : memref<296x128xf32, #tpu.memory_space<vmem>>, vector<128x128xf32>
      %cst_135 = arith.constant dense<0.000000e+00> : vector<2x128xf32>
      %401 = tpu.matmul %399, %400, %cst_135 {dimension_numbers = #tpu.dot_dimension_numbers<[1], [0], [0], [1], [0, 0, 1, 1], [], []>} : vector<2x128xf32>, vector<128x128xf32>, vector<2x128xf32> -> vector<2x128xf32>
      %c0_136 = arith.constant 0 : index
      %c0_137 = arith.constant 0 : index
      %402 = vector.load %arg4[%c0_136, %c0_137] : memref<2x128xf32, #tpu.memory_space<vmem>>, vector<2x128xf32>
      tpu.vector_store %arg4[%c0_136, %c0_137], %401 {strides = array<i32>} : memref<2x128xf32, #tpu.memory_space<vmem>>, vector<2x128xf32>,
    } else {
    }
    %c0_98 = arith.constant 0 : index
    %c0_99 = arith.constant 0 : index
    %305 = vector.load %arg4[%c0_98, %c0_99] : memref<2x128xf32, #tpu.memory_space<vmem>>, vector<2x128xf32>
    %306 = arith.truncf %294 : vector<2x32xf32> to vector<2x32xbf16>
    %cst_100 = arith.constant dense<0.000000e+00> : vector<2x128xf32>
    %307 = tpu.matmul %306, %3, %cst_100 {dimension_numbers = #tpu.dot_dimension_numbers<[1], [0], [0], [1], [0, 0, 1, 1], [], []>} : vector<2x32xbf16>, vector<32x128xbf16>, vector<2x128xf32> -> vector<2x128xf32>
    %308 = arith.addf %305, %307 : vector<2x128xf32>
    %309 = arith.negf %308 : vector<2x128xf32>
    %310 = math.exp %309 : vector<2x128xf32>
    %cst_101 = arith.constant 1.000000e+00 : f32
    %311 = vector.broadcast %cst_101 : f32 to vector<2x128xf32>
    %312 = arith.addf %311, %310 : vector<2x128xf32>
    %313 = arith.divf %311, %312 : vector<2x128xf32>
    %314 = math.tanh %308 : vector<2x128xf32>
    %315 = vector.extract_strided_slice %313 {offsets = [0, 0], sizes = [2, 32], strides = [1, 1]} : vector<2x128xf32> to vector<2x32xf32>
    %316 = vector.extract_strided_slice %313 {offsets = [0, 32], sizes = [2, 32], strides = [1, 1]} : vector<2x128xf32> to vector<2x32xf32>
    %317 = vector.extract_strided_slice %314 {offsets = [0, 64], sizes = [2, 32], strides = [1, 1]} : vector<2x128xf32> to vector<2x32xf32>
    %318 = vector.extract_strided_slice %313 {offsets = [0, 96], sizes = [2, 32], strides = [1, 1]} : vector<2x128xf32> to vector<2x32xf32>
    %319 = arith.mulf %316, %292 : vector<2x32xf32>
    %320 = arith.mulf %315, %317 : vector<2x32xf32>
    %321 = arith.addf %319, %320 : vector<2x32xf32>
    %322 = math.tanh %321 : vector<2x32xf32>
    %323 = arith.mulf %318, %322 : vector<2x32xf32>
    %324 = arith.truncf %323 : vector<2x32xf32> to vector<2x32xbf16>
    %cst_102 = arith.constant dense<0.000000e+00> : vector<2x128xf32>
    %325 = tpu.matmul %324, %5, %cst_102 {dimension_numbers = #tpu.dot_dimension_numbers<[1], [0], [0], [1], [0, 0, 1, 1], [], []>} : vector<2x32xbf16>, vector<32x128xbf16>, vector<2x128xf32> -> vector<2x128xf32>
    %326 = arith.addf %325, %8 : vector<2x128xf32>
    %c10_103 = arith.constant 10 : index
    %c0_104 = arith.constant 0 : index
    %327 = vector.load %arg3[%c10_103, %c0_104] : memref<16x128xf32, #tpu.memory_space<vmem>>, vector<2x128xf32>
    tpu.vector_store %arg3[%c10_103, %c0_104], %326 {strides = array<i32>} : memref<16x128xf32, #tpu.memory_space<vmem>>, vector<2x128xf32>,
    %c10_105 = arith.constant 10 : index
    %c0_106 = arith.constant 0 : index
    %328 = vector.load %arg6[%c10_105, %c0_106] : memref<16x128xf32, #tpu.memory_space<vmem>>, vector<2x128xf32>
    %c0_107 = arith.constant 0 : index
    %c0_108 = arith.constant 0 : index
    %329 = vector.load %arg4[%c0_107, %c0_108] : memref<2x128xf32, #tpu.memory_space<vmem>>, vector<2x128xf32>
    tpu.vector_store %arg4[%c0_107, %c0_108], %328 {strides = array<i32>} : memref<2x128xf32, #tpu.memory_space<vmem>>, vector<2x128xf32>,
    %c5 = arith.constant 5 : index
    %330 = memref.load %arg0[%c5] : memref<9xf32, #tpu.memory_space<smem>>
    %331 = arith.cmpf oge, %330, %184 : f32
    %332 = arith.extui %331 : i1 to i32
    %c0_i32_109 = arith.constant 0 : i32
    %333 = arith.cmpi ne, %332, %c0_i32_109 : i32
    scf.if %333 {
      %cst_130 = arith.constant -1.000000e+30 : f32
      %386 = vector.broadcast %cst_130 : f32 to vector<2x128xf32>
      %387 = arith.select %183, %326, %386 : vector<2x128xi1>, vector<2x128xf32>
      %cst_131 = arith.constant dense<0xFF800000> : vector<2xf32>
      %388 = vector.multi_reduction <maximumf>, %387, %cst_131 [1] : vector<2x128xf32> to vector<2xf32>
      %389 = vector.shape_cast %388 : vector<2xf32> to vector<2x1xf32>
      %390 = vector.broadcast %389 : vector<2x1xf32> to vector<2x128xf32>
      %391 = arith.cmpf oeq, %387, %390 : vector<2x128xf32>
      %c128_i32 = arith.constant 128 : i32
      %392 = vector.broadcast %c128_i32 : i32 to vector<2x128xi32>
      %393 = arith.select %391, %181, %392 : vector<2x128xi1>, vector<2x128xi32>
      %cst_132 = arith.constant dense<2147483647> : vector<2xi32>
      %394 = vector.multi_reduction <minsi>, %393, %cst_132 [1] : vector<2x128xi32> to vector<2xi32>
      %395 = vector.shape_cast %394 : vector<2xi32> to vector<2x1xi32>
      %396 = vector.broadcast %395 : vector<2x1xi32> to vector<2x128xi32>
      %397 = arith.cmpi eq, %181, %396 : vector<2x128xi32>
      %398 = arith.extui %397 : vector<2x128xi1> to vector<2x128xi32>
      %399 = arith.sitofp %398 : vector<2x128xi32> to vector<2x128xf32>
      %c168_133 = arith.constant 168 : index
      %c0_134 = arith.constant 0 : index
      %400 = vector.load %arg2[%c168_133, %c0_134] : memref<296x128xf32, #tpu.memory_space<vmem>>, vector<128x128xf32>
      %cst_135 = arith.constant dense<0.000000e+00> : vector<2x128xf32>
      %401 = tpu.matmul %399, %400, %cst_135 {dimension_numbers = #tpu.dot_dimension_numbers<[1], [0], [0], [1], [0, 0, 1, 1], [], []>} : vector<2x128xf32>, vector<128x128xf32>, vector<2x128xf32> -> vector<2x128xf32>
      %c0_136 = arith.constant 0 : index
      %c0_137 = arith.constant 0 : index
      %402 = vector.load %arg4[%c0_136, %c0_137] : memref<2x128xf32, #tpu.memory_space<vmem>>, vector<2x128xf32>
      tpu.vector_store %arg4[%c0_136, %c0_137], %401 {strides = array<i32>} : memref<2x128xf32, #tpu.memory_space<vmem>>, vector<2x128xf32>,
    } else {
    }
    %c0_110 = arith.constant 0 : index
    %c0_111 = arith.constant 0 : index
    %334 = vector.load %arg4[%c0_110, %c0_111] : memref<2x128xf32, #tpu.memory_space<vmem>>, vector<2x128xf32>
    %335 = arith.truncf %323 : vector<2x32xf32> to vector<2x32xbf16>
    %cst_112 = arith.constant dense<0.000000e+00> : vector<2x128xf32>
    %336 = tpu.matmul %335, %3, %cst_112 {dimension_numbers = #tpu.dot_dimension_numbers<[1], [0], [0], [1], [0, 0, 1, 1], [], []>} : vector<2x32xbf16>, vector<32x128xbf16>, vector<2x128xf32> -> vector<2x128xf32>
    %337 = arith.addf %334, %336 : vector<2x128xf32>
    %338 = arith.negf %337 : vector<2x128xf32>
    %339 = math.exp %338 : vector<2x128xf32>
    %cst_113 = arith.constant 1.000000e+00 : f32
    %340 = vector.broadcast %cst_113 : f32 to vector<2x128xf32>
    %341 = arith.addf %340, %339 : vector<2x128xf32>
    %342 = arith.divf %340, %341 : vector<2x128xf32>
    %343 = math.tanh %337 : vector<2x128xf32>
    %344 = vector.extract_strided_slice %342 {offsets = [0, 0], sizes = [2, 32], strides = [1, 1]} : vector<2x128xf32> to vector<2x32xf32>
    %345 = vector.extract_strided_slice %342 {offsets = [0, 32], sizes = [2, 32], strides = [1, 1]} : vector<2x128xf32> to vector<2x32xf32>
    %346 = vector.extract_strided_slice %343 {offsets = [0, 64], sizes = [2, 32], strides = [1, 1]} : vector<2x128xf32> to vector<2x32xf32>
    %347 = vector.extract_strided_slice %342 {offsets = [0, 96], sizes = [2, 32], strides = [1, 1]} : vector<2x128xf32> to vector<2x32xf32>
    %348 = arith.mulf %345, %321 : vector<2x32xf32>
    %349 = arith.mulf %344, %346 : vector<2x32xf32>
    %350 = arith.addf %348, %349 : vector<2x32xf32>
    %351 = math.tanh %350 : vector<2x32xf32>
    %352 = arith.mulf %347, %351 : vector<2x32xf32>
    %353 = arith.truncf %352 : vector<2x32xf32> to vector<2x32xbf16>
    %cst_114 = arith.constant dense<0.000000e+00> : vector<2x128xf32>
    %354 = tpu.matmul %353, %5, %cst_114 {dimension_numbers = #tpu.dot_dimension_numbers<[1], [0], [0], [1], [0, 0, 1, 1], [], []>} : vector<2x32xbf16>, vector<32x128xbf16>, vector<2x128xf32> -> vector<2x128xf32>
    %355 = arith.addf %354, %8 : vector<2x128xf32>
    %c12_115 = arith.constant 12 : index
    %c0_116 = arith.constant 0 : index
    %356 = vector.load %arg3[%c12_115, %c0_116] : memref<16x128xf32, #tpu.memory_space<vmem>>, vector<2x128xf32>
    tpu.vector_store %arg3[%c12_115, %c0_116], %355 {strides = array<i32>} : memref<16x128xf32, #tpu.memory_space<vmem>>, vector<2x128xf32>,
    %c12_117 = arith.constant 12 : index
    %c0_118 = arith.constant 0 : index
    %357 = vector.load %arg6[%c12_117, %c0_118] : memref<16x128xf32, #tpu.memory_space<vmem>>, vector<2x128xf32>
    %c0_119 = arith.constant 0 : index
    %c0_120 = arith.constant 0 : index
    %358 = vector.load %arg4[%c0_119, %c0_120] : memref<2x128xf32, #tpu.memory_space<vmem>>, vector<2x128xf32>
    tpu.vector_store %arg4[%c0_119, %c0_120], %357 {strides = array<i32>} : memref<2x128xf32, #tpu.memory_space<vmem>>, vector<2x128xf32>,
    %c6_121 = arith.constant 6 : index
    %359 = memref.load %arg0[%c6_121] : memref<9xf32, #tpu.memory_space<smem>>
    %360 = arith.cmpf oge, %359, %184 : f32
    %361 = arith.extui %360 : i1 to i32
    %c0_i32_122 = arith.constant 0 : i32
    %362 = arith.cmpi ne, %361, %c0_i32_122 : i32
    scf.if %362 {
      %cst_130 = arith.constant -1.000000e+30 : f32
      %386 = vector.broadcast %cst_130 : f32 to vector<2x128xf32>
      %387 = arith.select %183, %355, %386 : vector<2x128xi1>, vector<2x128xf32>
      %cst_131 = arith.constant dense<0xFF800000> : vector<2xf32>
      %388 = vector.multi_reduction <maximumf>, %387, %cst_131 [1] : vector<2x128xf32> to vector<2xf32>
      %389 = vector.shape_cast %388 : vector<2xf32> to vector<2x1xf32>
      %390 = vector.broadcast %389 : vector<2x1xf32> to vector<2x128xf32>
      %391 = arith.cmpf oeq, %387, %390 : vector<2x128xf32>
      %c128_i32 = arith.constant 128 : i32
      %392 = vector.broadcast %c128_i32 : i32 to vector<2x128xi32>
      %393 = arith.select %391, %181, %392 : vector<2x128xi1>, vector<2x128xi32>
      %cst_132 = arith.constant dense<2147483647> : vector<2xi32>
      %394 = vector.multi_reduction <minsi>, %393, %cst_132 [1] : vector<2x128xi32> to vector<2xi32>
      %395 = vector.shape_cast %394 : vector<2xi32> to vector<2x1xi32>
      %396 = vector.broadcast %395 : vector<2x1xi32> to vector<2x128xi32>
      %397 = arith.cmpi eq, %181, %396 : vector<2x128xi32>
      %398 = arith.extui %397 : vector<2x128xi1> to vector<2x128xi32>
      %399 = arith.sitofp %398 : vector<2x128xi32> to vector<2x128xf32>
      %c168_133 = arith.constant 168 : index
      %c0_134 = arith.constant 0 : index
      %400 = vector.load %arg2[%c168_133, %c0_134] : memref<296x128xf32, #tpu.memory_space<vmem>>, vector<128x128xf32>
      %cst_135 = arith.constant dense<0.000000e+00> : vector<2x128xf32>
      %401 = tpu.matmul %399, %400, %cst_135 {dimension_numbers = #tpu.dot_dimension_numbers<[1], [0], [0], [1], [0, 0, 1, 1], [], []>} : vector<2x128xf32>, vector<128x128xf32>, vector<2x128xf32> -> vector<2x128xf32>
      %c0_136 = arith.constant 0 : index
      %c0_137 = arith.constant 0 : index
      %402 = vector.load %arg4[%c0_136, %c0_137] : memref<2x128xf32, #tpu.memory_space<vmem>>, vector<2x128xf32>
      tpu.vector_store %arg4[%c0_136, %c0_137], %401 {strides = array<i32>} : memref<2x128xf32, #tpu.memory_space<vmem>>, vector<2x128xf32>,
    } else {
    }
    %c0_123 = arith.constant 0 : index
    %c0_124 = arith.constant 0 : index
    %363 = vector.load %arg4[%c0_123, %c0_124] : memref<2x128xf32, #tpu.memory_space<vmem>>, vector<2x128xf32>
    %364 = arith.truncf %352 : vector<2x32xf32> to vector<2x32xbf16>
    %cst_125 = arith.constant dense<0.000000e+00> : vector<2x128xf32>
    %365 = tpu.matmul %364, %3, %cst_125 {dimension_numbers = #tpu.dot_dimension_numbers<[1], [0], [0], [1], [0, 0, 1, 1], [], []>} : vector<2x32xbf16>, vector<32x128xbf16>, vector<2x128xf32> -> vector<2x128xf32>
    %366 = arith.addf %363, %365 : vector<2x128xf32>
    %367 = arith.negf %366 : vector<2x128xf32>
    %368 = math.exp %367 : vector<2x128xf32>
    %cst_126 = arith.constant 1.000000e+00 : f32
    %369 = vector.broadcast %cst_126 : f32 to vector<2x128xf32>
    %370 = arith.addf %369, %368 : vector<2x128xf32>
    %371 = arith.divf %369, %370 : vector<2x128xf32>
    %372 = math.tanh %366 : vector<2x128xf32>
    %373 = vector.extract_strided_slice %371 {offsets = [0, 0], sizes = [2, 32], strides = [1, 1]} : vector<2x128xf32> to vector<2x32xf32>
    %374 = vector.extract_strided_slice %371 {offsets = [0, 32], sizes = [2, 32], strides = [1, 1]} : vector<2x128xf32> to vector<2x32xf32>
    %375 = vector.extract_strided_slice %372 {offsets = [0, 64], sizes = [2, 32], strides = [1, 1]} : vector<2x128xf32> to vector<2x32xf32>
    %376 = vector.extract_strided_slice %371 {offsets = [0, 96], sizes = [2, 32], strides = [1, 1]} : vector<2x128xf32> to vector<2x32xf32>
    %377 = arith.mulf %374, %350 : vector<2x32xf32>
    %378 = arith.mulf %373, %375 : vector<2x32xf32>
    %379 = arith.addf %377, %378 : vector<2x32xf32>
    %380 = math.tanh %379 : vector<2x32xf32>
    %381 = arith.mulf %376, %380 : vector<2x32xf32>
    %382 = arith.truncf %381 : vector<2x32xf32> to vector<2x32xbf16>
    %cst_127 = arith.constant dense<0.000000e+00> : vector<2x128xf32>
    %383 = tpu.matmul %382, %5, %cst_127 {dimension_numbers = #tpu.dot_dimension_numbers<[1], [0], [0], [1], [0, 0, 1, 1], [], []>} : vector<2x32xbf16>, vector<32x128xbf16>, vector<2x128xf32> -> vector<2x128xf32>
    %384 = arith.addf %383, %8 : vector<2x128xf32>
    %c14_128 = arith.constant 14 : index
    %c0_129 = arith.constant 0 : index
    %385 = vector.load %arg3[%c14_128, %c0_129] : memref<16x128xf32, #tpu.memory_space<vmem>>, vector<2x128xf32>
    tpu.vector_store %arg3[%c14_128, %c0_129], %384 {strides = array<i32>} : memref<16x128xf32, #tpu.memory_space<vmem>>, vector<2x128xf32>,
    return
  }
}

</mosaic_0001>

<bundles_post_ra>
// kernel: seq2seq_forward.1
= control target key start
LH: loop header
LB: loop body
LE: loop exit
PB: predicated region body
PF: predicated region fallthrough
CT: control target
= control target key end

     0   :  { %8 = vsyncpa [#allocation8], 0  ;;  %s3946_s0 = inlined_call_operand.vmem [shape: f32[9], index: 0, kind: input, shape index: {}]   ;;  %s3947_s1 = inlined_call_operand.vmem [shape: s32[32,1], index: 1, kind: input, shape index: {}]   ;;  %s3948_s2 = inlined_call_operand.hbm [shape: f32[296,128], index: 2, kind: input, shape index: {}]   ;;  %s3949_s3 = inlined_call_operand.hbm [shape: f32[16,128], index: 3, kind: output, shape index: {}]  }
   0x1   :  { %9 = vsyncpa [#allocation6], 0 }
   0x2   :  { %10 = vsyncpa [#allocation7], 0  ;;  %s17_s14 = sshll.u32 %s3946_s0, 4  ;;  %s18_s14 = int_to_ptr.vmem [resolvable:$true] %s17_s14 }
   0x3   :  { %s3453_s15 = scalar_lea.vmem %s18_s14, 16  ;;  %p3458_p1 = scmp.lt.s32.totalorder %s18_s14, %s18_s14 }
   0x4   :  { %p3454_p0 = scmp.ne.s32.totalorder %s18_s14, %s3453_s15  ;;  %p3459_p2 = scmp.lt.s32.totalorder %s3453_s15, %s3453_s15 }
   0x6   :  { %p3460_p3 = por %p3459_p2, %p3458_p1 }
   0x8   :  { %p3461_p4 = pnand %p3460_p3, %p3454_p0 }
   0xa   :  { %3464 = shalt.err (!%p3461_p4)
}
   0xb   :  { %s3515_s16 = smov [#allocation5]   ;;  %s3516_s17 = smov [#allocation9]  }
   0xc   :  { %20 = dma.vmem_to_smem %s18_s14, 16, %s3515_s16, [#allocation8]  }
   0xd   :  { %s28_s18 = sshll.u32 %s3516_s17, 4  ;;  %s3465_s21 = scalar_lea.hbm %s3948_s2, 4736  ;;  %s29_s18 = int_to_ptr.vmem [resolvable:$true] %s28_s18 }
   0xe   :  { %p3466_p5 = scmp.ne.s32.totalorder %s3948_s2, %s3465_s21  ;;  %p3469_p6 = scmp.lt.u32.totalorder %s3465_s21, %s3948_s2 }
  0x10   :  { %p3471_p7 = pnand %p3469_p6, %p3466_p5 }
  0x12   :  { %3474 = shalt.err (!%p3471_p7)
}
  0x13   :  { %s3475_s25 = scalar_lea.vmem %s29_s18, 4736  ;;  %p3480_p9 = scmp.lt.s32.totalorder %s29_s18, %s29_s18 }
  0x14   :  { %p3476_p8 = scmp.ne.s32.totalorder %s29_s18, %s3475_s25  ;;  %p3481_p10 = scmp.lt.s32.totalorder %s3475_s25, %s3475_s25 }
  0x16   :  { %p3482_p11 = por %p3481_p10, %p3480_p9 }
  0x18   :  { %p3483_p12 = pnand %p3482_p11, %p3476_p8 }
  0x1a   :  { %3486 = shalt.err (!%p3483_p12)
}
  0x1b   :  { %s3517_s26 = smov 128   ;;  %s3518_s27 = smov 8  }
  0x1c   :  { %34 = dma.hbm_to_vmem [thread:$0]  %s3948_s2, 4736, %s29_s18, [#allocation6], %s3517_s26, %s3517_s26, %s3518_s27  }
  0x1d   :  { %3509 = dma.done.wait [#allocation8], 16  }
  0x1e   :  { %3510 = vsyncadd [#allocation8], 4294967280 }
  0x1f   :  { %3511 = dma.done.wait [#allocation6], 4736  }
  0x20   :  { %3512 = vsyncadd [#allocation6], 4294962560 }
  0x21   :  { %41 = sfence }
  0x22   :  { %v66_v0 = vld [vmem:[%s3947_s1] sm:$0xff]  ;;  %v96_v1 = vld [vmem:[#allocation9 + $0x68] sm:$0xff]  ;;  %v70_v2 = vlaneseq  ;;  %v3519_v3 = vmov 0   ;;  %v97_v4 = vld [vmem:[#allocation9 + $0x70] sm:$0xff]  ;;  %v3520_v13 = vmov 0.0   ;;  %vm104_vm1 = vcmask 523264  }
  0x23   :  { %3331 = vset.pattern.permute.xlu0 %v3519_v3  ;;  %v98_v5 = vld [vmem:[#allocation9 + $0x78] sm:$0xff]  ;;  %v99_v6 = vld [vmem:[#allocation9 + $0x80] sm:$0xff]  ;;  %3332 = vset.pattern.permute.xlu1 %v3519_v3  ;;  %v3104_v7 = vpack.c.bf16 %v97_v4, %v96_v1  ;;  %v100_v11 = vld [vmem:[#allocation9 + $0x88] sm:$0xff]  ;;  %864 = vst [vmem:[#allocation10] sm:$0x3] %v3520_v13  ;;  %vm3521_vm4 = vmmov 0  }
  0x24   :  { %73 = vperm.xlu0 %3331, %v66_v0   ;;  %v3108_v8 = vpack.c.bf16 %v99_v6, %v98_v5  ;;  %v3591_v9 = vand.u32 127, %v70_v2  ;;  %v67_v10 = vld [vmem:[%s3947_s1 + $0x8] sm:$0xff]  ;;  %v101_v12 = vld [vmem:[#allocation9 + $0x90] sm:$0xff]  ;;  %v102_v15 = vld [vmem:[#allocation9 + $0x98] sm:$0xff]  ;;  %s3522_s6 = smov 64   ;;  %s3523_s7 = smov 32  }
  0x25   :  { %3105 = vmatprep.subr.bf16.mxu0 %v3104_v7  ;;  %v3112_v14 = vpack.c.bf16 %v101_v12, %v100_v11  ;;  %v103_v16 = vld [vmem:[#allocation9 + $0xa0] sm:$0xff]  ;;  %v44_v20 = vld [vmem:[#allocation9 + $0x8] sm:$0xff]  ;;  %v45_v24 = vld [vmem:[#allocation9 + $0x10] sm:$0xff]  ;;  %vm282_vm5 = vcmask 261120   ;;  %s2432_s12 = sld [smem:[#allocation5 + $0x1]] }
  0x26   :  { %vm862_vm0 = vcmp.lt.s32.totalorder %v3591_v9, 64  ;;  %3107 = vmatpush3.bf16.msra.mxu0 %v3104_v7  ;;  %v3116_v17 = vpack.c.bf16 %v103_v16, %v102_v15  ;;  %v43_v19 = vld [vmem:[#allocation9] sm:$0xff]  ;;  %v46_v25 = vld [vmem:[#allocation9 + $0x18] sm:$0xff] }
  0x27   :  { %3109 = vmatprep.subr.bf16.mxu0 %v3108_v8  ;;  %v3601_v23 = vpack.c.bf16 %v44_v20, %v43_v19  ;;  %v3606_v27 = vpack.c.bf16 %v46_v25, %v45_v24  ;;  %v68_v24 = vld [vmem:[%s3947_s1 + $0x10] sm:$0xff] }
  0x28   :  { %76 = vperm.xlu0 %3331, %v67_v10   ;;  %v188_v25 = vld [vmem:[#allocation9 + $0xa8] sm:$0xff] }
  0x2a   :  { %3111 = vmatpush3.bf16.msra.mxu0 %v3108_v8 }
  0x2b   :  { %3113 = vmatprep.subr.bf16.mxu0 %v3112_v14 }
  0x2e   :  { %3115 = vmatpush3.bf16.msra.mxu0 %v3112_v14 }
  0x2f   :  { %3117 = vmatprep.subr.bf16.mxu0 %v3116_v17 }
  0x32   :  { %3119 = vmatpush3.bf16.msra.mxu0 %v3116_v17 }
  0x33   :  { %2718 = vmatprep.subr.bf16.mxu0 %v3520_v13 }
  0xa3   :  { %v74_v18 = vpop.permute.xlu0 %73 }
  0xa4   :  { %vm78_vm2 = vcmp.eq.s32.totalorder %v74_v18, %v3591_v9 }
  0xa5   :  { %v2405_v21 = vsel %vm78_vm2, 1.0, %v3520_v13 }
  0xa6   :  { %2680 = vmatprep.mubr.msk.f32.mxu0 %vm104_vm1, %v2405_v21 }
  0xa7   :  { %v77_v22 = vpop.permute.xlu0 %76 }
  0xa8   :  { %vm79_vm3 = vcmp.eq.s32.totalorder %v77_v22, %v3591_v9 }
  0xa9   :  { %v2406_v26 = vsel %vm79_vm3, 1.0, %v3520_v13 }
  0xaa   :  { %2681 = vmatmul.mubr.msk.f32.vlgmr.msra.gmra.mrb[0].mxu0 %vm104_vm1, %v2406_v26  ;;  %v189_v26 = vld [vmem:[#allocation9 + $0xb0] sm:$0xff] }
  0xab   :  { %2719 = vmatpush3.bf16.msra.mxu0 %v3601_v23  ;;  %2722 = vmatprep.mubr.msk.bf16.mxu0 %vm3521_vm4, %v3520_v13 }
  0xac   :  { %2720 = vmatprep.subr.bf16.mxu0 %v3520_v13 }
  0xaf   :  { %2721 = vmatpush3.bf16.msra.mxu0 %v3606_v27 }
  0xb0   :  { %2726 = vmatprep.subr.bf16.mxu0 %v3520_v13 }
  0xb2   :  { %2723 = vmatmul.mubr.bf16.vlgmr.msra.gmra.mrb[4].mxu0 %v3519_v3 }
  0xb3   :  { %2727 = vmatpush3.bf16.msra.mxu0 %v3601_v23  ;;  %2730 = vmatprep.mubr.msk.bf16.mxu0 %vm3521_vm4, %v3520_v13 }
  0xb4   :  { %2728 = vmatprep.subr.bf16.mxu0 %v3520_v13 }
  0xb7   :  { %2729 = vmatpush3.bf16.msra.mxu0 %v3606_v27 }
  0xb8   :  { %2734 = vmatprep.subr.bf16.mxu0 %v3520_v13 }
 0x17d   :  { %v2682_v28 = vpop.f32.mrb[0].mxu0 }
 0x17e   :  { %187 = vst [vmem:[#allocation3 + $0x8] sm:$0xff] %v2682_v28  ;;  %v177_v29 = vpop.f32.mrb[1].mxu0  ;;  %v190_v28 = vld [vmem:[#allocation9 + $0xb8] sm:$0xff] }
 0x17f   :  { %186 = vst [vmem:[#allocation3] sm:$0xff] %v177_v29  ;;  %v3120_v29 = vpack.c.bf16 %v189_v26, %v188_v25 }
 0x181   :  { %3121 = vmatprep.subr.bf16.mxu1 %v3120_v29 }
 0x182   :  { %3123 = vmatpush3.bf16.msra.mxu1 %v3120_v29 }
 0x185   :  { %v320_v30 = vpop.f32.mrb[4].mxu0 }
 0x186   :  { %v281_v31 = vld [vmem:[#allocation3] sm:$0x3]  ;;  %v2724_v32 = vpop.f32.mrb[5].mxu0  ;;  %v351_v51 = vld [vmem:[#allocation3 + $0x2] sm:$0x3] }
 0x187   :  { %v326_v33 = vadd.f32 %v320_v30, %v281_v31  ;;  %v323_v34 = vpop.f32.mrb[6].mxu0  ;;  %v424_v8 = vld [vmem:[#allocation3 + $0x4] sm:$0x3]  ;;  %v192_v32 = vld [vmem:[#allocation9 + $0xc8] sm:$0xff] }
 0x188   :  { %v2725_v35 = vpop.f32.mrb[7].mxu0  ;;  %v191_v30 = vld [vmem:[#allocation9 + $0xc0] sm:$0xff] }
 0x189   :  { %3333 = vtanh.f32 %v326_v33  ;;  %v2413_v37 = vmul.f32 -1.442695, %v326_v33  ;;  %v3124_v31 = vpack.c.bf16 %v191_v30, %v190_v28  ;;  %v193_v33 = vld [vmem:[#allocation9 + $0xd0] sm:$0xff]  ;;  %v194_v35 = vld [vmem:[#allocation9 + $0xd8] sm:$0xff]  ;;  %v570_v28 = vld [vmem:[#allocation3 + $0x8] sm:$0x3] }
 0x18a   :  { %v3128_v34 = vpack.c.bf16 %v193_v33, %v192_v32 }
 0x18b   :  { %3335 = vpow2.f32 %v2413_v37  ;;  %3125 = vmatprep.subr.bf16.mxu1 %v3124_v31 }
 0x18c   :  { %3127 = vmatpush3.bf16.msra.mxu1 %v3124_v31 }
 0x18d   :  { %3129 = vmatprep.subr.bf16.mxu1 %v3128_v34 }
 0x190   :  { %3131 = vmatpush3.bf16.msra.mxu1 %v3128_v34 }
 0x193   :  { %v3334_v36 = vpop.eup %3333 }
 0x194   :  { %336 = vrot.lane.b32.xlu1 %v3334_v36, %s3522_s6  ;;  %v195_v36 = vld [vmem:[#allocation9 + $0xe0] sm:$0xff] }
 0x195   :  { %v3336_v38 = vpop.eup %3335  ;;  %v3132_v37 = vpack.c.bf16 %v195_v36, %v194_v35 }
 0x196   :  { %v330_v39 = vadd.f32 1.0, %v3336_v38 }
 0x197   :  { %3133 = vmatprep.subr.bf16.mxu1 %v3132_v37 }
 0x198   :  { %3337 = vrcp.f32 %v330_v39  ;;  %3135 = vmatpush3.bf16.msra.mxu1 %v3132_v37 }
 0x1a2   :  { %v3338_v40 = vpop.eup %3337 }
 0x1a3   :  { %v334_v43 = vmul.f32 0.0, %v3338_v40 }
 0x206   :  { %v337_v41 = vpop.permute.xlu1 %336 }
 0x207   :  { %v339_v42 = vmul.f32 %v3338_v40, %v337_v41  ;;  %v196_v41 = vld [vmem:[#allocation9 + $0xe8] sm:$0xff] }
 0x209   :  { %341 = vrot.lane.b32.xlu1 %v339_v42, %s3523_s7  ;;  %v197_v42 = vld [vmem:[#allocation9 + $0xf0] sm:$0xff] }
 0x27b   :  { %v342_v44 = vpop.permute.xlu1 %341 }
 0x27c   :  { %v344_v45 = vadd.f32 %v342_v44, %v334_v43  ;;  %v3136_v43 = vpack.c.bf16 %v197_v42, %v196_v41  ;;  %v198_v44 = vld [vmem:[#allocation9 + $0xf8] sm:$0xff] }
 0x27e   :  { %3339 = vtanh.f32 %v344_v45  ;;  %3137 = vmatprep.subr.bf16.mxu1 %v3136_v43 }
 0x27f   :  { %3139 = vmatpush3.bf16.msra.mxu1 %v3136_v43 }
 0x288   :  { %v3340_v46 = vpop.eup %3339 }
 0x289   :  { %347 = vrot.lane.b32.xlu0 %v3340_v46, %s3522_s6  ;;  %v200_v46 = vld [vmem:[#allocation9 + $0x108] sm:$0xff] }
 0x2fb   :  { %v348_v47 = vpop.permute.xlu0 %347 }
 0x2fc   :  { %v350_v48 = vmul.f32 %v3338_v40, %v348_v47 }
 0x2fe   :  { %v352_v49 = vpack.c.bf16 %v350_v48, %v350_v48  ;;  %v201_v48 = vld [vmem:[#allocation9 + $0x110] sm:$0xff] }
 0x300   :  { %354 = vrot.lane.b32.xlu1 %v352_v49, %s3523_s7  ;;  %v3144_v49 = vpack.c.bf16 %v201_v48, %v200_v46 }
 0x372   :  { %v355_v50 = vpop.permute.xlu1 %354 }
 0x373   :  { %2731 = vmatmul.mubr.msk.bf16.vlgmr.msra.gmra.mrb[8].mxu0 %vm282_vm5, %v355_v50  ;;  %v202_v50 = vld [vmem:[#allocation9 + $0x118] sm:$0xff] }
 0x374   :  { %2735 = vmatpush3.bf16.msra.mxu0 %v3601_v23  ;;  %2738 = vmatprep.mubr.msk.bf16.mxu0 %vm3521_vm4, %v3520_v13 }
 0x375   :  { %2736 = vmatprep.subr.bf16.mxu0 %v3520_v13 }
 0x378   :  { %2737 = vmatpush3.bf16.msra.mxu0 %v3606_v27 }
 0x379   :  { %2750 = vmatprep.subr.bf16.mxu0 %v3520_v13 }
 0x446   :  { %v393_v52 = vpop.f32.mrb[8].mxu0 }
 0x447   :  { %v399_v53 = vadd.f32 %v393_v52, %v351_v51  ;;  %v2732_v54 = vpop.f32.mrb[9].mxu0  ;;  %v203_v51 = vld [vmem:[#allocation9 + $0x120] sm:$0xff] }
 0x448   :  { %v396_v55 = vpop.f32.mrb[10].mxu0  ;;  %v3148_v52 = vpack.c.bf16 %v203_v51, %v202_v50  ;;  %v69_v54 = vld [vmem:[%s3947_s1 + $0x18] sm:$0xff]  ;;  %s3740_s1 = sld [smem:[#allocation5 + $0x8]] }
 0x449   :  { %3341 = vtanh.f32 %v399_v53  ;;  %v2733_v56 = vpop.f32.mrb[11].mxu0  ;;  %v2415_v58 = vmul.f32 -1.442695, %v399_v53 }
 0x44a   :  { %v3524_v56 = vmov 1.0  }
 0x44b   :  { %3343 = vpow2.f32 %v2415_v58 }
 0x44e   :  { %p991_p13 = scmp.ge.f32.partialorder %s2432_s12, %s3740_s1 }
 0x44f   :  { %vm996_vm8 = vcmask (%p991_p13), 1041408   ;;  %vm3526_vm11 = vmmov (%p991_p13), 0  }
 0x453   :  { %v3342_v57 = vpop.eup %3341 }
 0x454   :  { %409 = vrot.lane.b32.xlu0 %v3342_v57, %s3522_s6 }
 0x455   :  { %v3344_v59 = vpop.eup %3343 }
 0x456   :  { %v403_v60 = vadd.f32 1.0, %v3344_v59 }
 0x458   :  { %3345 = vrcp.f32 %v403_v60 }
 0x462   :  { %v3346_v61 = vpop.eup %3345 }
 0x463   :  { %v407_v0 = vmul.f32 %v3346_v61, %v344_v45  ;;  %v199_v45 = vld [vmem:[#allocation9 + $0x100] sm:$0xff] }
 0x464   :  { %v3140_v47 = vpack.c.bf16 %v199_v45, %v198_v44 }
 0x466   :  { %3141 = vmatprep.subr.bf16.mxu1 %v3140_v47 }
 0x467   :  { %3143 = vmatpush3.bf16.msra.mxu1 %v3140_v47 }
 0x468   :  { %3145 = vmatprep.subr.bf16.mxu1 %v3144_v49 }
 0x46b   :  { %3147 = vmatpush3.bf16.msra.mxu1 %v3144_v49  ;;  %v643_v49 = vld [vmem:[#allocation3 + $0xa] sm:$0x3] }
 0x46c   :  { %3149 = vmatprep.subr.bf16.mxu1 %v3148_v52 }
 0x46f   :  { %3151 = vmatpush3.bf16.msra.mxu1 %v3148_v52 }
 0x470   :  { %2742 = vmatprep.subr.bf16.mxu1 %v3520_v13 }
 0x4c6   :  { %v410_v62 = vpop.permute.xlu0 %409 }
 0x4c7   :  { %v412_v63 = vmul.f32 %v3346_v61, %v410_v62 }
 0x4c9   :  { %414 = vrot.lane.b32.xlu1 %v412_v63, %s3523_s7 }
 0x53b   :  { %v415_v1 = vpop.permute.xlu1 %414 }
 0x53c   :  { %v417_v2 = vadd.f32 %v415_v1, %v407_v0 }
 0x53e   :  { %3347 = vtanh.f32 %v417_v2 }
 0x548   :  { %v3348_v3 = vpop.eup %3347 }
 0x549   :  { %420 = vrot.lane.b32.xlu0 %v3348_v3, %s3522_s6  ;;  %v497_v3 = vld [vmem:[#allocation3 + $0x6] sm:$0x3] }
 0x5bb   :  { %v421_v4 = vpop.permute.xlu0 %420 }
 0x5bc   :  { %v423_v5 = vmul.f32 %v3346_v61, %v421_v4 }
 0x5be   :  { %v425_v6 = vpack.c.bf16 %v423_v5, %v423_v5 }
 0x5c0   :  { %427 = vrot.lane.b32.xlu1 %v425_v6, %s3523_s7 }
 0x632   :  { %v428_v7 = vpop.permute.xlu1 %427 }
 0x633   :  { %2739 = vmatmul.mubr.msk.bf16.vlgmr.msra.gmra.mrb[12].mxu0 %vm282_vm5, %v428_v7 }
 0x634   :  { %2751 = vmatpush3.bf16.msra.mxu0 %v3601_v23  ;;  %2754 = vmatprep.mubr.msk.bf16.mxu0 %vm3521_vm4, %v3520_v13 }
 0x635   :  { %2752 = vmatprep.subr.bf16.mxu0 %v3520_v13 }
 0x638   :  { %2753 = vmatpush3.bf16.msra.mxu0 %v3606_v27 }
 0x639   :  { %2766 = vmatprep.subr.bf16.mxu0 %v3520_v13 }
 0x706   :  { %v466_v10 = vpop.f32.mrb[12].mxu0 }
 0x707   :  { %v472_v11 = vadd.f32 %v466_v10, %v424_v8  ;;  %v2740_v12 = vpop.f32.mrb[13].mxu0 }
 0x708   :  { %v469_v14 = vpop.f32.mrb[14].mxu0 }
 0x709   :  { %3349 = vtanh.f32 %v472_v11  ;;  %v2741_v15 = vpop.f32.mrb[15].mxu0  ;;  %v2417_v17 = vmul.f32 -1.442695, %v472_v11 }
 0x70b   :  { %3351 = vpow2.f32 %v2417_v17 }
 0x713   :  { %v3350_v16 = vpop.eup %3349 }
 0x714   :  { %482 = vrot.lane.b32.xlu0 %v3350_v16, %s3522_s6 }
 0x715   :  { %v3352_v18 = vpop.eup %3351 }
 0x716   :  { %v476_v19 = vadd.f32 1.0, %v3352_v18 }
 0x718   :  { %3353 = vrcp.f32 %v476_v19 }
 0x722   :  { %v3354_v20 = vpop.eup %3353 }
 0x723   :  { %v480_v38 = vmul.f32 %v3354_v20, %v417_v2 }
 0x786   :  { %v483_v21 = vpop.permute.xlu0 %482 }
 0x787   :  { %v485_v22 = vmul.f32 %v3354_v20, %v483_v21 }
 0x789   :  { %487 = vrot.lane.b32.xlu1 %v485_v22, %s3523_s7 }
 0x78d   :  { %85 = vperm.xlu1 %3332, %v68_v24  }
 0x7fb   :  { %v488_v39 = vpop.permute.xlu1 %487 }
 0x7fc   :  { %v3646_v40 = vadd.f32 %v488_v39, %v480_v38 }
 0x7fe   :  { %3355 = vtanh.f32 %v3646_v40 }
 0x808   :  { %v3356_v53 = vpop.eup %3355 }
 0x809   :  { %493 = vrot.lane.b32.xlu0 %v3356_v53, %s3522_s6 }
 0x80c   :  { %v86_v55 = vpop.permute.xlu1 %85 }
 0x80d   :  { %88 = vperm.xlu0 %3331, %v69_v54   ;;  %vm90_vm6 = vcmp.eq.s32.totalorder %v86_v55, %v3591_v9 }
 0x80e   :  { %2715 = vmatprep.mubr.msk.f32.mxu1 %vm90_vm6, %v3524_v56 }
 0x87b   :  { %v494_v57 = vpop.permute.xlu0 %493 }
 0x87c   :  { %v496_v58 = vmul.f32 %v3354_v20, %v494_v57 }
 0x87e   :  { %v498_v59 = vpack.c.bf16 %v496_v58, %v496_v58 }
 0x880   :  { %500 = vrot.lane.b32.xlu1 %v498_v59, %s3523_s7 }
 0x88c   :  { %v89_v60 = vpop.permute.xlu0 %88 }
 0x88d   :  { %vm91_vm7 = vcmp.eq.s32.totalorder %v89_v60, %v3591_v9 }
 0x88e   :  { %2716 = vmatmul.mubr.msk.f32.vlgmr.msra.gmra.mrb[0].mxu1 %vm91_vm7, %v3524_v56 }
 0x88f   :  { %2743 = vmatpush3.bf16.msra.mxu1 %v3601_v23  ;;  %2746 = vmatprep.mubr.msk.bf16.mxu1 %vm3521_vm4, %v3520_v13 }
 0x890   :  { %2744 = vmatprep.subr.bf16.mxu1 %v3520_v13 }
 0x893   :  { %2745 = vmatpush3.bf16.msra.mxu1 %v3606_v27 }
 0x894   :  { %2758 = vmatprep.subr.bf16.mxu1 %v3520_v13 }
 0x8f2   :  { %v501_v61 = vpop.permute.xlu1 %500 }
 0x8f3   :  { %2747 = vmatmul.mubr.msk.bf16.vlgmr.msra.gmra.mrb[4].mxu1 %vm282_vm5, %v501_v61 }
 0x8f4   :  { %2759 = vmatpush3.bf16.msra.mxu1 %v3601_v23  ;;  %2762 = vmatprep.mubr.msk.bf16.mxu1 %vm3521_vm4, %v3520_v13 }
 0x8f5   :  { %2760 = vmatprep.subr.bf16.mxu1 %v3520_v13 }
 0x8f8   :  { %2761 = vmatpush3.bf16.msra.mxu1 %v3606_v27 }
 0x8f9   :  { %2774 = vmatprep.subr.bf16.mxu1 %v3520_v13 }
 0x961   :  { %v2717_v62 = vpop.f32.mrb[0].mxu1 }
 0x962   :  { %280 = vst [vmem:[#allocation4 + $0x8] sm:$0xff] %v2717_v62  ;;  %v270_v63 = vpop.f32.mrb[1].mxu1 }
 0x963   :  { %279 = vst [vmem:[#allocation4] sm:$0xff] %v270_v63 }
 0x96a   :  { %v865_v0 = vld [vmem:[#allocation4] sm:$0x3]  ;;  %v988_v2 = vld [vmem:[#allocation4 + $0x2] sm:$0x3] }
 0x96b   :  { %866 = vst [vmem:[#allocation2] sm:$0x3] %v865_v0 }
 0x972   :  { %v3670_v1 = vld [vmem:[#allocation2] sm:$0x3] }
 0x973   :  { %989 = vst [vmem:[#allocation2] sm:$0x3] %v988_v2 }
 0x9c6   :  { %v539_v4 = vpop.f32.mrb[4].mxu1 }
 0x9c7   :  { %v545_v5 = vadd.f32 %v539_v4, %v497_v3  ;;  %v2748_v6 = vpop.f32.mrb[5].mxu1 }
 0x9c8   :  { %v542_v7 = vpop.f32.mrb[6].mxu1 }
 0x9c9   :  { %3357 = vtanh.f32 %v545_v5  ;;  %v2749_v8 = vpop.f32.mrb[7].mxu1  ;;  %v2419_v11 = vmul.f32 -1.442695, %v545_v5  ;;  %v716_v5 = vld [vmem:[#allocation3 + $0xc] sm:$0x3] }
 0x9cb   :  { %3359 = vpow2.f32 %v2419_v11 }
 0x9d3   :  { %v3358_v10 = vpop.eup %3357 }
 0x9d4   :  { %555 = vrot.lane.b32.xlu0 %v3358_v10, %s3522_s6 }
 0x9d5   :  { %v3360_v12 = vpop.eup %3359 }
 0x9d6   :  { %v549_v14 = vadd.f32 1.0, %v3360_v12 }
 0x9d8   :  { %3361 = vrcp.f32 %v549_v14 }
 0x9e2   :  { %v3362_v15 = vpop.eup %3361 }
 0x9e3   :  { %v553_v18 = vmul.f32 %v3362_v15, %v3646_v40 }
 0xa46   :  { %v556_v16 = vpop.permute.xlu0 %555 }
 0xa47   :  { %v558_v17 = vmul.f32 %v3362_v15, %v556_v16 }
 0xa49   :  { %560 = vrot.lane.b32.xlu1 %v558_v17, %s3523_s7 }
 0xabb   :  { %v561_v19 = vpop.permute.xlu1 %560 }
 0xabc   :  { %v563_v20 = vadd.f32 %v561_v19, %v553_v18 }
 0xabe   :  { %3363 = vtanh.f32 %v563_v20 }
 0xac8   :  { %v3364_v21 = vpop.eup %3363 }
 0xac9   :  { %566 = vrot.lane.b32.xlu0 %v3364_v21, %s3522_s6 }
 0xb3b   :  { %v567_v22 = vpop.permute.xlu0 %566 }
 0xb3c   :  { %v569_v24 = vmul.f32 %v3362_v15, %v567_v22 }
 0xb3e   :  { %v571_v25 = vpack.c.bf16 %v569_v24, %v569_v24 }
 0xb40   :  { %573 = vrot.lane.b32.xlu1 %v571_v25, %s3523_s7 }
 0xbb2   :  { %v574_v26 = vpop.permute.xlu1 %573 }
 0xbb3   :  { %2755 = vmatmul.mubr.msk.bf16.vlgmr.msra.gmra.mrb[16].mxu0 %vm282_vm5, %v574_v26 }
 0xbb4   :  { %2767 = vmatpush3.bf16.msra.mxu0 %v3601_v23  ;;  %2770 = vmatprep.mubr.msk.bf16.mxu0 %vm3521_vm4, %v3520_v13 }
 0xbb5   :  { %2768 = vmatprep.subr.bf16.mxu0 %v3520_v13 }
 0xbb8   :  { %2769 = vmatpush3.bf16.msra.mxu0 %v3606_v27 }
 0xbb9   :  { %2782 = vmatprep.subr.bf16.mxu0 %v3520_v13 }
 0xc86   :  { %v612_v29 = vpop.f32.mrb[16].mxu0 }
 0xc87   :  { %v618_v30 = vadd.f32 %v612_v29, %v570_v28  ;;  %v2756_v31 = vpop.f32.mrb[17].mxu0 }
 0xc88   :  { %v615_v32 = vpop.f32.mrb[18].mxu0 }
 0xc89   :  { %3365 = vtanh.f32 %v618_v30  ;;  %v2757_v33 = vpop.f32.mrb[19].mxu0  ;;  %v2421_v35 = vmul.f32 -1.442695, %v618_v30  ;;  %v789_v30 = vld [vmem:[#allocation3 + $0xe] sm:$0x3] }
 0xc8b   :  { %3367 = vpow2.f32 %v2421_v35 }
 0xc93   :  { %v3366_v34 = vpop.eup %3365 }
 0xc94   :  { %628 = vrot.lane.b32.xlu0 %v3366_v34, %s3522_s6 }
 0xc95   :  { %v3368_v36 = vpop.eup %3367 }
 0xc96   :  { %v622_v37 = vadd.f32 1.0, %v3368_v36 }
 0xc98   :  { %3369 = vrcp.f32 %v622_v37 }
 0xca2   :  { %v3370_v38 = vpop.eup %3369 }
 0xca3   :  { %v626_v41 = vmul.f32 %v3370_v38, %v563_v20 }
 0xd06   :  { %v629_v39 = vpop.permute.xlu0 %628 }
 0xd07   :  { %v631_v40 = vmul.f32 %v3370_v38, %v629_v39 }
 0xd09   :  { %633 = vrot.lane.b32.xlu1 %v631_v40, %s3523_s7 }
 0xd7b   :  { %v634_v42 = vpop.permute.xlu1 %633 }
 0xd7c   :  { %v636_v43 = vadd.f32 %v634_v42, %v626_v41 }
 0xd7e   :  { %3371 = vtanh.f32 %v636_v43 }
 0xd88   :  { %v3372_v44 = vpop.eup %3371 }
 0xd89   :  { %639 = vrot.lane.b32.xlu0 %v3372_v44, %s3522_s6 }
 0xdfb   :  { %v640_v45 = vpop.permute.xlu0 %639 }
 0xdfc   :  { %v642_v46 = vmul.f32 %v3370_v38, %v640_v45 }
 0xdfe   :  { %v644_v47 = vpack.c.bf16 %v642_v46, %v642_v46  ;;  %v49_v46 = vld [vmem:[#allocation9 + $0x20] sm:$0xff] }
 0xe00   :  { %646 = vrot.lane.b32.xlu1 %v644_v47, %s3523_s7  ;;  %v50_v47 = vld [vmem:[#allocation9 + $0x28] sm:$0xff] }
 0xe72   :  { %v647_v48 = vpop.permute.xlu1 %646 }
 0xe73   :  { %2763 = vmatmul.mubr.msk.bf16.vlgmr.msra.gmra.mrb[8].mxu1 %vm282_vm5, %v647_v48  ;;  %v51_v48 = vld [vmem:[#allocation9 + $0x30] sm:$0xff] }
 0xe74   :  { %2775 = vmatpush3.bf16.msra.mxu1 %v3601_v23  ;;  %2778 = vmatprep.mubr.msk.bf16.mxu1 %vm3521_vm4, %v3520_v13 }
 0xe75   :  { %2776 = vmatprep.subr.bf16.mxu1 %v3520_v13 }
 0xe78   :  { %2777 = vmatpush3.bf16.msra.mxu1 %v3606_v27 }
 0xe79   :  { %2790 = vmatprep.subr.bf16.mxu1 %v3520_v13 }
 0xf46   :  { %v685_v50 = vpop.f32.mrb[8].mxu1 }
 0xf47   :  { %v691_v51 = vadd.f32 %v685_v50, %v643_v49  ;;  %v2764_v52 = vpop.f32.mrb[9].mxu1  ;;  %v3711_v49 = vpack.c.bf16 %v50_v47, %v49_v46  ;;  %v52_v50 = vld [vmem:[#allocation9 + $0x38] sm:$0xff]  ;;  %v1028_v47 = vld [vmem:[#allocation9 + $0xe8] sm:$0xff] (%p991_p13) }
 0xf48   :  { %v688_v53 = vpop.f32.mrb[10].mxu1 }
 0xf49   :  { %3373 = vtanh.f32 %v691_v51  ;;  %v2765_v54 = vpop.f32.mrb[11].mxu1  ;;  %v2423_v23 = vmul.f32 -1.442695, %v691_v51  ;;  %v3714_v51 = vpack.c.bf16 %v52_v50, %v51_v48  ;;  %v1029_v48 = vld [vmem:[#allocation9 + $0xf0] sm:$0xff] (%p991_p13) }
 0xf4a   :  { %v3165_v50 = vpack.c.bf16 (%p991_p13), %v1029_v48, %v1028_v47 }
 0xf4b   :  { %3375 = vpow2.f32 %v2423_v23 }
 0xf53   :  { %v3374_v55 = vpop.eup %3373 }
 0xf54   :  { %701 = vrot.lane.b32.xlu0 %v3374_v55, %s3522_s6 }
 0xf55   :  { %v3376_v56 = vpop.eup %3375 }
 0xf56   :  { %v695_v57 = vadd.f32 1.0, %v3376_v56 }
 0xf58   :  { %3377 = vrcp.f32 %v695_v57 }
 0xf62   :  { %v3378_v58 = vpop.eup %3377 }
 0xf63   :  { %v699_v60 = vmul.f32 %v3378_v58, %v636_v43 }
 0xfc6   :  { %v702_v59 = vpop.permute.xlu0 %701 }
 0xfc7   :  { %v704_v27 = vmul.f32 %v3378_v58, %v702_v59 }
 0xfc9   :  { %706 = vrot.lane.b32.xlu1 %v704_v27, %s3523_s7 }
0x103b   :  { %v707_v61 = vpop.permute.xlu1 %706 }
0x103c   :  { %v709_v62 = vadd.f32 %v707_v61, %v699_v60 }
0x103e   :  { %3379 = vtanh.f32 %v709_v62 }
0x1048   :  { %v3380_v63 = vpop.eup %3379 }
0x1049   :  { %712 = vrot.lane.b32.xlu0 %v3380_v63, %s3522_s6 }
0x10bb   :  { %v713_v0 = vpop.permute.xlu0 %712 }
0x10bc   :  { %v715_v2 = vmul.f32 %v3378_v58, %v713_v0 }
0x10be   :  { %v717_v3 = vpack.c.bf16 %v715_v2, %v715_v2 }
0x10c0   :  { %719 = vrot.lane.b32.xlu1 %v717_v3, %s3523_s7 }
0x1132   :  { %v720_v4 = vpop.permute.xlu1 %719 }
0x1133   :  { %2771 = vmatmul.mubr.msk.bf16.vlgmr.msra.gmra.mrb[20].mxu0 %vm282_vm5, %v720_v4 }
0x1134   :  { %2786 = vmatprep.mubr.msk.bf16.mxu0 %vm3521_vm4, %v3520_v13  ;;  %2783 = vmatpush3.bf16.msra.mxu0 %v3711_v49 }
0x1135   :  { %2784 = vmatprep.subr.bf16.mxu0 %v3520_v13 }
0x1138   :  { %2785 = vmatpush3.bf16.msra.mxu0 %v3714_v51 }
0x1206   :  { %v758_v6 = vpop.f32.mrb[20].mxu0 }
0x1207   :  { %v764_v7 = vadd.f32 %v758_v6, %v716_v5  ;;  %v2772_v8 = vpop.f32.mrb[21].mxu0  ;;  %v55_v6 = vld [vmem:[#allocation9 + $0x40] sm:$0xff] }
0x1208   :  { %v761_v10 = vpop.f32.mrb[22].mxu0  ;;  %v57_v8 = vld [vmem:[#allocation9 + $0x50] sm:$0xff] }
0x1209   :  { %3381 = vtanh.f32 %v764_v7  ;;  %v2773_v11 = vpop.f32.mrb[23].mxu0  ;;  %v2425_v14 = vmul.f32 -1.442695, %v764_v7  ;;  %v56_v7 = vld [vmem:[#allocation9 + $0x48] sm:$0xff] }
0x120a   :  { %v3727_v10 = vpack.c.bf16 %v56_v7, %v55_v6  ;;  %v58_v11 = vld [vmem:[#allocation9 + $0x58] sm:$0xff]  ;;  %v3528_v6 = vmov (%p991_p13), 1.0  }
0x120b   :  { %3383 = vpow2.f32 %v2425_v14 }
0x1213   :  { %v3382_v12 = vpop.eup %3381 }
0x1214   :  { %774 = vrot.lane.b32.xlu0 %v3382_v12, %s3522_s6  ;;  %v3730_v12 = vpack.c.bf16 %v58_v11, %v57_v8 }
0x1215   :  { %v3384_v15 = vpop.eup %3383 }
0x1216   :  { %v768_v16 = vadd.f32 1.0, %v3384_v15 }
0x1218   :  { %3385 = vrcp.f32 %v768_v16 }
0x1222   :  { %v3386_v17 = vpop.eup %3385 }
0x1223   :  { %v772_v20 = vmul.f32 %v3386_v17, %v709_v62 }
0x1286   :  { %v775_v18 = vpop.permute.xlu0 %774 }
0x1287   :  { %v777_v19 = vmul.f32 %v3386_v17, %v775_v18 }
0x1289   :  { %779 = vrot.lane.b32.xlu1 %v777_v19, %s3523_s7  ;;  %v3743_v19 = vld [vmem:[#allocation9 + $0x60] ss:$0 sm:$0xff] }
0x12fb   :  { %v780_v21 = vpop.permute.xlu1 %779 }
0x12fc   :  { %v782_v22 = vadd.f32 %v780_v21, %v772_v20 }
0x12fe   :  { %3387 = vtanh.f32 %v782_v22 }
0x1308   :  { %v3388_v24 = vpop.eup %3387 }
0x1309   :  { %785 = vrot.lane.b32.xlu0 %v3388_v24, %s3522_s6 }
0x137b   :  { %v786_v25 = vpop.permute.xlu0 %785 }
0x137c   :  { %v788_v26 = vmul.f32 %v3386_v17, %v786_v25 }
0x137e   :  { %v790_v28 = vpack.c.bf16 %v788_v26, %v788_v26 }
0x1380   :  { %792 = vrot.lane.b32.xlu1 %v790_v28, %s3523_s7 }
0x13f2   :  { %v793_v29 = vpop.permute.xlu1 %792 }
0x13f3   :  { %2779 = vmatmul.mubr.msk.bf16.vlgmr.msra.gmra.mrb[12].mxu1 %vm282_vm5, %v793_v29 }
0x13f4   :  { %2794 = vmatprep.mubr.msk.bf16.mxu1 %vm3521_vm4, %v3520_v13  ;;  %2791 = vmatpush3.bf16.msra.mxu1 %v3727_v10 }
0x13f5   :  { %2792 = vmatprep.subr.bf16.mxu1 %v3520_v13 }
0x13f8   :  { %2793 = vmatpush3.bf16.msra.mxu1 %v3730_v12 }
0x14c6   :  { %v831_v31 = vpop.f32.mrb[12].mxu1 }
0x14c7   :  { %v837_v32 = vadd.f32 %v831_v31, %v789_v30  ;;  %v2780_v33 = vpop.f32.mrb[13].mxu1 }
0x14c8   :  { %v834_v34 = vpop.f32.mrb[14].mxu1 }
0x14c9   :  { %3389 = vtanh.f32 %v837_v32  ;;  %v2781_v35 = vpop.f32.mrb[15].mxu1  ;;  %v2427_v37 = vmul.f32 -1.442695, %v837_v32  ;;  %v1020_v34 = vld [vmem:[#allocation9 + $0xa8] sm:$0xff] (%p991_p13) }
0x14ca   :  { %v1021_v35 = vld [vmem:[#allocation9 + $0xb0] sm:$0xff] (%p991_p13) }
0x14cb   :  { %3391 = vpow2.f32 %v2427_v37  ;;  %v3525_v37 = vmov (%p991_p13), 0.0|0.0  }
0x14cc   :  { %3152 = vmatprep.subr.bf16.mxu0 (%p991_p13), %v3525_v37 }
0x14d3   :  { %v3390_v36 = vpop.eup %3389 }
0x14d4   :  { %847 = vrot.lane.b32.xlu0 %v3390_v36, %s3522_s6  ;;  %v1022_v36 = vld [vmem:[#allocation9 + $0xb8] sm:$0xff] (%p991_p13) }
0x14d5   :  { %v3392_v38 = vpop.eup %3391 }
0x14d6   :  { %v841_v39 = vadd.f32 1.0, %v3392_v38  ;;  %v3153_v38 = vpack.c.bf16 (%p991_p13), %v1021_v35, %v1020_v34 }
0x14d8   :  { %3393 = vrcp.f32 %v841_v39  ;;  %v1023_v39 = vld [vmem:[#allocation9 + $0xc0] sm:$0xff] (%p991_p13) }
0x14e2   :  { %v3394_v40 = vpop.eup %3393 }
0x14e3   :  { %v845_v43 = vmul.f32 %v3394_v40, %v782_v22 }
0x1546   :  { %v848_v41 = vpop.permute.xlu0 %847 }
0x1547   :  { %v850_v42 = vmul.f32 %v3394_v40, %v848_v41  ;;  %v1024_v41 = vld [vmem:[#allocation9 + $0xc8] sm:$0xff] (%p991_p13) }
0x1549   :  { %852 = vrot.lane.b32.xlu1 %v850_v42, %s3523_s7  ;;  %v1025_v42 = vld [vmem:[#allocation9 + $0xd0] sm:$0xff] (%p991_p13) }
0x15bb   :  { %v853_v44 = vpop.permute.xlu1 %852 }
0x15bc   :  { %v855_v45 = vadd.f32 %v853_v44, %v845_v43  ;;  %v3159_v43 = vpack.c.bf16 (%p991_p13), %v1025_v42, %v1024_v41  ;;  %v1026_v44 = vld [vmem:[#allocation9 + $0xd8] sm:$0xff] (%p991_p13) }
0x15be   :  { %3395 = vtanh.f32 %v855_v45 }
0x15c8   :  { %v3396_v52 = vpop.eup %3395 }
0x15c9   :  { %858 = vrot.lane.b32.xlu0 %v3396_v52, %s3522_s6  ;;  %v1030_v52 = vld [vmem:[#allocation9 + $0xf8] sm:$0xff] (%p991_p13) }
0x163b   :  { %v859_v53 = vpop.permute.xlu0 %858 }
0x163c   :  { %v861_v54 = vmul.f32 %v3394_v40, %v859_v53  ;;  %v3156_v40 = vpack.c.bf16 (%p991_p13), %v1023_v39, %v1022_v36  ;;  %v1031_v53 = vld [vmem:[#allocation9 + $0x100] sm:$0xff] (%p991_p13) }
0x163e   :  { %v868_v55 = vpack.c.bf16 %v861_v54, %v861_v54  ;;  %v3168_v54 = vpack.c.bf16 (%p991_p13), %v1031_v53, %v1030_v52 }
0x1640   :  { %870 = vrot.lane.b32.xlu1 %v868_v55, %s3523_s7  ;;  %v1032_v55 = vld [vmem:[#allocation9 + $0x108] sm:$0xff] (%p991_p13) }
0x16b2   :  { %v871_v23 = vpop.permute.xlu1 %870 }
0x16b3   :  { %2787 = vmatmul.mubr.msk.bf16.vlgmr.msra.gmra.mrb[24].mxu0 %vm282_vm5, %v871_v23  ;;  %v1033_v23 = vld [vmem:[#allocation9 + $0x110] sm:$0xff] (%p991_p13) }
0x16b4   :  { %3154 = vmatpush3.bf16.msra.mxu0 (%p991_p13), %v3153_v38 }
0x16b5   :  { %3155 = vmatprep.subr.bf16.mxu0 (%p991_p13), %v3525_v37 }
0x16b8   :  { %3157 = vmatpush3.bf16.msra.mxu0 (%p991_p13), %v3156_v40 }
0x16b9   :  { %3158 = vmatprep.subr.bf16.mxu0 (%p991_p13), %v3525_v37 }
0x16bc   :  { %3160 = vmatpush3.bf16.msra.mxu0 (%p991_p13), %v3159_v43 }
0x16bd   :  { %3161 = vmatprep.subr.bf16.mxu0 (%p991_p13), %v3525_v37 }
0x1786   :  { %v909_v56 = vpop.f32.mrb[24].mxu0 }
0x1787   :  { %v915_v57 = vadd.f32 %v909_v56, %v3670_v1  ;;  %v2788_v58 = vpop.f32.mrb[25].mxu0  ;;  %v3171_v56 = vpack.c.bf16 (%p991_p13), %v1033_v23, %v1032_v55 }
0x1788   :  { %v912_v59 = vpop.f32.mrb[26].mxu0 }
0x1789   :  { %3397 = vtanh.f32 %v915_v57  ;;  %v2789_v27 = vpop.f32.mrb[27].mxu0  ;;  %v2430_v61 = vmul.f32 -1.442695, %v915_v57 }
0x178b   :  { %3399 = vpow2.f32 %v2430_v61  ;;  %v1035_v61 = vld [vmem:[#allocation9 + $0x120] sm:$0xff] (%p991_p13) }
0x1793   :  { %v3398_v60 = vpop.eup %3397 }
0x1794   :  { %925 = vrot.lane.b32.xlu0 %v3398_v60, %s3522_s6  ;;  %v1034_v60 = vld [vmem:[#allocation9 + $0x118] sm:$0xff] (%p991_p13) }
0x1795   :  { %v3400_v62 = vpop.eup %3399 }
0x1796   :  { %v919_v63 = vadd.f32 1.0, %v3400_v62  ;;  %v3174_v62 = vpack.c.bf16 (%p991_p13), %v1035_v61, %v1034_v60 }
0x1798   :  { %3401 = vrcp.f32 %v919_v63  ;;  %v3527_v63 = vmov (%p991_p13), 0.0  }
0x1799   :  { %2830 = vmatprep.mubr.msk.f32.mxu0 (%p991_p13), %vm3526_vm11, %v3527_v63 }
0x17a2   :  { %v3402_v0 = vpop.eup %3401 }
0x17a3   :  { %v923_v4 = vmul.f32 %v3402_v0, %v855_v45  ;;  %v1027_v45 = vld [vmem:[#allocation9 + $0xe0] sm:$0xff] (%p991_p13) }
0x17a4   :  { %v3162_v46 = vpack.c.bf16 (%p991_p13), %v1027_v45, %v1026_v44 }
0x17a6   :  { %3163 = vmatpush3.bf16.msra.mxu0 (%p991_p13), %v3162_v46 }
0x17a7   :  { %3164 = vmatprep.subr.bf16.mxu0 (%p991_p13), %v3525_v37 }
0x17aa   :  { %3166 = vmatpush3.bf16.msra.mxu0 (%p991_p13), %v3165_v50 }
0x17ab   :  { %3167 = vmatprep.subr.bf16.mxu0 (%p991_p13), %v3525_v37 }
0x17ae   :  { %3169 = vmatpush3.bf16.msra.mxu0 (%p991_p13), %v3168_v54 }
0x17af   :  { %3170 = vmatprep.subr.bf16.mxu0 (%p991_p13), %v3525_v37 }
0x17b2   :  { %3172 = vmatpush3.bf16.msra.mxu0 (%p991_p13), %v3171_v56 }
0x17b3   :  { %3173 = vmatprep.subr.bf16.mxu0 (%p991_p13), %v3525_v37 }
0x17b6   :  { %3175 = vmatpush3.bf16.msra.mxu0 (%p991_p13), %v3174_v62 }
0x1806   :  { %v926_v2 = vpop.permute.xlu0 %925 }
0x1807   :  { %v928_v3 = vmul.f32 %v3402_v0, %v926_v2 }
0x1809   :  { %930 = vrot.lane.b32.xlu1 %v928_v3, %s3523_s7 }
0x187b   :  { %v931_v5 = vpop.permute.xlu1 %930 }
0x187c   :  { %v3724_v1 = vadd.f32 %v931_v5, %v923_v4 }
0x187e   :  { %3403 = vtanh.f32 %v3724_v1 }
0x1888   :  { %v3404_v14 = vpop.eup %3403 }
0x1889   :  { %936 = vrot.lane.b32.xlu0 %v3404_v14, %s3522_s6 }
0x18fb   :  { %v937_v15 = vpop.permute.xlu0 %936 }
0x18fc   :  { %v939_v16 = vmul.f32 %v3402_v0, %v937_v15 }
0x18fe   :  { %v940_v17 = vpack.c.bf16 %v939_v16, %v939_v16 }
0x1900   :  { %942 = vrot.lane.b32.xlu1 %v940_v17, %s3523_s7 }
0x1972   :  { %v3736_v18 = vpop.permute.xlu1 %942 }
0x1973   :  { %2795 = vmatmul.mubr.msk.bf16.vlgmr.msra.gmra.mrb[16].mxu1 %vm282_vm5, %v3736_v18 }
0x1a43   :  { %994 = sbr.rel (!%p991_p13) target bundleno = 7384 (0x1cd8), region = 25 }
0x1a46   :  { %v981_v20 = vpop.f32.mrb[16].mxu1 }
0x1a47   :  { %v982_v21 = vadd.f32 %v3743_v19, %v981_v20  ;;  %v2796_v22 = vpop.f32.mrb[17].mxu1 }
0x1a48   :  { %v984_v24 = vpop.f32.mrb[18].mxu1 }
0x1a49   :  { %987 = vst [vmem:[#allocation10 + $0x2] sm:$0x3] %v982_v21  ;;  %v2797_v25 = vpop.f32.mrb[19].mxu1  ;;  %v995_v26 = vsel (%p991_p13), %vm862_vm0, %v982_v21, -1e+30 }
0x1a4a   :  { %v997_v28 = vsel %vm996_vm8, %v995_v26, -inf }
0x1a4b   :  { %998 = vmax.xlane.f32.xlu0 %v997_v28 }
0x1ad8   :  { %v999_v29 = vpop.xlane.xlu0 %998 }
0x1ad9   :  { %vm1000_vm9 = vcmp.eq.f32.partialorder %v995_v26, %v999_v29 }
0x1ada   :  { %v1001_v30 = vsel %vm1000_vm9, %v3591_v9, 128 }
0x1adb   :  { %v1002_v31 = vsel %vm996_vm8, %v1001_v30, 2147483647 }
0x1adc   :  { %v1004_v32 = vshra.s32 %v1002_v31, 16  ;;  %v1003_v57 = vand.u32 65535, %v1002_v31 }
0x1ade   :  { %v1006_v33 = vcvt.s32.f32 %v1004_v32  ;;  %v1005_v59 = vcvt.s32.f32 %v1003_v57 }
0x1ae0   :  { %1007 = vmin.xlane.f32.xlu0 %v1006_v33 }
0x1b6d   :  { %v1008_v58 = vpop.xlane.xlu0 %1007 }
0x1b6e   :  { %vm1009_vm10 = vcmp.eq.f32.partialorder %v1006_v33, %v1008_v58  ;;  %v1014_v0 = vcvt.f32.s32 %v1008_v58 }
0x1b6f   :  { %v1010_v27 = vsel %vm1009_vm10, %v1005_v59, inf }
0x1b70   :  { %1011 = vmin.xlane.f32.xlu1 %v1010_v27  ;;  %v1015_v3 = vshll.u32 %v1014_v0, 16 }
0x1bfd   :  { %v1012_v2 = vpop.xlane.xlu1 %1011 }
0x1bfe   :  { %v1013_v4 = vcvt.f32.s32 %v1012_v2 }
0x1c00   :  { %v1016_v5 = vadd.s32 %v1015_v3, %v1013_v4 }
0x1c02   :  { %vm1017_vm12 = vcmp.eq.s32.totalorder %v3591_v9, %v1016_v5 }
0x1c03   :  { %2831 = vmatmul.mubr.msk.f32.vlgmr.msra.gmra.mrb[0].mxu0 %vm1017_vm12, %v3528_v6 }
0x1cd6   :  { %v1102_v7 = vpop.f32.mrb[0].mxu0 }
0x1cd7   :  { %1106 = vst [vmem:[#allocation2] sm:$0x3] %v1102_v7  ;;  %v2832_v8 = vpop.f32.mrb[1].mxu0 }
0x1cd8 PF:  { %2833 = vmatprep.subr.bf16.mxu0 %v3520_v13  ;;  %2837 = vmatprep.mubr.msk.bf16.mxu0 %vm3521_vm4, %v3520_v13  ;;  %v1221_v14 = vld [vmem:[#allocation4 + $0x4] sm:$0x3]  ;;  %s2438_s13 = sld [smem:[#allocation5 + $0x2]] }
0x1cd9   :  { %2834 = vmatpush3.bf16.msra.mxu0 %v3711_v49  ;;  %2841 = vmatprep.subr.bf16.mxu1 %v3520_v13 }
0x1cda   :  { %2835 = vmatprep.subr.bf16.mxu0 %v3520_v13  ;;  %2842 = vmatpush3.bf16.msra.mxu1 %v3727_v10 }
0x1cdb   :  { %2843 = vmatprep.subr.bf16.mxu1 %v3520_v13  ;;  %2845 = vmatprep.mubr.msk.bf16.mxu1 %vm3521_vm4, %v3520_v13 }
0x1cdd   :  { %2836 = vmatpush3.bf16.msra.mxu0 %v3714_v51 }
0x1cde   :  { %2844 = vmatpush3.bf16.msra.mxu1 %v3730_v12  ;;  %v1107_v11 = vld [vmem:[#allocation2] sm:$0x3]  ;;  %p1224_p0 = scmp.ge.f32.partialorder %s2438_s13, %s3740_s1 }
0x1cdf   :  { %1222 = vst [vmem:[#allocation2] sm:$0x3] %v1221_v14  ;;  %vm1229_vm13 = vcmask (%p1224_p0), 1041408   ;;  %v1253_v50 = vld [vmem:[#allocation9 + $0xa8] sm:$0xff] (%p1224_p0)  ;;  %v1254_v52 = vld [vmem:[#allocation9 + $0xb0] sm:$0xff] (%p1224_p0)  ;;  %v1255_v53 = vld [vmem:[#allocation9 + $0xb8] sm:$0xff] (%p1224_p0) }
0x1ce0   :  { %2838 = vmatmul.mubr.msk.bf16.vlgmr.msra.gmra.mrb[0].mxu0 %vm282_vm5, %v3736_v18  ;;  %v3529_v54 = vmov (%p1224_p0), 0.0|0.0   ;;  %v3177_v55 = vpack.c.bf16 (%p1224_p0), %v1254_v52, %v1253_v50  ;;  %v1256_v23 = vld [vmem:[#allocation9 + $0xc0] sm:$0xff] (%p1224_p0)  ;;  %v1257_v57 = vld [vmem:[#allocation9 + $0xc8] sm:$0xff] (%p1224_p0)  ;;  %v1258_v58 = vld [vmem:[#allocation9 + $0xd0] sm:$0xff] (%p1224_p0)  ;;  %vm3530_vm1 = vmmov (%p1224_p0), 0  }
0x1ce1   :  { %3176 = vmatprep.subr.bf16.mxu0 (%p1224_p0), %v3529_v54  ;;  %v3180_v56 = vpack.c.bf16 (%p1224_p0), %v1256_v23, %v1255_v53  ;;  %v3183_v59 = vpack.c.bf16 (%p1224_p0), %v1258_v58, %v1257_v57  ;;  %v1259_v27 = vld [vmem:[#allocation9 + $0xd8] sm:$0xff] (%p1224_p0)  ;;  %v1260_v60 = vld [vmem:[#allocation9 + $0xe0] sm:$0xff] (%p1224_p0)  ;;  %v1261_v62 = vld [vmem:[#allocation9 + $0xe8] sm:$0xff] (%p1224_p0) }
0x1ce2   :  { %3178 = vmatpush3.bf16.msra.mxu0 (%p1224_p0), %v3177_v55  ;;  %v3186_v61 = vpack.c.bf16 (%p1224_p0), %v1260_v60, %v1259_v27  ;;  %v1262_v63 = vld [vmem:[#allocation9 + $0xf0] sm:$0xff] (%p1224_p0)  ;;  %v1263_v2 = vld [vmem:[#allocation9 + $0xf8] sm:$0xff] (%p1224_p0)  ;;  %v1264_v3 = vld [vmem:[#allocation9 + $0x100] sm:$0xff] (%p1224_p0) }
0x1ce3   :  { %3179 = vmatprep.subr.bf16.mxu0 (%p1224_p0), %v3529_v54  ;;  %v3189_v0 = vpack.c.bf16 (%p1224_p0), %v1262_v63, %v1261_v62  ;;  %v3192_v4 = vpack.c.bf16 (%p1224_p0), %v1264_v3, %v1263_v2  ;;  %v1265_v5 = vld [vmem:[#allocation9 + $0x108] sm:$0xff] (%p1224_p0)  ;;  %v1266_v6 = vld [vmem:[#allocation9 + $0x110] sm:$0xff] (%p1224_p0) }
0x1ce4   :  { %v3195_v7 = vpack.c.bf16 (%p1224_p0), %v1266_v6, %v1265_v5 }
0x1ce6   :  { %3181 = vmatpush3.bf16.msra.mxu0 (%p1224_p0), %v3180_v56 }
0x1ce7   :  { %3182 = vmatprep.subr.bf16.mxu0 (%p1224_p0), %v3529_v54 }
0x1cea   :  { %3184 = vmatpush3.bf16.msra.mxu0 (%p1224_p0), %v3183_v59 }
0x1ceb   :  { %3185 = vmatprep.subr.bf16.mxu0 (%p1224_p0), %v3529_v54 }
0x1cee   :  { %3187 = vmatpush3.bf16.msra.mxu0 (%p1224_p0), %v3186_v61 }
0x1cef   :  { %3188 = vmatprep.subr.bf16.mxu0 (%p1224_p0), %v3529_v54 }
0x1cf2   :  { %3190 = vmatpush3.bf16.msra.mxu0 (%p1224_p0), %v3189_v0 }
0x1cf3   :  { %3191 = vmatprep.subr.bf16.mxu0 (%p1224_p0), %v3529_v54 }
0x1cf6   :  { %3193 = vmatpush3.bf16.msra.mxu0 (%p1224_p0), %v3192_v4 }
0x1cf7   :  { %3194 = vmatprep.subr.bf16.mxu0 (%p1224_p0), %v3529_v54 }
0x1cfa   :  { %3196 = vmatpush3.bf16.msra.mxu0 (%p1224_p0), %v3195_v7 }
0x1cfb   :  { %3197 = vmatprep.subr.bf16.mxu0 (%p1224_p0), %v3529_v54 }
0x1db3   :  { %v1142_v15 = vpop.f32.mrb[0].mxu0 }
0x1db4   :  { %v1148_v16 = vadd.f32 %v1142_v15, %v1107_v11  ;;  %v2839_v17 = vpop.f32.mrb[1].mxu0 }
0x1db5   :  { %v1145_v20 = vpop.f32.mrb[2].mxu0  ;;  %v1268_v17 = vld [vmem:[#allocation9 + $0x120] sm:$0xff] (%p1224_p0) }
0x1db6   :  { %v2840_v21 = vpop.f32.mrb[3].mxu0  ;;  %3405 = vtanh.f32 %v1148_v16  ;;  %v2436_v24 = vmul.f32 -1.442695, %v1148_v16  ;;  %v1267_v16 = vld [vmem:[#allocation9 + $0x118] sm:$0xff] (%p1224_p0) }
0x1db7   :  { %v3198_v20 = vpack.c.bf16 (%p1224_p0), %v1268_v17, %v1267_v16  ;;  %v3531_v21 = vmov (%p1224_p0), 0.0  }
0x1db8   :  { %3407 = vpow2.f32 %v2436_v24  ;;  %2881 = vmatprep.mubr.msk.f32.mxu0 (%p1224_p0), %vm3530_vm1, %v3531_v21 }
0x1db9   :  { %3199 = vmatpush3.bf16.msra.mxu0 (%p1224_p0), %v3198_v20 }
0x1dc0   :  { %v3406_v22 = vpop.eup %3405 }
0x1dc1   :  { %1158 = vrot.lane.b32.xlu0 %v3406_v22, %s3522_s6 }
0x1dc2   :  { %v3408_v25 = vpop.eup %3407 }
0x1dc3   :  { %v1152_v26 = vadd.f32 1.0, %v3408_v25 }
0x1dc5   :  { %3409 = vrcp.f32 %v1152_v26 }
0x1dcf   :  { %v3410_v28 = vpop.eup %3409 }
0x1dd0   :  { %v1156_v30 = vmul.f32 %v3410_v28, %v3724_v1 }
0x1e33   :  { %v1159_v29 = vpop.permute.xlu0 %1158 }
0x1e34   :  { %v1161_v18 = vmul.f32 %v3410_v28, %v1159_v29  ;;  %v3532_v29 = vmov (%p1224_p0), 1.0  }
0x1e36   :  { %1163 = vrot.lane.b32.xlu0 %v1161_v18, %s3523_s7 }
0x1ea8   :  { %v1164_v31 = vpop.permute.xlu0 %1163 }
0x1ea9   :  { %v3767_v32 = vadd.f32 %v1164_v31, %v1156_v30 }
0x1eab   :  { %3411 = vtanh.f32 %v3767_v32 }
0x1eb5   :  { %v3412_v33 = vpop.eup %3411 }
0x1eb6   :  { %1169 = vrot.lane.b32.xlu1 %v3412_v33, %s3522_s6 }
0x1f28   :  { %v1170_v34 = vpop.permute.xlu1 %1169 }
0x1f29   :  { %v1172_v35 = vmul.f32 %v3410_v28, %v1170_v34 }
0x1f2b   :  { %v1173_v36 = vpack.c.bf16 %v1172_v35, %v1172_v35 }
0x1f2d   :  { %1175 = vrot.lane.b32.xlu1 %v1173_v36, %s3523_s7 }
0x1f9f   :  { %v3772_v37 = vpop.permute.xlu1 %1175 }
0x1fa0   :  { %2846 = vmatmul.mubr.msk.bf16.vlgmr.msra.gmra.mrb[0].mxu1 %vm282_vm5, %v3772_v37 }
0x2070   :  { %1227 = sbr.rel (!%p1224_p0) target bundleno = 8965 (0x2305), region = 29 }
0x2073   :  { %v1214_v1 = vpop.f32.mrb[0].mxu1 }
0x2074   :  { %v1215_v38 = vadd.f32 %v3743_v19, %v1214_v1  ;;  %v2847_v39 = vpop.f32.mrb[1].mxu1 }
0x2075   :  { %v1217_v40 = vpop.f32.mrb[2].mxu1 }
0x2076   :  { %1220 = vst [vmem:[#allocation10 + $0x4] sm:$0x3] %v1215_v38  ;;  %v2848_v41 = vpop.f32.mrb[3].mxu1  ;;  %v1228_v42 = vsel (%p1224_p0), %vm862_vm0, %v1215_v38, -1e+30 }
0x2077   :  { %v1230_v43 = vsel %vm1229_vm13, %v1228_v42, -inf }
0x2078   :  { %1231 = vmax.xlane.f32.xlu0 %v1230_v43 }
0x2105   :  { %v1232_v44 = vpop.xlane.xlu0 %1231 }
0x2106   :  { %vm1233_vm14 = vcmp.eq.f32.partialorder %v1228_v42, %v1232_v44 }
0x2107   :  { %v1234_v45 = vsel %vm1233_vm14, %v3591_v9, 128 }
0x2108   :  { %v1235_v46 = vsel %vm1229_vm13, %v1234_v45, 2147483647 }
0x2109   :  { %v1237_v47 = vshra.s32 %v1235_v46, 16  ;;  %v1236_v8 = vand.u32 65535, %v1235_v46 }
0x210b   :  { %v1239_v48 = vcvt.s32.f32 %v1237_v47  ;;  %v1238_v14 = vcvt.s32.f32 %v1236_v8 }
0x210d   :  { %1240 = vmin.xlane.f32.xlu0 %v1239_v48 }
0x219a   :  { %v1241_v11 = vpop.xlane.xlu0 %1240 }
0x219b   :  { %vm1242_vm15 = vcmp.eq.f32.partialorder %v1239_v48, %v1241_v11  ;;  %v1247_v22 = vcvt.f32.s32 %v1241_v11 }
0x219c   :  { %v1243_v15 = vsel %vm1242_vm15, %v1238_v14, inf }
0x219d   :  { %1244 = vmin.xlane.f32.xlu1 %v1243_v15  ;;  %v1248_v25 = vshll.u32 %v1247_v22, 16 }
0x222a   :  { %v1245_v24 = vpop.xlane.xlu1 %1244 }
0x222b   :  { %v1246_v26 = vcvt.f32.s32 %v1245_v24 }
0x222d   :  { %v1249_v28 = vadd.s32 %v1248_v25, %v1246_v26 }
0x222f   :  { %vm1250_vm2 = vcmp.eq.s32.totalorder %v3591_v9, %v1249_v28 }
0x2230   :  { %2882 = vmatmul.mubr.msk.f32.vlgmr.msra.gmra.mrb[0].mxu0 %vm1250_vm2, %v3532_v29 }
0x2303   :  { %v1335_v18 = vpop.f32.mrb[0].mxu0 }
0x2304   :  { %1339 = vst [vmem:[#allocation2] sm:$0x3] %v1335_v18  ;;  %v2883_v30 = vpop.f32.mrb[1].mxu0 }
0x2305 PF:  { %2884 = vmatprep.subr.bf16.mxu0 %v3520_v13  ;;  %2888 = vmatprep.mubr.msk.bf16.mxu0 %vm3521_vm4, %v3520_v13  ;;  %v1454_v33 = vld [vmem:[#allocation4 + $0x6] sm:$0x3]  ;;  %s2444_s14 = sld [smem:[#allocation5 + $0x3]] }
0x2306   :  { %2885 = vmatpush3.bf16.msra.mxu0 %v3711_v49  ;;  %2892 = vmatprep.subr.bf16.mxu1 %v3520_v13 }
0x2307   :  { %2886 = vmatprep.subr.bf16.mxu0 %v3520_v13  ;;  %2893 = vmatpush3.bf16.msra.mxu1 %v3727_v10 }
0x2308   :  { %2894 = vmatprep.subr.bf16.mxu1 %v3520_v13  ;;  %2896 = vmatprep.mubr.msk.bf16.mxu1 %vm3521_vm4, %v3520_v13 }
0x230a   :  { %2887 = vmatpush3.bf16.msra.mxu0 %v3714_v51 }
0x230b   :  { %2895 = vmatpush3.bf16.msra.mxu1 %v3730_v12  ;;  %v1340_v31 = vld [vmem:[#allocation2] sm:$0x3]  ;;  %p1457_p1 = scmp.ge.f32.partialorder %s2444_s14, %s3740_s1 }
0x230c   :  { %1455 = vst [vmem:[#allocation2] sm:$0x3] %v1454_v33  ;;  %vm1462_vm3 = vcmask (%p1457_p1), 1041408   ;;  %v1486_v0 = vld [vmem:[#allocation9 + $0xa8] sm:$0xff] (%p1457_p1)  ;;  %v1487_v2 = vld [vmem:[#allocation9 + $0xb0] sm:$0xff] (%p1457_p1)  ;;  %v1488_v3 = vld [vmem:[#allocation9 + $0xb8] sm:$0xff] (%p1457_p1) }
0x230d   :  { %2889 = vmatmul.mubr.msk.bf16.vlgmr.msra.gmra.mrb[0].mxu0 %vm282_vm5, %v3772_v37  ;;  %v3533_v4 = vmov (%p1457_p1), 0.0|0.0   ;;  %v3201_v5 = vpack.c.bf16 (%p1457_p1), %v1487_v2, %v1486_v0  ;;  %v1489_v6 = vld [vmem:[#allocation9 + $0xc0] sm:$0xff] (%p1457_p1)  ;;  %v1490_v8 = vld [vmem:[#allocation9 + $0xc8] sm:$0xff] (%p1457_p1)  ;;  %v1491_v11 = vld [vmem:[#allocation9 + $0xd0] sm:$0xff] (%p1457_p1)  ;;  %vm3534_vm8 = vmmov (%p1457_p1), 0  }
0x230e   :  { %3200 = vmatprep.subr.bf16.mxu0 (%p1457_p1), %v3533_v4  ;;  %v3204_v7 = vpack.c.bf16 (%p1457_p1), %v1489_v6, %v1488_v3  ;;  %v3207_v14 = vpack.c.bf16 (%p1457_p1), %v1491_v11, %v1490_v8  ;;  %v1492_v15 = vld [vmem:[#allocation9 + $0xd8] sm:$0xff] (%p1457_p1)  ;;  %v1493_v16 = vld [vmem:[#allocation9 + $0xe0] sm:$0xff] (%p1457_p1)  ;;  %v1494_v20 = vld [vmem:[#allocation9 + $0xe8] sm:$0xff] (%p1457_p1) }
0x230f   :  { %3202 = vmatpush3.bf16.msra.mxu0 (%p1457_p1), %v3201_v5  ;;  %v3210_v17 = vpack.c.bf16 (%p1457_p1), %v1493_v16, %v1492_v15  ;;  %v1495_v21 = vld [vmem:[#allocation9 + $0xf0] sm:$0xff] (%p1457_p1)  ;;  %v1496_v24 = vld [vmem:[#allocation9 + $0xf8] sm:$0xff] (%p1457_p1)  ;;  %v1497_v25 = vld [vmem:[#allocation9 + $0x100] sm:$0xff] (%p1457_p1) }
0x2310   :  { %3203 = vmatprep.subr.bf16.mxu0 (%p1457_p1), %v3533_v4  ;;  %v3213_v22 = vpack.c.bf16 (%p1457_p1), %v1495_v21, %v1494_v20  ;;  %v3216_v26 = vpack.c.bf16 (%p1457_p1), %v1497_v25, %v1496_v24  ;;  %v1498_v28 = vld [vmem:[#allocation9 + $0x108] sm:$0xff] (%p1457_p1)  ;;  %v1499_v29 = vld [vmem:[#allocation9 + $0x110] sm:$0xff] (%p1457_p1) }
0x2311   :  { %v3219_v18 = vpack.c.bf16 (%p1457_p1), %v1499_v29, %v1498_v28 }
0x2313   :  { %3205 = vmatpush3.bf16.msra.mxu0 (%p1457_p1), %v3204_v7 }
0x2314   :  { %3206 = vmatprep.subr.bf16.mxu0 (%p1457_p1), %v3533_v4 }
0x2317   :  { %3208 = vmatpush3.bf16.msra.mxu0 (%p1457_p1), %v3207_v14 }
0x2318   :  { %3209 = vmatprep.subr.bf16.mxu0 (%p1457_p1), %v3533_v4 }
0x231b   :  { %3211 = vmatpush3.bf16.msra.mxu0 (%p1457_p1), %v3210_v17 }
0x231c   :  { %3212 = vmatprep.subr.bf16.mxu0 (%p1457_p1), %v3533_v4 }
0x231f   :  { %3214 = vmatpush3.bf16.msra.mxu0 (%p1457_p1), %v3213_v22 }
0x2320   :  { %3215 = vmatprep.subr.bf16.mxu0 (%p1457_p1), %v3533_v4 }
0x2323   :  { %3217 = vmatpush3.bf16.msra.mxu0 (%p1457_p1), %v3216_v26 }
0x2324   :  { %3218 = vmatprep.subr.bf16.mxu0 (%p1457_p1), %v3533_v4 }
0x2327   :  { %3220 = vmatpush3.bf16.msra.mxu0 (%p1457_p1), %v3219_v18 }
0x2328   :  { %3221 = vmatprep.subr.bf16.mxu0 (%p1457_p1), %v3533_v4 }
0x23e0   :  { %v1375_v34 = vpop.f32.mrb[0].mxu0 }
0x23e1   :  { %v1381_v35 = vadd.f32 %v1375_v34, %v1340_v31  ;;  %v2890_v36 = vpop.f32.mrb[1].mxu0 }
0x23e2   :  { %v1378_v1 = vpop.f32.mrb[2].mxu0  ;;  %v1501_v36 = vld [vmem:[#allocation9 + $0x120] sm:$0xff] (%p1457_p1) }
0x23e3   :  { %v2891_v38 = vpop.f32.mrb[3].mxu0  ;;  %3413 = vtanh.f32 %v1381_v35  ;;  %v2442_v40 = vmul.f32 -1.442695, %v1381_v35  ;;  %v1500_v35 = vld [vmem:[#allocation9 + $0x118] sm:$0xff] (%p1457_p1) }
0x23e4   :  { %v3222_v1 = vpack.c.bf16 (%p1457_p1), %v1501_v36, %v1500_v35  ;;  %v3535_v38 = vmov (%p1457_p1), 0.0  }
0x23e5   :  { %3415 = vpow2.f32 %v2442_v40  ;;  %2932 = vmatprep.mubr.msk.f32.mxu0 (%p1457_p1), %vm3534_vm8, %v3535_v38 }
0x23e6   :  { %3223 = vmatpush3.bf16.msra.mxu0 (%p1457_p1), %v3222_v1 }
0x23ed   :  { %v3414_v39 = vpop.eup %3413 }
0x23ee   :  { %1391 = vrot.lane.b32.xlu0 %v3414_v39, %s3522_s6 }
0x23ef   :  { %v3416_v41 = vpop.eup %3415 }
0x23f0   :  { %v1385_v42 = vadd.f32 1.0, %v3416_v41 }
0x23f2   :  { %3417 = vrcp.f32 %v1385_v42 }
0x23fc   :  { %v3418_v43 = vpop.eup %3417 }
0x23fd   :  { %v1389_v45 = vmul.f32 %v3418_v43, %v3767_v32 }
0x2460   :  { %v1392_v44 = vpop.permute.xlu0 %1391 }
0x2461   :  { %v1394_v37 = vmul.f32 %v3418_v43, %v1392_v44  ;;  %v3536_v44 = vmov (%p1457_p1), 1.0  }
0x2463   :  { %1396 = vrot.lane.b32.xlu0 %v1394_v37, %s3523_s7 }
0x24d5   :  { %v1397_v46 = vpop.permute.xlu0 %1396 }
0x24d6   :  { %v3799_v47 = vadd.f32 %v1397_v46, %v1389_v45 }
0x24d8   :  { %3419 = vtanh.f32 %v3799_v47 }
0x24e2   :  { %v3420_v48 = vpop.eup %3419 }
0x24e3   :  { %1402 = vrot.lane.b32.xlu1 %v3420_v48, %s3522_s6 }
0x2555   :  { %v1403_v50 = vpop.permute.xlu1 %1402 }
0x2556   :  { %v1405_v52 = vmul.f32 %v3418_v43, %v1403_v50 }
0x2558   :  { %v1406_v53 = vpack.c.bf16 %v1405_v52, %v1405_v52 }
0x255a   :  { %1408 = vrot.lane.b32.xlu1 %v1406_v53, %s3523_s7 }
0x25cc   :  { %v3804_v54 = vpop.permute.xlu1 %1408 }
0x25cd   :  { %2897 = vmatmul.mubr.msk.bf16.vlgmr.msra.gmra.mrb[0].mxu1 %vm282_vm5, %v3804_v54 }
0x269d   :  { %1460 = sbr.rel (!%p1457_p1) target bundleno = 10546 (0x2932), region = 33 }
0x26a0   :  { %v1447_v32 = vpop.f32.mrb[0].mxu1 }
0x26a1   :  { %v1448_v55 = vadd.f32 %v3743_v19, %v1447_v32  ;;  %v2898_v23 = vpop.f32.mrb[1].mxu1 }
0x26a2   :  { %v1450_v56 = vpop.f32.mrb[2].mxu1 }
0x26a3   :  { %1453 = vst [vmem:[#allocation10 + $0x6] sm:$0x3] %v1448_v55  ;;  %v2899_v57 = vpop.f32.mrb[3].mxu1  ;;  %v1461_v58 = vsel (%p1457_p1), %vm862_vm0, %v1448_v55, -1e+30 }
0x26a4   :  { %v1463_v59 = vsel %vm1462_vm3, %v1461_v58, -inf }
0x26a5   :  { %1464 = vmax.xlane.f32.xlu0 %v1463_v59 }
0x2732   :  { %v1465_v27 = vpop.xlane.xlu0 %1464 }
0x2733   :  { %vm1466_vm6 = vcmp.eq.f32.partialorder %v1461_v58, %v1465_v27 }
0x2734   :  { %v1467_v60 = vsel %vm1466_vm6, %v3591_v9, 128 }
0x2735   :  { %v1468_v61 = vsel %vm1462_vm3, %v1467_v60, 2147483647 }
0x2736   :  { %v1470_v62 = vshra.s32 %v1468_v61, 16  ;;  %v1469_v30 = vand.u32 65535, %v1468_v61 }
0x2738   :  { %v1472_v63 = vcvt.s32.f32 %v1470_v62  ;;  %v1471_v33 = vcvt.s32.f32 %v1469_v30 }
0x273a   :  { %1473 = vmin.xlane.f32.xlu0 %v1472_v63 }
0x27c7   :  { %v1474_v31 = vpop.xlane.xlu0 %1473 }
0x27c8   :  { %vm1475_vm7 = vcmp.eq.f32.partialorder %v1472_v63, %v1474_v31  ;;  %v1480_v39 = vcvt.f32.s32 %v1474_v31 }
0x27c9   :  { %v1476_v34 = vsel %vm1475_vm7, %v1471_v33, inf }
0x27ca   :  { %1477 = vmin.xlane.f32.xlu1 %v1476_v34  ;;  %v1481_v41 = vshll.u32 %v1480_v39, 16 }
0x2857   :  { %v1478_v40 = vpop.xlane.xlu1 %1477 }
0x2858   :  { %v1479_v42 = vcvt.f32.s32 %v1478_v40 }
0x285a   :  { %v1482_v43 = vadd.s32 %v1481_v41, %v1479_v42 }
0x285c   :  { %vm1483_vm9 = vcmp.eq.s32.totalorder %v3591_v9, %v1482_v43 }
0x285d   :  { %2933 = vmatmul.mubr.msk.f32.vlgmr.msra.gmra.mrb[0].mxu0 %vm1483_vm9, %v3536_v44 }
0x2930   :  { %v1568_v37 = vpop.f32.mrb[0].mxu0 }
0x2931   :  { %1572 = vst [vmem:[#allocation2] sm:$0x3] %v1568_v37  ;;  %v2934_v45 = vpop.f32.mrb[1].mxu0 }
0x2932 PF:  { %2935 = vmatprep.subr.bf16.mxu0 %v3520_v13  ;;  %2939 = vmatprep.mubr.msk.bf16.mxu0 %vm3521_vm4, %v3520_v13  ;;  %v1687_v48 = vld [vmem:[#allocation4 + $0x8] sm:$0x3]  ;;  %s2450_s15 = sld [smem:[#allocation5 + $0x4]] }
0x2933   :  { %2936 = vmatpush3.bf16.msra.mxu0 %v3711_v49  ;;  %2943 = vmatprep.subr.bf16.mxu1 %v3520_v13 }
0x2934   :  { %2937 = vmatprep.subr.bf16.mxu0 %v3520_v13  ;;  %2944 = vmatpush3.bf16.msra.mxu1 %v3727_v10 }
0x2935   :  { %2945 = vmatprep.subr.bf16.mxu1 %v3520_v13  ;;  %2947 = vmatprep.mubr.msk.bf16.mxu1 %vm3521_vm4, %v3520_v13 }
0x2937   :  { %2938 = vmatpush3.bf16.msra.mxu0 %v3714_v51 }
0x2938   :  { %2946 = vmatpush3.bf16.msra.mxu1 %v3730_v12  ;;  %v1573_v46 = vld [vmem:[#allocation2] sm:$0x3]  ;;  %p1690_p2 = scmp.ge.f32.partialorder %s2450_s15, %s3740_s1 }
0x2939   :  { %1688 = vst [vmem:[#allocation2] sm:$0x3] %v1687_v48  ;;  %vm1695_vm10 = vcmask (%p1690_p2), 1041408   ;;  %v1719_v22 = vld [vmem:[#allocation9 + $0xa8] sm:$0xff] (%p1690_p2)  ;;  %v1720_v24 = vld [vmem:[#allocation9 + $0xb0] sm:$0xff] (%p1690_p2)  ;;  %v1721_v25 = vld [vmem:[#allocation9 + $0xb8] sm:$0xff] (%p1690_p2) }
0x293a   :  { %2940 = vmatmul.mubr.msk.bf16.vlgmr.msra.gmra.mrb[0].mxu0 %vm282_vm5, %v3804_v54  ;;  %v3537_v26 = vmov (%p1690_p2), 0.0|0.0   ;;  %v3225_v28 = vpack.c.bf16 (%p1690_p2), %v1720_v24, %v1719_v22  ;;  %v1722_v29 = vld [vmem:[#allocation9 + $0xc0] sm:$0xff] (%p1690_p2)  ;;  %v1723_v30 = vld [vmem:[#allocation9 + $0xc8] sm:$0xff] (%p1690_p2)  ;;  %v1724_v31 = vld [vmem:[#allocation9 + $0xd0] sm:$0xff] (%p1690_p2)  ;;  %vm3538_vm13 = vmmov (%p1690_p2), 0  }
0x293b   :  { %3224 = vmatprep.subr.bf16.mxu0 (%p1690_p2), %v3537_v26  ;;  %v3228_v18 = vpack.c.bf16 (%p1690_p2), %v1722_v29, %v1721_v25  ;;  %v3231_v33 = vpack.c.bf16 (%p1690_p2), %v1724_v31, %v1723_v30  ;;  %v1725_v34 = vld [vmem:[#allocation9 + $0xd8] sm:$0xff] (%p1690_p2)  ;;  %v1726_v35 = vld [vmem:[#allocation9 + $0xe0] sm:$0xff] (%p1690_p2)  ;;  %v1727_v1 = vld [vmem:[#allocation9 + $0xe8] sm:$0xff] (%p1690_p2) }
0x293c   :  { %3226 = vmatpush3.bf16.msra.mxu0 (%p1690_p2), %v3225_v28  ;;  %v3234_v36 = vpack.c.bf16 (%p1690_p2), %v1726_v35, %v1725_v34  ;;  %v1728_v38 = vld [vmem:[#allocation9 + $0xf0] sm:$0xff] (%p1690_p2)  ;;  %v1729_v40 = vld [vmem:[#allocation9 + $0xf8] sm:$0xff] (%p1690_p2)  ;;  %v1730_v41 = vld [vmem:[#allocation9 + $0x100] sm:$0xff] (%p1690_p2) }
0x293d   :  { %3227 = vmatprep.subr.bf16.mxu0 (%p1690_p2), %v3537_v26  ;;  %v3237_v39 = vpack.c.bf16 (%p1690_p2), %v1728_v38, %v1727_v1  ;;  %v3240_v42 = vpack.c.bf16 (%p1690_p2), %v1730_v41, %v1729_v40  ;;  %v1731_v43 = vld [vmem:[#allocation9 + $0x108] sm:$0xff] (%p1690_p2)  ;;  %v1732_v44 = vld [vmem:[#allocation9 + $0x110] sm:$0xff] (%p1690_p2) }
0x293e   :  { %v3243_v37 = vpack.c.bf16 (%p1690_p2), %v1732_v44, %v1731_v43 }
0x2940   :  { %3229 = vmatpush3.bf16.msra.mxu0 (%p1690_p2), %v3228_v18 }
0x2941   :  { %3230 = vmatprep.subr.bf16.mxu0 (%p1690_p2), %v3537_v26 }
0x2944   :  { %3232 = vmatpush3.bf16.msra.mxu0 (%p1690_p2), %v3231_v33 }
0x2945   :  { %3233 = vmatprep.subr.bf16.mxu0 (%p1690_p2), %v3537_v26 }
0x2948   :  { %3235 = vmatpush3.bf16.msra.mxu0 (%p1690_p2), %v3234_v36 }
0x2949   :  { %3236 = vmatprep.subr.bf16.mxu0 (%p1690_p2), %v3537_v26 }
0x294c   :  { %3238 = vmatpush3.bf16.msra.mxu0 (%p1690_p2), %v3237_v39 }
0x294d   :  { %3239 = vmatprep.subr.bf16.mxu0 (%p1690_p2), %v3537_v26 }
0x2950   :  { %3241 = vmatpush3.bf16.msra.mxu0 (%p1690_p2), %v3240_v42 }
0x2951   :  { %3242 = vmatprep.subr.bf16.mxu0 (%p1690_p2), %v3537_v26 }
0x2954   :  { %3244 = vmatpush3.bf16.msra.mxu0 (%p1690_p2), %v3243_v37 }
0x2955   :  { %3245 = vmatprep.subr.bf16.mxu0 (%p1690_p2), %v3537_v26 }
0x2a0d   :  { %v1608_v50 = vpop.f32.mrb[0].mxu0 }
0x2a0e   :  { %v1614_v52 = vadd.f32 %v1608_v50, %v1573_v46  ;;  %v2941_v53 = vpop.f32.mrb[1].mxu0 }
0x2a0f   :  { %v1611_v32 = vpop.f32.mrb[2].mxu0  ;;  %v1734_v53 = vld [vmem:[#allocation9 + $0x120] sm:$0xff] (%p1690_p2) }
0x2a10   :  { %v2942_v55 = vpop.f32.mrb[3].mxu0  ;;  %3421 = vtanh.f32 %v1614_v52  ;;  %v2448_v56 = vmul.f32 -1.442695, %v1614_v52  ;;  %v1733_v52 = vld [vmem:[#allocation9 + $0x118] sm:$0xff] (%p1690_p2) }
0x2a11   :  { %v3246_v32 = vpack.c.bf16 (%p1690_p2), %v1734_v53, %v1733_v52  ;;  %v3539_v55 = vmov (%p1690_p2), 0.0  }
0x2a12   :  { %3423 = vpow2.f32 %v2448_v56  ;;  %2983 = vmatprep.mubr.msk.f32.mxu0 (%p1690_p2), %vm3538_vm13, %v3539_v55 }
0x2a13   :  { %3247 = vmatpush3.bf16.msra.mxu0 (%p1690_p2), %v3246_v32 }
0x2a1a   :  { %v3422_v23 = vpop.eup %3421 }
0x2a1b   :  { %1624 = vrot.lane.b32.xlu0 %v3422_v23, %s3522_s6 }
0x2a1c   :  { %v3424_v57 = vpop.eup %3423 }
0x2a1d   :  { %v1618_v58 = vadd.f32 1.0, %v3424_v57 }
0x2a1f   :  { %3425 = vrcp.f32 %v1618_v58 }
0x2a29   :  { %v3426_v59 = vpop.eup %3425 }
0x2a2a   :  { %v1622_v60 = vmul.f32 %v3426_v59, %v3799_v47 }
0x2a8d   :  { %v1625_v27 = vpop.permute.xlu0 %1624 }
0x2a8e   :  { %v1627_v54 = vmul.f32 %v3426_v59, %v1625_v27  ;;  %v3540_v27 = vmov (%p1690_p2), 1.0  }
0x2a90   :  { %1629 = vrot.lane.b32.xlu0 %v1627_v54, %s3523_s7 }
0x2b02   :  { %v1630_v61 = vpop.permute.xlu0 %1629 }
0x2b03   :  { %v3831_v62 = vadd.f32 %v1630_v61, %v1622_v60 }
0x2b05   :  { %3427 = vtanh.f32 %v3831_v62 }
0x2b0f   :  { %v3428_v63 = vpop.eup %3427 }
0x2b10   :  { %1635 = vrot.lane.b32.xlu1 %v3428_v63, %s3522_s6 }
0x2b82   :  { %v1636_v0 = vpop.permute.xlu1 %1635 }
0x2b83   :  { %v1638_v2 = vmul.f32 %v3426_v59, %v1636_v0 }
0x2b85   :  { %v1639_v3 = vpack.c.bf16 %v1638_v2, %v1638_v2 }
0x2b87   :  { %1641 = vrot.lane.b32.xlu1 %v1639_v3, %s3523_s7 }
0x2bf9   :  { %v3836_v4 = vpop.permute.xlu1 %1641 }
0x2bfa   :  { %2948 = vmatmul.mubr.msk.bf16.vlgmr.msra.gmra.mrb[0].mxu1 %vm282_vm5, %v3836_v4 }
0x2cca   :  { %1693 = sbr.rel (!%p1690_p2) target bundleno = 12127 (0x2f5f), region = 37 }
0x2ccd   :  { %v1680_v47 = vpop.f32.mrb[0].mxu1 }
0x2cce   :  { %v1681_v5 = vadd.f32 %v3743_v19, %v1680_v47  ;;  %v2949_v6 = vpop.f32.mrb[1].mxu1 }
0x2ccf   :  { %v1683_v7 = vpop.f32.mrb[2].mxu1 }
0x2cd0   :  { %1686 = vst [vmem:[#allocation10 + $0x8] sm:$0x3] %v1681_v5  ;;  %v2950_v8 = vpop.f32.mrb[3].mxu1  ;;  %v1694_v11 = vsel (%p1690_p2), %vm862_vm0, %v1681_v5, -1e+30 }
0x2cd1   :  { %v1696_v14 = vsel %vm1695_vm10, %v1694_v11, -inf }
0x2cd2   :  { %1697 = vmax.xlane.f32.xlu0 %v1696_v14 }
0x2d5f   :  { %v1698_v15 = vpop.xlane.xlu0 %1697 }
0x2d60   :  { %vm1699_vm11 = vcmp.eq.f32.partialorder %v1694_v11, %v1698_v15 }
0x2d61   :  { %v1700_v16 = vsel %vm1699_vm11, %v3591_v9, 128 }
0x2d62   :  { %v1701_v17 = vsel %vm1695_vm10, %v1700_v16, 2147483647 }
0x2d63   :  { %v1703_v20 = vshra.s32 %v1701_v17, 16  ;;  %v1702_v45 = vand.u32 65535, %v1701_v17 }
0x2d65   :  { %v1705_v21 = vcvt.s32.f32 %v1703_v20  ;;  %v1704_v48 = vcvt.s32.f32 %v1702_v45 }
0x2d67   :  { %1706 = vmin.xlane.f32.xlu0 %v1705_v21 }
0x2df4   :  { %v1707_v46 = vpop.xlane.xlu0 %1706 }
0x2df5   :  { %vm1708_vm12 = vcmp.eq.f32.partialorder %v1705_v21, %v1707_v46  ;;  %v1713_v23 = vcvt.f32.s32 %v1707_v46 }
0x2df6   :  { %v1709_v50 = vsel %vm1708_vm12, %v1704_v48, inf }
0x2df7   :  { %1710 = vmin.xlane.f32.xlu1 %v1709_v50  ;;  %v1714_v57 = vshll.u32 %v1713_v23, 16 }
0x2e84   :  { %v1711_v56 = vpop.xlane.xlu1 %1710 }
0x2e85   :  { %v1712_v58 = vcvt.f32.s32 %v1711_v56 }
0x2e87   :  { %v1715_v59 = vadd.s32 %v1714_v57, %v1712_v58 }
0x2e89   :  { %vm1716_vm14 = vcmp.eq.s32.totalorder %v3591_v9, %v1715_v59 }
0x2e8a   :  { %2984 = vmatmul.mubr.msk.f32.vlgmr.msra.gmra.mrb[0].mxu0 %vm1716_vm14, %v3540_v27 }
0x2f5d   :  { %v1801_v54 = vpop.f32.mrb[0].mxu0 }
0x2f5e   :  { %1805 = vst [vmem:[#allocation2] sm:$0x3] %v1801_v54  ;;  %v2985_v60 = vpop.f32.mrb[1].mxu0 }
0x2f5f PF:  { %2986 = vmatprep.subr.bf16.mxu0 %v3520_v13  ;;  %2990 = vmatprep.mubr.msk.bf16.mxu0 %vm3521_vm4, %v3520_v13  ;;  %v1920_v63 = vld [vmem:[#allocation4 + $0xa] sm:$0x3]  ;;  %s2456_s16 = sld [smem:[#allocation5 + $0x5]] }
0x2f60   :  { %2987 = vmatpush3.bf16.msra.mxu0 %v3711_v49  ;;  %2994 = vmatprep.subr.bf16.mxu1 %v3520_v13 }
0x2f61   :  { %2988 = vmatprep.subr.bf16.mxu0 %v3520_v13  ;;  %2995 = vmatpush3.bf16.msra.mxu1 %v3727_v10 }
0x2f62   :  { %2996 = vmatprep.subr.bf16.mxu1 %v3520_v13  ;;  %2998 = vmatprep.mubr.msk.bf16.mxu1 %vm3521_vm4, %v3520_v13 }
0x2f64   :  { %2989 = vmatpush3.bf16.msra.mxu0 %v3714_v51 }
0x2f65   :  { %2997 = vmatpush3.bf16.msra.mxu1 %v3730_v12  ;;  %v1806_v61 = vld [vmem:[#allocation2] sm:$0x3]  ;;  %p1923_p3 = scmp.ge.f32.partialorder %s2456_s16, %s3740_s1 }
0x2f66   :  { %1921 = vst [vmem:[#allocation2] sm:$0x3] %v1920_v63  ;;  %vm1928_vm15 = vcmask (%p1923_p3), 1041408   ;;  %v1952_v39 = vld [vmem:[#allocation9 + $0xa8] sm:$0xff] (%p1923_p3)  ;;  %v1953_v40 = vld [vmem:[#allocation9 + $0xb0] sm:$0xff] (%p1923_p3)  ;;  %v1954_v41 = vld [vmem:[#allocation9 + $0xb8] sm:$0xff] (%p1923_p3) }
0x2f67   :  { %2991 = vmatmul.mubr.msk.bf16.vlgmr.msra.gmra.mrb[0].mxu0 %vm282_vm5, %v3836_v4  ;;  %v3541_v42 = vmov (%p1923_p3), 0.0|0.0   ;;  %v3249_v43 = vpack.c.bf16 (%p1923_p3), %v1953_v40, %v1952_v39  ;;  %v1955_v44 = vld [vmem:[#allocation9 + $0xc0] sm:$0xff] (%p1923_p3)  ;;  %v1956_v45 = vld [vmem:[#allocation9 + $0xc8] sm:$0xff] (%p1923_p3)  ;;  %v1957_v46 = vld [vmem:[#allocation9 + $0xd0] sm:$0xff] (%p1923_p3)  ;;  %vm3542_vm3 = vmmov (%p1923_p3), 0  }
0x2f68   :  { %3248 = vmatprep.subr.bf16.mxu0 (%p1923_p3), %v3541_v42  ;;  %v3252_v37 = vpack.c.bf16 (%p1923_p3), %v1955_v44, %v1954_v41  ;;  %v3255_v48 = vpack.c.bf16 (%p1923_p3), %v1957_v46, %v1956_v45  ;;  %v1958_v50 = vld [vmem:[#allocation9 + $0xd8] sm:$0xff] (%p1923_p3)  ;;  %v1959_v52 = vld [vmem:[#allocation9 + $0xe0] sm:$0xff] (%p1923_p3)  ;;  %v1960_v32 = vld [vmem:[#allocation9 + $0xe8] sm:$0xff] (%p1923_p3) }
0x2f69   :  { %3250 = vmatpush3.bf16.msra.mxu0 (%p1923_p3), %v3249_v43  ;;  %v3258_v53 = vpack.c.bf16 (%p1923_p3), %v1959_v52, %v1958_v50  ;;  %v1961_v55 = vld [vmem:[#allocation9 + $0xf0] sm:$0xff] (%p1923_p3)  ;;  %v1962_v56 = vld [vmem:[#allocation9 + $0xf8] sm:$0xff] (%p1923_p3)  ;;  %v1963_v57 = vld [vmem:[#allocation9 + $0x100] sm:$0xff] (%p1923_p3) }
0x2f6a   :  { %3251 = vmatprep.subr.bf16.mxu0 (%p1923_p3), %v3541_v42  ;;  %v3261_v23 = vpack.c.bf16 (%p1923_p3), %v1961_v55, %v1960_v32  ;;  %v3264_v58 = vpack.c.bf16 (%p1923_p3), %v1963_v57, %v1962_v56  ;;  %v1964_v59 = vld [vmem:[#allocation9 + $0x108] sm:$0xff] (%p1923_p3)  ;;  %v1965_v27 = vld [vmem:[#allocation9 + $0x110] sm:$0xff] (%p1923_p3) }
0x2f6b   :  { %v3267_v54 = vpack.c.bf16 (%p1923_p3), %v1965_v27, %v1964_v59 }
0x2f6d   :  { %3253 = vmatpush3.bf16.msra.mxu0 (%p1923_p3), %v3252_v37 }
0x2f6e   :  { %3254 = vmatprep.subr.bf16.mxu0 (%p1923_p3), %v3541_v42 }
0x2f71   :  { %3256 = vmatpush3.bf16.msra.mxu0 (%p1923_p3), %v3255_v48 }
0x2f72   :  { %3257 = vmatprep.subr.bf16.mxu0 (%p1923_p3), %v3541_v42 }
0x2f75   :  { %3259 = vmatpush3.bf16.msra.mxu0 (%p1923_p3), %v3258_v53 }
0x2f76   :  { %3260 = vmatprep.subr.bf16.mxu0 (%p1923_p3), %v3541_v42 }
0x2f79   :  { %3262 = vmatpush3.bf16.msra.mxu0 (%p1923_p3), %v3261_v23 }
0x2f7a   :  { %3263 = vmatprep.subr.bf16.mxu0 (%p1923_p3), %v3541_v42 }
0x2f7d   :  { %3265 = vmatpush3.bf16.msra.mxu0 (%p1923_p3), %v3264_v58 }
0x2f7e   :  { %3266 = vmatprep.subr.bf16.mxu0 (%p1923_p3), %v3541_v42 }
0x2f81   :  { %3268 = vmatpush3.bf16.msra.mxu0 (%p1923_p3), %v3267_v54 }
0x2f82   :  { %3269 = vmatprep.subr.bf16.mxu0 (%p1923_p3), %v3541_v42 }
0x303a   :  { %v1841_v0 = vpop.f32.mrb[0].mxu0 }
0x303b   :  { %v1847_v2 = vadd.f32 %v1841_v0, %v1806_v61  ;;  %v2992_v3 = vpop.f32.mrb[1].mxu0 }
0x303c   :  { %v1844_v47 = vpop.f32.mrb[2].mxu0  ;;  %v1967_v3 = vld [vmem:[#allocation9 + $0x120] sm:$0xff] (%p1923_p3) }
0x303d   :  { %v2993_v5 = vpop.f32.mrb[3].mxu0  ;;  %3429 = vtanh.f32 %v1847_v2  ;;  %v2454_v7 = vmul.f32 -1.442695, %v1847_v2  ;;  %v1966_v2 = vld [vmem:[#allocation9 + $0x118] sm:$0xff] (%p1923_p3) }
0x303e   :  { %v3270_v47 = vpack.c.bf16 (%p1923_p3), %v1967_v3, %v1966_v2  ;;  %v3543_v5 = vmov (%p1923_p3), 0.0  }
0x303f   :  { %3431 = vpow2.f32 %v2454_v7  ;;  %3034 = vmatprep.mubr.msk.f32.mxu0 (%p1923_p3), %vm3542_vm3, %v3543_v5 }
0x3040   :  { %3271 = vmatpush3.bf16.msra.mxu0 (%p1923_p3), %v3270_v47 }
0x3047   :  { %v3430_v6 = vpop.eup %3429 }
0x3048   :  { %1857 = vrot.lane.b32.xlu0 %v3430_v6, %s3522_s6 }
0x3049   :  { %v3432_v8 = vpop.eup %3431 }
0x304a   :  { %v1851_v11 = vadd.f32 1.0, %v3432_v8 }
0x304c   :  { %3433 = vrcp.f32 %v1851_v11 }
0x3056   :  { %v3434_v14 = vpop.eup %3433 }
0x3057   :  { %v1855_v16 = vmul.f32 %v3434_v14, %v3831_v62 }
0x30ba   :  { %v1858_v15 = vpop.permute.xlu0 %1857 }
0x30bb   :  { %v1860_v4 = vmul.f32 %v3434_v14, %v1858_v15  ;;  %v3544_v15 = vmov (%p1923_p3), 1.0  }
0x30bd   :  { %1862 = vrot.lane.b32.xlu0 %v1860_v4, %s3523_s7 }
0x312f   :  { %v1863_v17 = vpop.permute.xlu0 %1862 }
0x3130   :  { %v3863_v20 = vadd.f32 %v1863_v17, %v1855_v16 }
0x3132   :  { %3435 = vtanh.f32 %v3863_v20 }
0x313c   :  { %v3436_v21 = vpop.eup %3435 }
0x313d   :  { %1868 = vrot.lane.b32.xlu1 %v3436_v21, %s3522_s6 }
0x31af   :  { %v1869_v22 = vpop.permute.xlu1 %1868 }
0x31b0   :  { %v1871_v24 = vmul.f32 %v3434_v14, %v1869_v22 }
0x31b2   :  { %v1872_v25 = vpack.c.bf16 %v1871_v24, %v1871_v24 }
0x31b4   :  { %1874 = vrot.lane.b32.xlu1 %v1872_v25, %s3523_s7 }
0x3226   :  { %v3868_v26 = vpop.permute.xlu1 %1874 }
0x3227   :  { %2999 = vmatmul.mubr.msk.bf16.vlgmr.msra.gmra.mrb[0].mxu1 %vm282_vm5, %v3868_v26 }
0x32f7   :  { %1926 = sbr.rel (!%p1923_p3) target bundleno = 13708 (0x358c), region = 41 }
0x32fa   :  { %v1913_v62 = vpop.f32.mrb[0].mxu1 }
0x32fb   :  { %v1914_v28 = vadd.f32 %v3743_v19, %v1913_v62  ;;  %v3000_v29 = vpop.f32.mrb[1].mxu1 }
0x32fc   :  { %v1916_v18 = vpop.f32.mrb[2].mxu1 }
0x32fd   :  { %1919 = vst [vmem:[#allocation10 + $0xa] sm:$0x3] %v1914_v28  ;;  %v3001_v30 = vpop.f32.mrb[3].mxu1  ;;  %v1927_v31 = vsel (%p1923_p3), %vm862_vm0, %v1914_v28, -1e+30 }
0x32fe   :  { %v1929_v33 = vsel %vm1928_vm15, %v1927_v31, -inf }
0x32ff   :  { %1930 = vmax.xlane.f32.xlu0 %v1929_v33 }
0x338c   :  { %v1931_v34 = vpop.xlane.xlu0 %1930 }
0x338d   :  { %vm1932_vm1 = vcmp.eq.f32.partialorder %v1927_v31, %v1931_v34 }
0x338e   :  { %v1933_v35 = vsel %vm1932_vm1, %v3591_v9, 128 }
0x338f   :  { %v1934_v36 = vsel %vm1928_vm15, %v1933_v35, 2147483647 }
0x3390   :  { %v1936_v1 = vshra.s32 %v1934_v36, 16  ;;  %v1935_v60 = vand.u32 65535, %v1934_v36 }
0x3392   :  { %v1938_v38 = vcvt.s32.f32 %v1936_v1  ;;  %v1937_v63 = vcvt.s32.f32 %v1935_v60 }
0x3394   :  { %1939 = vmin.xlane.f32.xlu0 %v1938_v38 }
0x3421   :  { %v1940_v61 = vpop.xlane.xlu0 %1939 }
0x3422   :  { %vm1941_vm2 = vcmp.eq.f32.partialorder %v1938_v38, %v1940_v61  ;;  %v1946_v6 = vcvt.f32.s32 %v1940_v61 }
0x3423   :  { %v1942_v0 = vsel %vm1941_vm2, %v1937_v63, inf }
0x3424   :  { %1943 = vmin.xlane.f32.xlu1 %v1942_v0  ;;  %v1947_v8 = vshll.u32 %v1946_v6, 16 }
0x34b1   :  { %v1944_v7 = vpop.xlane.xlu1 %1943 }
0x34b2   :  { %v1945_v11 = vcvt.f32.s32 %v1944_v7 }
0x34b4   :  { %v1948_v14 = vadd.s32 %v1947_v8, %v1945_v11 }
0x34b6   :  { %vm1949_vm6 = vcmp.eq.s32.totalorder %v3591_v9, %v1948_v14 }
0x34b7   :  { %3035 = vmatmul.mubr.msk.f32.vlgmr.msra.gmra.mrb[0].mxu0 %vm1949_vm6, %v3544_v15 }
0x358a   :  { %v2034_v4 = vpop.f32.mrb[0].mxu0 }
0x358b   :  { %2038 = vst [vmem:[#allocation2] sm:$0x3] %v2034_v4  ;;  %v3036_v16 = vpop.f32.mrb[1].mxu0 }
0x358c PF:  { %3037 = vmatprep.subr.bf16.mxu0 %v3520_v13  ;;  %3041 = vmatprep.mubr.msk.bf16.mxu0 %vm3521_vm4, %v3520_v13  ;;  %v2153_v21 = vld [vmem:[#allocation4 + $0xc] sm:$0x3]  ;;  %s2462_s17 = sld [smem:[#allocation5 + $0x6]] }
0x358d   :  { %3038 = vmatpush3.bf16.msra.mxu0 %v3711_v49  ;;  %3045 = vmatprep.subr.bf16.mxu1 %v3520_v13 }
0x358e   :  { %3039 = vmatprep.subr.bf16.mxu0 %v3520_v13  ;;  %3046 = vmatpush3.bf16.msra.mxu1 %v3727_v10 }
0x358f   :  { %3047 = vmatprep.subr.bf16.mxu1 %v3520_v13  ;;  %3049 = vmatprep.mubr.msk.bf16.mxu1 %vm3521_vm4, %v3520_v13 }
0x3591   :  { %3040 = vmatpush3.bf16.msra.mxu0 %v3714_v51 }
0x3592   :  { %3048 = vmatpush3.bf16.msra.mxu1 %v3730_v12  ;;  %v2039_v17 = vld [vmem:[#allocation2] sm:$0x3]  ;;  %p2156_p4 = scmp.ge.f32.partialorder %s2462_s17, %s3740_s1 }
0x3593   :  { %2154 = vst [vmem:[#allocation2] sm:$0x3] %v2153_v21  ;;  %vm2161_vm7 = vcmask (%p2156_p4), 1041408   ;;  %v2185_v23 = vld [vmem:[#allocation9 + $0xa8] sm:$0xff] (%p2156_p4)  ;;  %v2186_v56 = vld [vmem:[#allocation9 + $0xb0] sm:$0xff] (%p2156_p4)  ;;  %v2187_v57 = vld [vmem:[#allocation9 + $0xb8] sm:$0xff] (%p2156_p4) }
0x3594   :  { %3042 = vmatmul.mubr.msk.bf16.vlgmr.msra.gmra.mrb[0].mxu0 %vm282_vm5, %v3868_v26  ;;  %v3545_v58 = vmov (%p2156_p4), 0.0|0.0   ;;  %v3273_v59 = vpack.c.bf16 (%p2156_p4), %v2186_v56, %v2185_v23  ;;  %v2188_v27 = vld [vmem:[#allocation9 + $0xc0] sm:$0xff] (%p2156_p4)  ;;  %v2189_v60 = vld [vmem:[#allocation9 + $0xc8] sm:$0xff] (%p2156_p4)  ;;  %v2190_v61 = vld [vmem:[#allocation9 + $0xd0] sm:$0xff] (%p2156_p4)  ;;  %vm3546_vm9 = vmmov (%p2156_p4), 0  }
0x3595   :  { %3272 = vmatprep.subr.bf16.mxu0 (%p2156_p4), %v3545_v58  ;;  %v3276_v54 = vpack.c.bf16 (%p2156_p4), %v2188_v27, %v2187_v57  ;;  %v3279_v63 = vpack.c.bf16 (%p2156_p4), %v2190_v61, %v2189_v60  ;;  %v2191_v0 = vld [vmem:[#allocation9 + $0xd8] sm:$0xff] (%p2156_p4)  ;;  %v2192_v2 = vld [vmem:[#allocation9 + $0xe0] sm:$0xff] (%p2156_p4)  ;;  %v2193_v47 = vld [vmem:[#allocation9 + $0xe8] sm:$0xff] (%p2156_p4) }
0x3596   :  { %3274 = vmatpush3.bf16.msra.mxu0 (%p2156_p4), %v3273_v59  ;;  %v3282_v3 = vpack.c.bf16 (%p2156_p4), %v2192_v2, %v2191_v0  ;;  %v2194_v5 = vld [vmem:[#allocation9 + $0xf0] sm:$0xff] (%p2156_p4)  ;;  %v2195_v7 = vld [vmem:[#allocation9 + $0xf8] sm:$0xff] (%p2156_p4)  ;;  %v2196_v8 = vld [vmem:[#allocation9 + $0x100] sm:$0xff] (%p2156_p4) }
0x3597   :  { %3275 = vmatprep.subr.bf16.mxu0 (%p2156_p4), %v3545_v58  ;;  %v3285_v6 = vpack.c.bf16 (%p2156_p4), %v2194_v5, %v2193_v47  ;;  %v3288_v11 = vpack.c.bf16 (%p2156_p4), %v2196_v8, %v2195_v7  ;;  %v2197_v14 = vld [vmem:[#allocation9 + $0x108] sm:$0xff] (%p2156_p4)  ;;  %v2198_v15 = vld [vmem:[#allocation9 + $0x110] sm:$0xff] (%p2156_p4) }
0x3598   :  { %v3291_v4 = vpack.c.bf16 (%p2156_p4), %v2198_v15, %v2197_v14 }
0x359a   :  { %3277 = vmatpush3.bf16.msra.mxu0 (%p2156_p4), %v3276_v54 }
0x359b   :  { %3278 = vmatprep.subr.bf16.mxu0 (%p2156_p4), %v3545_v58 }
0x359e   :  { %3280 = vmatpush3.bf16.msra.mxu0 (%p2156_p4), %v3279_v63 }
0x359f   :  { %3281 = vmatprep.subr.bf16.mxu0 (%p2156_p4), %v3545_v58 }
0x35a2   :  { %3283 = vmatpush3.bf16.msra.mxu0 (%p2156_p4), %v3282_v3 }
0x35a3   :  { %3284 = vmatprep.subr.bf16.mxu0 (%p2156_p4), %v3545_v58 }
0x35a6   :  { %3286 = vmatpush3.bf16.msra.mxu0 (%p2156_p4), %v3285_v6 }
0x35a7   :  { %3287 = vmatprep.subr.bf16.mxu0 (%p2156_p4), %v3545_v58 }
0x35aa   :  { %3289 = vmatpush3.bf16.msra.mxu0 (%p2156_p4), %v3288_v11 }
0x35ab   :  { %3290 = vmatprep.subr.bf16.mxu0 (%p2156_p4), %v3545_v58 }
0x35ae   :  { %3292 = vmatpush3.bf16.msra.mxu0 (%p2156_p4), %v3291_v4 }
0x35af   :  { %3293 = vmatprep.subr.bf16.mxu0 (%p2156_p4), %v3545_v58 }
0x3667   :  { %v2074_v22 = vpop.f32.mrb[0].mxu0 }
0x3668   :  { %v2080_v24 = vadd.f32 %v2074_v22, %v2039_v17  ;;  %v3043_v25 = vpop.f32.mrb[1].mxu0 }
0x3669   :  { %v2077_v62 = vpop.f32.mrb[2].mxu0  ;;  %v2200_v25 = vld [vmem:[#allocation9 + $0x120] sm:$0xff] (%p2156_p4) }
0x366a   :  { %v3044_v28 = vpop.f32.mrb[3].mxu0  ;;  %3437 = vtanh.f32 %v2080_v24  ;;  %v2460_v18 = vmul.f32 -1.442695, %v2080_v24  ;;  %v2199_v24 = vld [vmem:[#allocation9 + $0x118] sm:$0xff] (%p2156_p4) }
0x366b   :  { %v3294_v62 = vpack.c.bf16 (%p2156_p4), %v2200_v25, %v2199_v24  ;;  %v3547_v28 = vmov (%p2156_p4), 0.0  }
0x366c   :  { %3439 = vpow2.f32 %v2460_v18  ;;  %3085 = vmatprep.mubr.msk.f32.mxu0 (%p2156_p4), %vm3546_vm9, %v3547_v28 }
0x366d   :  { %3295 = vmatpush3.bf16.msra.mxu0 (%p2156_p4), %v3294_v62 }
0x3674   :  { %v3438_v29 = vpop.eup %3437 }
0x3675   :  { %2090 = vrot.lane.b32.xlu0 %v3438_v29, %s3522_s6 }
0x3676   :  { %v3440_v30 = vpop.eup %3439 }
0x3677   :  { %v2084_v31 = vadd.f32 1.0, %v3440_v30 }
0x3679   :  { %3441 = vrcp.f32 %v2084_v31 }
0x3683   :  { %v3442_v33 = vpop.eup %3441 }
0x3684   :  { %v2088_v35 = vmul.f32 %v3442_v33, %v3863_v20 }
0x36e7   :  { %v2091_v34 = vpop.permute.xlu0 %2090 }
0x36e8   :  { %v2093_v26 = vmul.f32 %v3442_v33, %v2091_v34  ;;  %v3548_v34 = vmov (%p2156_p4), 1.0  }
0x36ea   :  { %2095 = vrot.lane.b32.xlu0 %v2093_v26, %s3523_s7 }
0x375c   :  { %v2096_v36 = vpop.permute.xlu0 %2095 }
0x375d   :  { %v3895_v1 = vadd.f32 %v2096_v36, %v2088_v35 }
0x375f   :  { %3443 = vtanh.f32 %v3895_v1 }
0x3769   :  { %v3444_v38 = vpop.eup %3443 }
0x376a   :  { %2101 = vrot.lane.b32.xlu1 %v3444_v38, %s3522_s6 }
0x37dc   :  { %v2102_v39 = vpop.permute.xlu1 %2101 }
0x37dd   :  { %v2104_v40 = vmul.f32 %v3442_v33, %v2102_v39 }
0x37df   :  { %v2105_v41 = vpack.c.bf16 %v2104_v40, %v2104_v40 }
0x37e1   :  { %2107 = vrot.lane.b32.xlu1 %v2105_v41, %s3523_s7 }
0x3853   :  { %v3900_v42 = vpop.permute.xlu1 %2107 }
0x3854   :  { %3050 = vmatmul.mubr.msk.bf16.vlgmr.msra.gmra.mrb[0].mxu1 %vm282_vm5, %v3900_v42 }
0x3924   :  { %2159 = sbr.rel (!%p2156_p4) target bundleno = 15289 (0x3bb9), region = 45 }
0x3927   :  { %v2146_v20 = vpop.f32.mrb[0].mxu1 }
0x3928   :  { %v2147_v43 = vadd.f32 %v3743_v19, %v2146_v20  ;;  %v3051_v44 = vpop.f32.mrb[1].mxu1 }
0x3929   :  { %v2149_v37 = vpop.f32.mrb[2].mxu1 }
0x392a   :  { %2152 = vst [vmem:[#allocation10 + $0xc] sm:$0x3] %v2147_v43  ;;  %v3052_v45 = vpop.f32.mrb[3].mxu1  ;;  %v2160_v46 = vsel (%p2156_p4), %vm862_vm0, %v2147_v43, -1e+30 }
0x392b   :  { %v2162_v48 = vsel %vm2161_vm7, %v2160_v46, -inf }
0x392c   :  { %2163 = vmax.xlane.f32.xlu0 %v2162_v48 }
0x39b9   :  { %v2164_v50 = vpop.xlane.xlu0 %2163 }
0x39ba   :  { %vm2165_vm8 = vcmp.eq.f32.partialorder %v2160_v46, %v2164_v50 }
0x39bb   :  { %v2166_v52 = vsel %vm2165_vm8, %v3591_v9, 128 }
0x39bc   :  { %v2167_v53 = vsel %vm2161_vm7, %v2166_v52, 2147483647 }
0x39bd   :  { %v2169_v32 = vshra.s32 %v2167_v53, 16  ;;  %v2168_v16 = vand.u32 65535, %v2167_v53 }
0x39bf   :  { %v2171_v55 = vcvt.s32.f32 %v2169_v32  ;;  %v2170_v21 = vcvt.s32.f32 %v2168_v16 }
0x39c1   :  { %2172 = vmin.xlane.f32.xlu0 %v2171_v55 }
0x3a4e   :  { %v2173_v17 = vpop.xlane.xlu0 %2172 }
0x3a4f   :  { %vm2174_vm0 = vcmp.eq.f32.partialorder %v2171_v55, %v2173_v17  ;;  %v2179_v29 = vcvt.f32.s32 %v2173_v17 }
0x3a50   :  { %v2175_v22 = vsel %vm2174_vm0, %v2170_v21, inf }
0x3a51   :  { %2176 = vmin.xlane.f32.xlu1 %v2175_v22  ;;  %v2180_v30 = vshll.u32 %v2179_v29, 16 }
0x3ade   :  { %v2177_v18 = vpop.xlane.xlu1 %2176 }
0x3adf   :  { %v2178_v31 = vcvt.f32.s32 %v2177_v18 }
0x3ae1   :  { %v2181_v33 = vadd.s32 %v2180_v30, %v2178_v31 }
0x3ae3   :  { %vm2182_vm10 = vcmp.eq.s32.totalorder %v3591_v9, %v2181_v33 }
0x3ae4   :  { %3086 = vmatmul.mubr.msk.f32.vlgmr.msra.gmra.mrb[0].mxu0 %vm2182_vm10, %v3548_v34 }
0x3bb7   :  { %v2267_v26 = vpop.f32.mrb[0].mxu0 }
0x3bb8   :  { %2271 = vst [vmem:[#allocation2] sm:$0x3] %v2267_v26  ;;  %v3087_v35 = vpop.f32.mrb[1].mxu0 }
0x3bb9 PF:  { %3088 = vmatprep.subr.bf16.mxu0 %v3520_v13  ;;  %3092 = vmatprep.mubr.msk.bf16.mxu0 %vm3521_vm4, %v3520_v13  ;;  %s3549_s18 = smov [#allocation10]  }
0x3bba   :  { %3089 = vmatpush3.bf16.msra.mxu0 %v3711_v49  ;;  %3096 = vmatprep.subr.bf16.mxu1 %v3520_v13  ;;  %s2391_s19 = sshll.u32 %s3549_s18, 4  ;;  %s2392_s19 = int_to_ptr.vmem [resolvable:$true] %s2391_s19 }
0x3bbb   :  { %3090 = vmatprep.subr.bf16.mxu0 %v3520_v13  ;;  %3097 = vmatpush3.bf16.msra.mxu1 %v3727_v10  ;;  %s3487_s20 = scalar_lea.vmem %s2392_s19, 256  ;;  %p3492_p6 = scmp.lt.s32.totalorder %s2392_s19, %s2392_s19 }
0x3bbc   :  { %3098 = vmatprep.subr.bf16.mxu1 %v3520_v13  ;;  %3100 = vmatprep.mubr.msk.bf16.mxu1 %vm3521_vm4, %v3520_v13  ;;  %p3488_p5 = scmp.ne.s32.totalorder %s2392_s19, %s3487_s20  ;;  %p3493_p7 = scmp.lt.s32.totalorder %s3487_s20, %s3487_s20 }
0x3bbe   :  { %3091 = vmatpush3.bf16.msra.mxu0 %v3714_v51  ;;  %p3494_p8 = por %p3493_p7, %p3492_p6 }
0x3bbf   :  { %3099 = vmatpush3.bf16.msra.mxu1 %v3730_v12  ;;  %v2272_v9 = vld [vmem:[#allocation2] sm:$0x3] }
0x3bc0   :  { %p3495_p9 = pnand %p3494_p8, %p3488_p5 }
0x3bc1   :  { %3093 = vmatmul.mubr.msk.bf16.vlgmr.msra.gmra.mrb[0].mxu0 %vm282_vm5, %v3900_v42 }
0x3c94   :  { %v2307_v49 = vpop.f32.mrb[0].mxu0 }
0x3c95   :  { %v2313_v36 = vadd.f32 %v2307_v49, %v2272_v9  ;;  %v3094_v38 = vpop.f32.mrb[1].mxu0 }
0x3c96   :  { %v2310_v39 = vpop.f32.mrb[2].mxu0 }
0x3c97   :  { %v3095_v40 = vpop.f32.mrb[3].mxu0  ;;  %3445 = vtanh.f32 %v2313_v36  ;;  %v2466_v41 = vmul.f32 -1.442695, %v2313_v36 }
0x3c99   :  { %3447 = vpow2.f32 %v2466_v41 }
0x3ca1   :  { %v3446_v10 = vpop.eup %3445 }
0x3ca2   :  { %2323 = vrot.lane.b32.xlu0 %v3446_v10, %s3522_s6 }
0x3ca3   :  { %v3448_v13 = vpop.eup %3447 }
0x3ca4   :  { %v2317_v20 = vadd.f32 1.0, %v3448_v13 }
0x3ca6   :  { %3449 = vrcp.f32 %v2317_v20 }
0x3cb0   :  { %v3450_v51 = vpop.eup %3449 }
0x3cb1   :  { %v2321_v42 = vmul.f32 %v3450_v51, %v3895_v1 }
0x3d14   :  { %v2324_v12 = vpop.permute.xlu0 %2323 }
0x3d15   :  { %v2326_v43 = vmul.f32 %v3450_v51, %v2324_v12 }
0x3d17   :  { %2328 = vrot.lane.b32.xlu0 %v2326_v43, %s3523_s7 }
0x3d89   :  { %v2329_v44 = vpop.permute.xlu0 %2328 }
0x3d8a   :  { %v2331_v37 = vadd.f32 %v2329_v44, %v2321_v42 }
0x3d8c   :  { %3451 = vtanh.f32 %v2331_v37 }
0x3d96   :  { %v3452_v45 = vpop.eup %3451 }
0x3d97   :  { %2334 = vrot.lane.b32.xlu1 %v3452_v45, %s3522_s6 }
0x3e09   :  { %v2335_v46 = vpop.permute.xlu1 %2334 }
0x3e0a   :  { %v2337_v48 = vmul.f32 %v3450_v51, %v2335_v46 }
0x3e0c   :  { %v2338_v50 = vpack.c.bf16 %v2337_v48, %v2337_v48 }
0x3e0e   :  { %2340 = vrot.lane.b32.xlu1 %v2338_v50, %s3523_s7 }
0x3e80   :  { %v2341_v52 = vpop.permute.xlu1 %2340 }
0x3e81   :  { %3101 = vmatmul.mubr.msk.bf16.vlgmr.msra.gmra.mrb[0].mxu1 %vm282_vm5, %v2341_v52 }
0x3f54   :  { %v2379_v53 = vpop.f32.mrb[0].mxu1 }
0x3f55   :  { %v2380_v32 = vadd.f32 %v3743_v19, %v2379_v53  ;;  %v3102_v1 = vpop.f32.mrb[1].mxu1 }
0x3f56   :  { %v2382_v55 = vpop.f32.mrb[2].mxu1 }
0x3f57   :  { %2385 = vst [vmem:[#allocation10 + $0xe] sm:$0x3] %v2380_v32  ;;  %v3103_v23 = vpop.f32.mrb[3].mxu1 }
0x3f58   :  { %3498 = shalt.err (!%p3495_p9)
}
0x3f59   :  { %s3499_s23 = scalar_lea.hbm %s3949_s3, 256 }
0x3f5a   :  { %p3500_p10 = scmp.ne.s32.totalorder %s3949_s3, %s3499_s23  ;;  %p3503_p11 = scmp.lt.u32.totalorder %s3499_s23, %s3949_s3 }
0x3f5c   :  { %p3505_p12 = pnand %p3503_p11, %p3500_p10 }
0x3f5e   :  { %3508 = shalt.err (!%p3505_p12)
}
0x3f5f   :  { %2397 = dma.vmem_to_hbm [thread:$0]  %s2392_s19, 256, %s3949_s3, [#allocation7], %s3517_s26, %s3517_s26, %s3518_s27  }
0x3f60   :  { %3513 = dma.done.wait [#allocation7], 256  }
0x3f61   :  { %3514 = vsyncadd [#allocation7], 4294967040 }
0x3f62   :  { %2401 = vsyncpa [#allocation6], 1 }
0x3f63   :  { %2402 = vsyncpa [#allocation7], 1 }
0x3f64   :  { %2403 = vsyncpa [#allocation8], 1 }

</bundles_post_ra>
